<compile_context>
chip_gen: v6e
topology: v6e:2x2x1
jax: 0.10.0
libtpu: 0.0.40
codegen_flags: <defaults>
</compile_context>

<pallas_src>
import functools
import math

import jax
import jax.numpy as jnp
from jax.experimental import pallas as pl
from jax.experimental.pallas import tpu as pltpu

_HI = jax.lax.Precision.HIGHEST


# ------------------------------ Pallas kernel --------------------------------
def _mog_bilstm_kernel(mog_iterations,
                       x_ref, w_ih_ref, w_hh_ref, b_ref, q_ref, cmog_ref,
                       out_ref):
    """Whole bidirectional sequence in one invocation.

    Shapes (D = 2 directions, batch == 1 squeezed away):
      x_ref    [T, I]        input sequence
      w_ih_ref [D, I, 4H]    input->gate weights  (dir 0 = rnn, dir 1 = rnn1)
      w_hh_ref [D, H, 4H]    hidden->gate weights
      b_ref    [D, 1, 4H]    b_ih + b_hh
      q_ref    [H, I]        mogrifier Q (shared by both directions)
      cmog_ref [1, I]        mogrifier bias c
      out_ref  [T, 2H]       lanes [:H] forward(t), lanes [H:] backward (pre-flipped)
    """
    T, I = x_ref.shape
    D, H = w_hh_ref.shape[0], w_hh_ref.shape[1]
    B = 1

    # Small weights: read once, stay VMEM/vreg resident for the whole sequence.
    w_ih = w_ih_ref[...]
    w_hh = w_hh_ref[...]
    bias = b_ref[...]
    q = q_ref[...]
    cm = cmog_ref[...]

    def load_x(t):
        # dir 0 reads x[t], dir 1 reads x[T-1-t]  ->  [D, B, I]
        x_f = x_ref[pl.ds(t, 1), :]
        x_b = x_ref[pl.ds(T - 1 - t, 1), :]
        return jnp.stack([x_f, x_b], axis=0)

    def ih_gates(x_eff):
        return jnp.einsum('dbi,dio->dbo', x_eff, w_ih,
                          precision=_HI, preferred_element_type=jnp.float32)

    def apply_gates(gates, c_prev):
        # Full-width nonlinearities (two EUP passes over 4H lanes), then slice.
        sig = jax.nn.sigmoid(gates)
        th = jnp.tanh(gates)
        i_g = sig[..., 0 * H:1 * H]          # PyTorch LSTMCell gate order: i, f, g, o
        f_g = sig[..., 1 * H:2 * H]
        g_g = th[..., 2 * H:3 * H]
        o_g = sig[..., 3 * H:4 * H]
        c_new = f_g * c_prev + i_g * g_g
        h_new = o_g * jnp.tanh(c_new)
        return h_new, c_new

    def state_matmuls(h_new, c_new):
        # Loop-carried into the NEXT step: h@W_hh feeds its gates, c@Q feeds its
        # mogrify factor.  Computing them here lets them overlap with this step's
        # elementwise tail instead of serializing at the head of the next step.
        hh = jnp.einsum('dbh,dho->dbo', h_new, w_hh,
                        precision=_HI, preferred_element_type=jnp.float32)
        cq = jnp.dot(c_new.reshape(D * B, H), q,
                     precision=_HI,
                     preferred_element_type=jnp.float32).reshape(D, B, I)
        return hh, cq

    def store(t, h_new):
        out_ref[pl.ds(t, 1), 0:H] = h_new[0]               # forward state at t
        out_ref[pl.ds(T - 1 - t, 1), H:2 * H] = h_new[1]   # backward, pre-flipped

    # ---- t == 0 hoisted: zero state, no mogrify, no h@W_hh term ----
    gates0 = ih_gates(load_x(0)) + bias
    h0, c0 = apply_gates(gates0, jnp.zeros((D, B, H), jnp.float32))
    store(0, h0)
    hh0, cq0 = state_matmuls(h0, c0)

    # ---- t = 1 .. T-1 (fully unrolled for short fixed T) ----
    def body(t, carry):
        c, hh, cq = carry
        factor = 2.0 * jnp.tanh(cq + cm)     # loop-invariant inside mogrify (c fixed)
        x_eff = load_x(t)
        for _ in range(mog_iterations):
            x_eff = factor * x_eff
        gates = ih_gates(x_eff) + hh + bias
        h_new, c_new = apply_gates(gates, c)
        store(t, h_new)
        hh_new, cq_new = state_matmuls(h_new, c_new)
        return c_new, hh_new, cq_new

    jax.lax.fori_loop(1, T, body, (c0, hh0, cq0), unroll=(T <= 64))


# --------------------------------- wrapper ------------------------------------
def mog_lstm_forward(x, params, mog_iterations):
    """x: [B, T, input_size] with B == 1 -> [1, T, 2H] (matches module's squeeze)."""
    B, T, I = x.shape
    assert B == 1, "MogLSTM.forward's squeeze(1) semantics imply batch == 1"
    H = params['w_hh'].shape[1]

    kernel = functools.partial(_mog_bilstm_kernel, mog_iterations)
    out = pl.pallas_call(
        kernel,
        out_shape=jax.ShapeDtypeStruct((T, 2 * H), jnp.float32),
        compiler_params=pltpu.CompilerParams(
            vmem_limit_bytes=4 * 1024 * 1024,   # actual working set < 100 KiB
        ),
    )(x.reshape(T, I),          # B == 1: pure relabel, no transpose/stack/flip copies
      params['w_ih'], params['w_hh'], params['b'], params['Q'], params['c'])
    return out[None]            # [1, T, 2H]


# ----------------------------- parameter init ---------------------------------
def init_params(key, input_size, hidden_size):
    I, H = input_size, hidden_size
    ks = jax.random.split(key, 8)
    u = lambda k, shape, bound: jax.random.uniform(k, shape, jnp.float32, -bound, bound)
    stdv = 1.0 / math.sqrt(H)                        # PyTorch LSTMCell default init
    xav = lambda fi, fo: math.sqrt(6.0 / (fi + fo))  # xavier_uniform_ bound

    def cell(k_ih, k_hh, k_b1, k_b2):
        w_ih = u(k_ih, (I, 4 * H), stdv)             # stored transposed: [in, 4H]
        w_hh = u(k_hh, (H, 4 * H), stdv)
        b = u(k_b1, (4 * H,), stdv) + u(k_b2, (4 * H,), stdv)        # b_ih + b_hh
        return w_ih, w_hh, b

    wih0, whh0, b0 = cell(ks[0], ks[1], ks[2], ks[3])   # self.rnn   (forward)
    wih1, whh1, b1 = cell(ks[4], ks[5], ks[6], ks[7])   # self.rnn1  (backward)

    k_q, k_c = jax.random.split(jax.random.fold_in(key, 7), 2)
    return dict(
        w_ih=jnp.stack([wih0, wih1], axis=0),        # [2, I, 4H]
        w_hh=jnp.stack([whh0, whh1], axis=0),        # [2, H, 4H]
        b=jnp.stack([b0, b1], axis=0)[:, None, :],   # [2, 1, 4H]
        Q=u(k_q, (H, I), xav(I, H)),                 # mogrifier Q  [H, I]
        c=u(k_c, (1, I), xav(1, I)),                 # mogrifier bias c  [1, I]
        # NOTE: parameter R exists in the PyTorch module but is never used in
        # forward(), so it is intentionally not materialized here.
    )


# ---------------------------- pure-JAX reference ------------------------------
def reference_forward(x, params, mog_iterations):
    B, T, I = x.shape
    W_ih, W_hh = params['w_ih'], params['w_hh']
    b = params['b'][:, 0, :]
    Q, cm = params['Q'], params['c']
    H = W_hh.shape[1]

    def lstm_cell(xt, h, c, w_ih, w_hh, bias):
        gates = (jnp.dot(xt, w_ih, precision=_HI)
                 + jnp.dot(h, w_hh, precision=_HI) + bias)
        i = jax.nn.sigmoid(gates[:, 0 * H:1 * H])
        f = jax.nn.sigmoid(gates[:, 1 * H:2 * H])
        g = jnp.tanh(gates[:, 2 * H:3 * H])
        o = jax.nn.sigmoid(gates[:, 3 * H:4 * H])
        c2 = f * c + i * g
        return o * jnp.tanh(c2), c2

    def mogrify(xt, ct):
        for _ in range(mog_iterations):
            xt = 2.0 * jnp.tanh(jnp.dot(ct, Q, precision=_HI) + cm) * xt
        return xt

    def run(seq, w_ih, w_hh, bias):
        h = jnp.zeros((B, H), jnp.float32)
        c = jnp.zeros((B, H), jnp.float32)
        h, c = lstm_cell(seq[:, 0], h, c, w_ih, w_hh, bias)
        hs = [h]
        for t in range(1, T):
            xt = mogrify(seq[:, t], c)
            h, c = lstm_cell(xt, h, c, w_ih, w_hh, bias)
            hs.append(h)
        return jnp.stack(hs, axis=0)                  # [T, B, H]

    fwd = run(x, W_ih[0], W_hh[0], b[0])
    bwd = run(jnp.flip(x, axis=1), W_ih[1], W_hh[1], b[1])
    out = jnp.concatenate([fwd, jnp.flip(bwd, axis=0)], axis=-1)     # [T, B, 2H]
    return out[:, 0, :][None]                         # [1, T, 2H]  (B == 1)


# ------------------------------------ main ------------------------------------
if __name__ == "__main__":
    # The module's forward (squeeze(1)) implies batch == 1.
    B, T, I, H, MOG_ITERS = 1, 8, 16, 32, 3

    key = jax.random.PRNGKey(0)
    k_x, k_p = jax.random.split(key)
    x = jax.random.normal(k_x, (B, T, I), jnp.float32)
    params = init_params(k_p, I, H)

    out = mog_lstm_forward(x, params, MOG_ITERS)
    jax.block_until_ready(out)

    ref = reference_forward(x, params, MOG_ITERS)
    assert out.shape == (1, T, 2 * H), out.shape
    err = float(jnp.max(jnp.abs(out - ref)))
    assert jnp.allclose(out, ref, atol=1e-3, rtol=1e-3), err

    print("KERNEL_OK")
</pallas_src>

<mosaic_0001>
module attributes {stable_mosaic.version = 11 : i64} {
  func.func @_mog_bilstm_kernel(%arg0: memref<8x16xf32, #tpu.memory_space<vmem>>, %arg1: memref<2x16x128xf32, #tpu.memory_space<vmem>>, %arg2: memref<2x32x128xf32, #tpu.memory_space<vmem>>, %arg3: memref<2x1x128xf32, #tpu.memory_space<vmem>>, %arg4: memref<32x16xf32, #tpu.memory_space<vmem>>, %arg5: memref<1x16xf32, #tpu.memory_space<vmem>>, %arg6: memref<8x64xf32, #tpu.memory_space<vmem>>) attributes {dimension_semantics = [], scalar_prefetch = 0 : i64, scratch_operands = 0 : i64, tpu.core_type = #tpu.core_type<tc>} {
    %c0 = arith.constant 0 : index
    %c0_0 = arith.constant 0 : index
    %c0_1 = arith.constant 0 : index
    %0 = vector.load %arg1[%c0, %c0_0, %c0_1] : memref<2x16x128xf32, #tpu.memory_space<vmem>>, vector<2x16x128xf32>
    %c0_2 = arith.constant 0 : index
    %c0_3 = arith.constant 0 : index
    %c0_4 = arith.constant 0 : index
    %1 = vector.load %arg2[%c0_2, %c0_3, %c0_4] : memref<2x32x128xf32, #tpu.memory_space<vmem>>, vector<2x32x128xf32>
    %c0_5 = arith.constant 0 : index
    %c0_6 = arith.constant 0 : index
    %c0_7 = arith.constant 0 : index
    %2 = vector.load %arg3[%c0_5, %c0_6, %c0_7] : memref<2x1x128xf32, #tpu.memory_space<vmem>>, vector<2x1x128xf32>
    %c0_8 = arith.constant 0 : index
    %c0_9 = arith.constant 0 : index
    %3 = vector.load %arg4[%c0_8, %c0_9] : memref<32x16xf32, #tpu.memory_space<vmem>>, vector<32x16xf32>
    %c0_10 = arith.constant 0 : index
    %c0_11 = arith.constant 0 : index
    %4 = vector.load %arg5[%c0_10, %c0_11] : memref<1x16xf32, #tpu.memory_space<vmem>>, vector<1x16xf32>
    %c0_12 = arith.constant 0 : index
    %c0_13 = arith.constant 0 : index
    %5 = vector.load %arg0[%c0_12, %c0_13] : memref<8x16xf32, #tpu.memory_space<vmem>>, vector<1x16xf32>
    %c7 = arith.constant 7 : index
    %c0_14 = arith.constant 0 : index
    %6 = vector.load %arg0[%c7, %c0_14] : memref<8x16xf32, #tpu.memory_space<vmem>>, vector<1x16xf32>
    %7 = vector.shape_cast %5 : vector<1x16xf32> to vector<1x1x16xf32>
    %8 = vector.shape_cast %6 : vector<1x16xf32> to vector<1x1x16xf32>
    %9 = tpu.concatenate %7, %8 in 0 : vector<1x1x16xf32>, vector<1x1x16xf32> -> vector<2x1x16xf32>
    "tpu.trace_start"() <{level = 10 : i32, message = "dbi,dio->dbo"}> : () -> ()
    %cst = arith.constant dense<0.000000e+00> : vector<2x1x128xf32>
    %10 = tpu.matmul %9, %0, %cst {dimension_numbers = #tpu.dot_dimension_numbers<[2], [1], [1], [2], [0, 0, 0, 1, 1, 2], [0], [0]>, precision = #tpu.contract_precision<fp32>} : vector<2x1x16xf32>, vector<2x16x128xf32>, vector<2x1x128xf32> -> vector<2x1x128xf32>
    "tpu.trace_stop"() : () -> ()
    %11 = arith.addf %10, %2 : vector<2x1x128xf32>
    %cst_15 = arith.constant 0.000000e+00 : f32
    %12 = vector.broadcast %cst_15 : f32 to vector<2x1x32xf32>
    %13 = arith.negf %11 : vector<2x1x128xf32>
    %14 = math.exp %13 : vector<2x1x128xf32>
    %cst_16 = arith.constant 1.000000e+00 : f32
    %15 = vector.broadcast %cst_16 : f32 to vector<2x1x128xf32>
    %16 = arith.addf %15, %14 : vector<2x1x128xf32>
    %17 = arith.divf %15, %16 : vector<2x1x128xf32>
    %18 = math.tanh %11 : vector<2x1x128xf32>
    %19 = vector.extract_strided_slice %17 {offsets = [0, 0, 0], sizes = [2, 1, 32], strides = [1, 1, 1]} : vector<2x1x128xf32> to vector<2x1x32xf32>
    %20 = vector.extract_strided_slice %17 {offsets = [0, 0, 32], sizes = [2, 1, 32], strides = [1, 1, 1]} : vector<2x1x128xf32> to vector<2x1x32xf32>
    %21 = vector.extract_strided_slice %18 {offsets = [0, 0, 64], sizes = [2, 1, 32], strides = [1, 1, 1]} : vector<2x1x128xf32> to vector<2x1x32xf32>
    %22 = vector.extract_strided_slice %17 {offsets = [0, 0, 96], sizes = [2, 1, 32], strides = [1, 1, 1]} : vector<2x1x128xf32> to vector<2x1x32xf32>
    %23 = arith.mulf %20, %12 : vector<2x1x32xf32>
    %24 = arith.mulf %19, %21 : vector<2x1x32xf32>
    %25 = arith.addf %23, %24 : vector<2x1x32xf32>
    %26 = math.tanh %25 : vector<2x1x32xf32>
    %27 = arith.mulf %22, %26 : vector<2x1x32xf32>
    %28 = vector.extract_strided_slice %27 {offsets = [0, 0, 0], sizes = [1, 1, 32], strides = [1, 1, 1]} : vector<2x1x32xf32> to vector<1x1x32xf32>
    %29 = vector.shape_cast %28 : vector<1x1x32xf32> to vector<1x32xf32>
    %c0_17 = arith.constant 0 : index
    %c0_18 = arith.constant 0 : index
    %30 = vector.load %arg6[%c0_17, %c0_18] : memref<8x64xf32, #tpu.memory_space<vmem>>, vector<1x32xf32>
    tpu.vector_store %arg6[%c0_17, %c0_18], %29 {strides = array<i32>} : memref<8x64xf32, #tpu.memory_space<vmem>>, vector<1x32xf32>,
    %31 = vector.extract_strided_slice %27 {offsets = [1, 0, 0], sizes = [1, 1, 32], strides = [1, 1, 1]} : vector<2x1x32xf32> to vector<1x1x32xf32>
    %32 = vector.shape_cast %31 : vector<1x1x32xf32> to vector<1x32xf32>
    %c7_19 = arith.constant 7 : index
    %c32 = arith.constant 32 : index
    %33 = vector.load %arg6[%c7_19, %c32] : memref<8x64xf32, #tpu.memory_space<vmem>>, vector<1x32xf32>
    tpu.vector_store %arg6[%c7_19, %c32], %32 {strides = array<i32>} : memref<8x64xf32, #tpu.memory_space<vmem>>, vector<1x32xf32>,
    "tpu.trace_start"() <{level = 10 : i32, message = "dbh,dho->dbo"}> : () -> ()
    %cst_20 = arith.constant dense<0.000000e+00> : vector<2x1x128xf32>
    %34 = tpu.matmul %27, %1, %cst_20 {dimension_numbers = #tpu.dot_dimension_numbers<[2], [1], [1], [2], [0, 0, 0, 1, 1, 2], [0], [0]>, precision = #tpu.contract_precision<fp32>} : vector<2x1x32xf32>, vector<2x32x128xf32>, vector<2x1x128xf32> -> vector<2x1x128xf32>
    "tpu.trace_stop"() : () -> ()
    %35 = vector.shape_cast %25 : vector<2x1x32xf32> to vector<2x32xf32>
    %cst_21 = arith.constant dense<0.000000e+00> : vector<2x16xf32>
    %36 = tpu.matmul %35, %3, %cst_21 {dimension_numbers = #tpu.dot_dimension_numbers<[1], [0], [0], [1], [0, 0, 1, 1], [], []>, precision = #tpu.contract_precision<fp32>} : vector<2x32xf32>, vector<32x16xf32>, vector<2x16xf32> -> vector<2x16xf32>
    %37 = vector.shape_cast %36 : vector<2x16xf32> to vector<2x1x16xf32>
    %c1_i32 = arith.constant 1 : i32
    %38 = vector.shape_cast %4 : vector<1x16xf32> to vector<1x1x16xf32>
    %39 = vector.broadcast %38 : vector<1x1x16xf32> to vector<2x1x16xf32>
    %40 = arith.addf %37, %39 : vector<2x1x16xf32>
    %41 = math.tanh %40 : vector<2x1x16xf32>
    %cst_22 = arith.constant 2.000000e+00 : f32
    %42 = vector.broadcast %cst_22 : f32 to vector<2x1x16xf32>
    %43 = arith.mulf %42, %41 : vector<2x1x16xf32>
    %44 = arith.index_cast %c1_i32 : i32 to index
    %c0_23 = arith.constant 0 : index
    %45 = vector.load %arg0[%44, %c0_23] : memref<8x16xf32, #tpu.memory_space<vmem>>, vector<1x16xf32>
    %c7_i32 = arith.constant 7 : i32
    %46 = arith.subi %c7_i32, %c1_i32 : i32
    %47 = arith.index_cast %46 : i32 to index
    %c0_24 = arith.constant 0 : index
    %48 = vector.load %arg0[%47, %c0_24] : memref<8x16xf32, #tpu.memory_space<vmem>>, vector<1x16xf32>
    %49 = vector.shape_cast %45 : vector<1x16xf32> to vector<1x1x16xf32>
    %50 = vector.shape_cast %48 : vector<1x16xf32> to vector<1x1x16xf32>
    %51 = tpu.concatenate %49, %50 in 0 : vector<1x1x16xf32>, vector<1x1x16xf32> -> vector<2x1x16xf32>
    %52 = arith.mulf %43, %51 : vector<2x1x16xf32>
    %53 = arith.mulf %43, %52 : vector<2x1x16xf32>
    %54 = arith.mulf %43, %53 : vector<2x1x16xf32>
    "tpu.trace_start"() <{level = 10 : i32, message = "dbi,dio->dbo"}> : () -> ()
    %cst_25 = arith.constant dense<0.000000e+00> : vector<2x1x128xf32>
    %55 = tpu.matmul %54, %0, %cst_25 {dimension_numbers = #tpu.dot_dimension_numbers<[2], [1], [1], [2], [0, 0, 0, 1, 1, 2], [0], [0]>, precision = #tpu.contract_precision<fp32>} : vector<2x1x16xf32>, vector<2x16x128xf32>, vector<2x1x128xf32> -> vector<2x1x128xf32>
    "tpu.trace_stop"() : () -> ()
    %56 = arith.addf %55, %34 : vector<2x1x128xf32>
    %57 = arith.addf %56, %2 : vector<2x1x128xf32>
    %58 = arith.negf %57 : vector<2x1x128xf32>
    %59 = math.exp %58 : vector<2x1x128xf32>
    %cst_26 = arith.constant 1.000000e+00 : f32
    %60 = vector.broadcast %cst_26 : f32 to vector<2x1x128xf32>
    %61 = arith.addf %60, %59 : vector<2x1x128xf32>
    %62 = arith.divf %60, %61 : vector<2x1x128xf32>
    %63 = math.tanh %57 : vector<2x1x128xf32>
    %64 = vector.extract_strided_slice %62 {offsets = [0, 0, 0], sizes = [2, 1, 32], strides = [1, 1, 1]} : vector<2x1x128xf32> to vector<2x1x32xf32>
    %65 = vector.extract_strided_slice %62 {offsets = [0, 0, 32], sizes = [2, 1, 32], strides = [1, 1, 1]} : vector<2x1x128xf32> to vector<2x1x32xf32>
    %66 = vector.extract_strided_slice %63 {offsets = [0, 0, 64], sizes = [2, 1, 32], strides = [1, 1, 1]} : vector<2x1x128xf32> to vector<2x1x32xf32>
    %67 = vector.extract_strided_slice %62 {offsets = [0, 0, 96], sizes = [2, 1, 32], strides = [1, 1, 1]} : vector<2x1x128xf32> to vector<2x1x32xf32>
    %68 = arith.mulf %65, %25 : vector<2x1x32xf32>
    %69 = arith.mulf %64, %66 : vector<2x1x32xf32>
    %70 = arith.addf %68, %69 : vector<2x1x32xf32>
    %71 = math.tanh %70 : vector<2x1x32xf32>
    %72 = arith.mulf %67, %71 : vector<2x1x32xf32>
    %73 = vector.extract_strided_slice %72 {offsets = [0, 0, 0], sizes = [1, 1, 32], strides = [1, 1, 1]} : vector<2x1x32xf32> to vector<1x1x32xf32>
    %74 = vector.shape_cast %73 : vector<1x1x32xf32> to vector<1x32xf32>
    %75 = arith.index_cast %c1_i32 : i32 to index
    %c0_27 = arith.constant 0 : index
    %76 = vector.load %arg6[%75, %c0_27] : memref<8x64xf32, #tpu.memory_space<vmem>>, vector<1x32xf32>
    tpu.vector_store %arg6[%75, %c0_27], %74 {strides = array<i32>} : memref<8x64xf32, #tpu.memory_space<vmem>>, vector<1x32xf32>,
    %77 = vector.extract_strided_slice %72 {offsets = [1, 0, 0], sizes = [1, 1, 32], strides = [1, 1, 1]} : vector<2x1x32xf32> to vector<1x1x32xf32>
    %78 = vector.shape_cast %77 : vector<1x1x32xf32> to vector<1x32xf32>
    %c7_i32_28 = arith.constant 7 : i32
    %79 = arith.subi %c7_i32_28, %c1_i32 : i32
    %80 = arith.index_cast %79 : i32 to index
    %c32_29 = arith.constant 32 : index
    %81 = vector.load %arg6[%80, %c32_29] : memref<8x64xf32, #tpu.memory_space<vmem>>, vector<1x32xf32>
    tpu.vector_store %arg6[%80, %c32_29], %78 {strides = array<i32>} : memref<8x64xf32, #tpu.memory_space<vmem>>, vector<1x32xf32>,
    "tpu.trace_start"() <{level = 10 : i32, message = "dbh,dho->dbo"}> : () -> ()
    %cst_30 = arith.constant dense<0.000000e+00> : vector<2x1x128xf32>
    %82 = tpu.matmul %72, %1, %cst_30 {dimension_numbers = #tpu.dot_dimension_numbers<[2], [1], [1], [2], [0, 0, 0, 1, 1, 2], [0], [0]>, precision = #tpu.contract_precision<fp32>} : vector<2x1x32xf32>, vector<2x32x128xf32>, vector<2x1x128xf32> -> vector<2x1x128xf32>
    "tpu.trace_stop"() : () -> ()
    %83 = vector.shape_cast %70 : vector<2x1x32xf32> to vector<2x32xf32>
    %cst_31 = arith.constant dense<0.000000e+00> : vector<2x16xf32>
    %84 = tpu.matmul %83, %3, %cst_31 {dimension_numbers = #tpu.dot_dimension_numbers<[1], [0], [0], [1], [0, 0, 1, 1], [], []>, precision = #tpu.contract_precision<fp32>} : vector<2x32xf32>, vector<32x16xf32>, vector<2x16xf32> -> vector<2x16xf32>
    %85 = vector.shape_cast %84 : vector<2x16xf32> to vector<2x1x16xf32>
    %c2_i32 = arith.constant 2 : i32
    %86 = vector.shape_cast %4 : vector<1x16xf32> to vector<1x1x16xf32>
    %87 = vector.broadcast %86 : vector<1x1x16xf32> to vector<2x1x16xf32>
    %88 = arith.addf %85, %87 : vector<2x1x16xf32>
    %89 = math.tanh %88 : vector<2x1x16xf32>
    %cst_32 = arith.constant 2.000000e+00 : f32
    %90 = vector.broadcast %cst_32 : f32 to vector<2x1x16xf32>
    %91 = arith.mulf %90, %89 : vector<2x1x16xf32>
    %92 = arith.index_cast %c2_i32 : i32 to index
    %c0_33 = arith.constant 0 : index
    %93 = vector.load %arg0[%92, %c0_33] : memref<8x16xf32, #tpu.memory_space<vmem>>, vector<1x16xf32>
    %c7_i32_34 = arith.constant 7 : i32
    %94 = arith.subi %c7_i32_34, %c2_i32 : i32
    %95 = arith.index_cast %94 : i32 to index
    %c0_35 = arith.constant 0 : index
    %96 = vector.load %arg0[%95, %c0_35] : memref<8x16xf32, #tpu.memory_space<vmem>>, vector<1x16xf32>
    %97 = vector.shape_cast %93 : vector<1x16xf32> to vector<1x1x16xf32>
    %98 = vector.shape_cast %96 : vector<1x16xf32> to vector<1x1x16xf32>
    %99 = tpu.concatenate %97, %98 in 0 : vector<1x1x16xf32>, vector<1x1x16xf32> -> vector<2x1x16xf32>
    %100 = arith.mulf %91, %99 : vector<2x1x16xf32>
    %101 = arith.mulf %91, %100 : vector<2x1x16xf32>
    %102 = arith.mulf %91, %101 : vector<2x1x16xf32>
    "tpu.trace_start"() <{level = 10 : i32, message = "dbi,dio->dbo"}> : () -> ()
    %cst_36 = arith.constant dense<0.000000e+00> : vector<2x1x128xf32>
    %103 = tpu.matmul %102, %0, %cst_36 {dimension_numbers = #tpu.dot_dimension_numbers<[2], [1], [1], [2], [0, 0, 0, 1, 1, 2], [0], [0]>, precision = #tpu.contract_precision<fp32>} : vector<2x1x16xf32>, vector<2x16x128xf32>, vector<2x1x128xf32> -> vector<2x1x128xf32>
    "tpu.trace_stop"() : () -> ()
    %104 = arith.addf %103, %82 : vector<2x1x128xf32>
    %105 = arith.addf %104, %2 : vector<2x1x128xf32>
    %106 = arith.negf %105 : vector<2x1x128xf32>
    %107 = math.exp %106 : vector<2x1x128xf32>
    %cst_37 = arith.constant 1.000000e+00 : f32
    %108 = vector.broadcast %cst_37 : f32 to vector<2x1x128xf32>
    %109 = arith.addf %108, %107 : vector<2x1x128xf32>
    %110 = arith.divf %108, %109 : vector<2x1x128xf32>
    %111 = math.tanh %105 : vector<2x1x128xf32>
    %112 = vector.extract_strided_slice %110 {offsets = [0, 0, 0], sizes = [2, 1, 32], strides = [1, 1, 1]} : vector<2x1x128xf32> to vector<2x1x32xf32>
    %113 = vector.extract_strided_slice %110 {offsets = [0, 0, 32], sizes = [2, 1, 32], strides = [1, 1, 1]} : vector<2x1x128xf32> to vector<2x1x32xf32>
    %114 = vector.extract_strided_slice %111 {offsets = [0, 0, 64], sizes = [2, 1, 32], strides = [1, 1, 1]} : vector<2x1x128xf32> to vector<2x1x32xf32>
    %115 = vector.extract_strided_slice %110 {offsets = [0, 0, 96], sizes = [2, 1, 32], strides = [1, 1, 1]} : vector<2x1x128xf32> to vector<2x1x32xf32>
    %116 = arith.mulf %113, %70 : vector<2x1x32xf32>
    %117 = arith.mulf %112, %114 : vector<2x1x32xf32>
    %118 = arith.addf %116, %117 : vector<2x1x32xf32>
    %119 = math.tanh %118 : vector<2x1x32xf32>
    %120 = arith.mulf %115, %119 : vector<2x1x32xf32>
    %121 = vector.extract_strided_slice %120 {offsets = [0, 0, 0], sizes = [1, 1, 32], strides = [1, 1, 1]} : vector<2x1x32xf32> to vector<1x1x32xf32>
    %122 = vector.shape_cast %121 : vector<1x1x32xf32> to vector<1x32xf32>
    %123 = arith.index_cast %c2_i32 : i32 to index
    %c0_38 = arith.constant 0 : index
    %124 = vector.load %arg6[%123, %c0_38] : memref<8x64xf32, #tpu.memory_space<vmem>>, vector<1x32xf32>
    tpu.vector_store %arg6[%123, %c0_38], %122 {strides = array<i32>} : memref<8x64xf32, #tpu.memory_space<vmem>>, vector<1x32xf32>,
    %125 = vector.extract_strided_slice %120 {offsets = [1, 0, 0], sizes = [1, 1, 32], strides = [1, 1, 1]} : vector<2x1x32xf32> to vector<1x1x32xf32>
    %126 = vector.shape_cast %125 : vector<1x1x32xf32> to vector<1x32xf32>
    %c7_i32_39 = arith.constant 7 : i32
    %127 = arith.subi %c7_i32_39, %c2_i32 : i32
    %128 = arith.index_cast %127 : i32 to index
    %c32_40 = arith.constant 32 : index
    %129 = vector.load %arg6[%128, %c32_40] : memref<8x64xf32, #tpu.memory_space<vmem>>, vector<1x32xf32>
    tpu.vector_store %arg6[%128, %c32_40], %126 {strides = array<i32>} : memref<8x64xf32, #tpu.memory_space<vmem>>, vector<1x32xf32>,
    "tpu.trace_start"() <{level = 10 : i32, message = "dbh,dho->dbo"}> : () -> ()
    %cst_41 = arith.constant dense<0.000000e+00> : vector<2x1x128xf32>
    %130 = tpu.matmul %120, %1, %cst_41 {dimension_numbers = #tpu.dot_dimension_numbers<[2], [1], [1], [2], [0, 0, 0, 1, 1, 2], [0], [0]>, precision = #tpu.contract_precision<fp32>} : vector<2x1x32xf32>, vector<2x32x128xf32>, vector<2x1x128xf32> -> vector<2x1x128xf32>
    "tpu.trace_stop"() : () -> ()
    %131 = vector.shape_cast %118 : vector<2x1x32xf32> to vector<2x32xf32>
    %cst_42 = arith.constant dense<0.000000e+00> : vector<2x16xf32>
    %132 = tpu.matmul %131, %3, %cst_42 {dimension_numbers = #tpu.dot_dimension_numbers<[1], [0], [0], [1], [0, 0, 1, 1], [], []>, precision = #tpu.contract_precision<fp32>} : vector<2x32xf32>, vector<32x16xf32>, vector<2x16xf32> -> vector<2x16xf32>
    %133 = vector.shape_cast %132 : vector<2x16xf32> to vector<2x1x16xf32>
    %c3_i32 = arith.constant 3 : i32
    %134 = vector.shape_cast %4 : vector<1x16xf32> to vector<1x1x16xf32>
    %135 = vector.broadcast %134 : vector<1x1x16xf32> to vector<2x1x16xf32>
    %136 = arith.addf %133, %135 : vector<2x1x16xf32>
    %137 = math.tanh %136 : vector<2x1x16xf32>
    %cst_43 = arith.constant 2.000000e+00 : f32
    %138 = vector.broadcast %cst_43 : f32 to vector<2x1x16xf32>
    %139 = arith.mulf %138, %137 : vector<2x1x16xf32>
    %140 = arith.index_cast %c3_i32 : i32 to index
    %c0_44 = arith.constant 0 : index
    %141 = vector.load %arg0[%140, %c0_44] : memref<8x16xf32, #tpu.memory_space<vmem>>, vector<1x16xf32>
    %c7_i32_45 = arith.constant 7 : i32
    %142 = arith.subi %c7_i32_45, %c3_i32 : i32
    %143 = arith.index_cast %142 : i32 to index
    %c0_46 = arith.constant 0 : index
    %144 = vector.load %arg0[%143, %c0_46] : memref<8x16xf32, #tpu.memory_space<vmem>>, vector<1x16xf32>
    %145 = vector.shape_cast %141 : vector<1x16xf32> to vector<1x1x16xf32>
    %146 = vector.shape_cast %144 : vector<1x16xf32> to vector<1x1x16xf32>
    %147 = tpu.concatenate %145, %146 in 0 : vector<1x1x16xf32>, vector<1x1x16xf32> -> vector<2x1x16xf32>
    %148 = arith.mulf %139, %147 : vector<2x1x16xf32>
    %149 = arith.mulf %139, %148 : vector<2x1x16xf32>
    %150 = arith.mulf %139, %149 : vector<2x1x16xf32>
    "tpu.trace_start"() <{level = 10 : i32, message = "dbi,dio->dbo"}> : () -> ()
    %cst_47 = arith.constant dense<0.000000e+00> : vector<2x1x128xf32>
    %151 = tpu.matmul %150, %0, %cst_47 {dimension_numbers = #tpu.dot_dimension_numbers<[2], [1], [1], [2], [0, 0, 0, 1, 1, 2], [0], [0]>, precision = #tpu.contract_precision<fp32>} : vector<2x1x16xf32>, vector<2x16x128xf32>, vector<2x1x128xf32> -> vector<2x1x128xf32>
    "tpu.trace_stop"() : () -> ()
    %152 = arith.addf %151, %130 : vector<2x1x128xf32>
    %153 = arith.addf %152, %2 : vector<2x1x128xf32>
    %154 = arith.negf %153 : vector<2x1x128xf32>
    %155 = math.exp %154 : vector<2x1x128xf32>
    %cst_48 = arith.constant 1.000000e+00 : f32
    %156 = vector.broadcast %cst_48 : f32 to vector<2x1x128xf32>
    %157 = arith.addf %156, %155 : vector<2x1x128xf32>
    %158 = arith.divf %156, %157 : vector<2x1x128xf32>
    %159 = math.tanh %153 : vector<2x1x128xf32>
    %160 = vector.extract_strided_slice %158 {offsets = [0, 0, 0], sizes = [2, 1, 32], strides = [1, 1, 1]} : vector<2x1x128xf32> to vector<2x1x32xf32>
    %161 = vector.extract_strided_slice %158 {offsets = [0, 0, 32], sizes = [2, 1, 32], strides = [1, 1, 1]} : vector<2x1x128xf32> to vector<2x1x32xf32>
    %162 = vector.extract_strided_slice %159 {offsets = [0, 0, 64], sizes = [2, 1, 32], strides = [1, 1, 1]} : vector<2x1x128xf32> to vector<2x1x32xf32>
    %163 = vector.extract_strided_slice %158 {offsets = [0, 0, 96], sizes = [2, 1, 32], strides = [1, 1, 1]} : vector<2x1x128xf32> to vector<2x1x32xf32>
    %164 = arith.mulf %161, %118 : vector<2x1x32xf32>
    %165 = arith.mulf %160, %162 : vector<2x1x32xf32>
    %166 = arith.addf %164, %165 : vector<2x1x32xf32>
    %167 = math.tanh %166 : vector<2x1x32xf32>
    %168 = arith.mulf %163, %167 : vector<2x1x32xf32>
    %169 = vector.extract_strided_slice %168 {offsets = [0, 0, 0], sizes = [1, 1, 32], strides = [1, 1, 1]} : vector<2x1x32xf32> to vector<1x1x32xf32>
    %170 = vector.shape_cast %169 : vector<1x1x32xf32> to vector<1x32xf32>
    %171 = arith.index_cast %c3_i32 : i32 to index
    %c0_49 = arith.constant 0 : index
    %172 = vector.load %arg6[%171, %c0_49] : memref<8x64xf32, #tpu.memory_space<vmem>>, vector<1x32xf32>
    tpu.vector_store %arg6[%171, %c0_49], %170 {strides = array<i32>} : memref<8x64xf32, #tpu.memory_space<vmem>>, vector<1x32xf32>,
    %173 = vector.extract_strided_slice %168 {offsets = [1, 0, 0], sizes = [1, 1, 32], strides = [1, 1, 1]} : vector<2x1x32xf32> to vector<1x1x32xf32>
    %174 = vector.shape_cast %173 : vector<1x1x32xf32> to vector<1x32xf32>
    %c7_i32_50 = arith.constant 7 : i32
    %175 = arith.subi %c7_i32_50, %c3_i32 : i32
    %176 = arith.index_cast %175 : i32 to index
    %c32_51 = arith.constant 32 : index
    %177 = vector.load %arg6[%176, %c32_51] : memref<8x64xf32, #tpu.memory_space<vmem>>, vector<1x32xf32>
    tpu.vector_store %arg6[%176, %c32_51], %174 {strides = array<i32>} : memref<8x64xf32, #tpu.memory_space<vmem>>, vector<1x32xf32>,
    "tpu.trace_start"() <{level = 10 : i32, message = "dbh,dho->dbo"}> : () -> ()
    %cst_52 = arith.constant dense<0.000000e+00> : vector<2x1x128xf32>
    %178 = tpu.matmul %168, %1, %cst_52 {dimension_numbers = #tpu.dot_dimension_numbers<[2], [1], [1], [2], [0, 0, 0, 1, 1, 2], [0], [0]>, precision = #tpu.contract_precision<fp32>} : vector<2x1x32xf32>, vector<2x32x128xf32>, vector<2x1x128xf32> -> vector<2x1x128xf32>
    "tpu.trace_stop"() : () -> ()
    %179 = vector.shape_cast %166 : vector<2x1x32xf32> to vector<2x32xf32>
    %cst_53 = arith.constant dense<0.000000e+00> : vector<2x16xf32>
    %180 = tpu.matmul %179, %3, %cst_53 {dimension_numbers = #tpu.dot_dimension_numbers<[1], [0], [0], [1], [0, 0, 1, 1], [], []>, precision = #tpu.contract_precision<fp32>} : vector<2x32xf32>, vector<32x16xf32>, vector<2x16xf32> -> vector<2x16xf32>
    %181 = vector.shape_cast %180 : vector<2x16xf32> to vector<2x1x16xf32>
    %c4_i32 = arith.constant 4 : i32
    %182 = vector.shape_cast %4 : vector<1x16xf32> to vector<1x1x16xf32>
    %183 = vector.broadcast %182 : vector<1x1x16xf32> to vector<2x1x16xf32>
    %184 = arith.addf %181, %183 : vector<2x1x16xf32>
    %185 = math.tanh %184 : vector<2x1x16xf32>
    %cst_54 = arith.constant 2.000000e+00 : f32
    %186 = vector.broadcast %cst_54 : f32 to vector<2x1x16xf32>
    %187 = arith.mulf %186, %185 : vector<2x1x16xf32>
    %188 = arith.index_cast %c4_i32 : i32 to index
    %c0_55 = arith.constant 0 : index
    %189 = vector.load %arg0[%188, %c0_55] : memref<8x16xf32, #tpu.memory_space<vmem>>, vector<1x16xf32>
    %c7_i32_56 = arith.constant 7 : i32
    %190 = arith.subi %c7_i32_56, %c4_i32 : i32
    %191 = arith.index_cast %190 : i32 to index
    %c0_57 = arith.constant 0 : index
    %192 = vector.load %arg0[%191, %c0_57] : memref<8x16xf32, #tpu.memory_space<vmem>>, vector<1x16xf32>
    %193 = vector.shape_cast %189 : vector<1x16xf32> to vector<1x1x16xf32>
    %194 = vector.shape_cast %192 : vector<1x16xf32> to vector<1x1x16xf32>
    %195 = tpu.concatenate %193, %194 in 0 : vector<1x1x16xf32>, vector<1x1x16xf32> -> vector<2x1x16xf32>
    %196 = arith.mulf %187, %195 : vector<2x1x16xf32>
    %197 = arith.mulf %187, %196 : vector<2x1x16xf32>
    %198 = arith.mulf %187, %197 : vector<2x1x16xf32>
    "tpu.trace_start"() <{level = 10 : i32, message = "dbi,dio->dbo"}> : () -> ()
    %cst_58 = arith.constant dense<0.000000e+00> : vector<2x1x128xf32>
    %199 = tpu.matmul %198, %0, %cst_58 {dimension_numbers = #tpu.dot_dimension_numbers<[2], [1], [1], [2], [0, 0, 0, 1, 1, 2], [0], [0]>, precision = #tpu.contract_precision<fp32>} : vector<2x1x16xf32>, vector<2x16x128xf32>, vector<2x1x128xf32> -> vector<2x1x128xf32>
    "tpu.trace_stop"() : () -> ()
    %200 = arith.addf %199, %178 : vector<2x1x128xf32>
    %201 = arith.addf %200, %2 : vector<2x1x128xf32>
    %202 = arith.negf %201 : vector<2x1x128xf32>
    %203 = math.exp %202 : vector<2x1x128xf32>
    %cst_59 = arith.constant 1.000000e+00 : f32
    %204 = vector.broadcast %cst_59 : f32 to vector<2x1x128xf32>
    %205 = arith.addf %204, %203 : vector<2x1x128xf32>
    %206 = arith.divf %204, %205 : vector<2x1x128xf32>
    %207 = math.tanh %201 : vector<2x1x128xf32>
    %208 = vector.extract_strided_slice %206 {offsets = [0, 0, 0], sizes = [2, 1, 32], strides = [1, 1, 1]} : vector<2x1x128xf32> to vector<2x1x32xf32>
    %209 = vector.extract_strided_slice %206 {offsets = [0, 0, 32], sizes = [2, 1, 32], strides = [1, 1, 1]} : vector<2x1x128xf32> to vector<2x1x32xf32>
    %210 = vector.extract_strided_slice %207 {offsets = [0, 0, 64], sizes = [2, 1, 32], strides = [1, 1, 1]} : vector<2x1x128xf32> to vector<2x1x32xf32>
    %211 = vector.extract_strided_slice %206 {offsets = [0, 0, 96], sizes = [2, 1, 32], strides = [1, 1, 1]} : vector<2x1x128xf32> to vector<2x1x32xf32>
    %212 = arith.mulf %209, %166 : vector<2x1x32xf32>
    %213 = arith.mulf %208, %210 : vector<2x1x32xf32>
    %214 = arith.addf %212, %213 : vector<2x1x32xf32>
    %215 = math.tanh %214 : vector<2x1x32xf32>
    %216 = arith.mulf %211, %215 : vector<2x1x32xf32>
    %217 = vector.extract_strided_slice %216 {offsets = [0, 0, 0], sizes = [1, 1, 32], strides = [1, 1, 1]} : vector<2x1x32xf32> to vector<1x1x32xf32>
    %218 = vector.shape_cast %217 : vector<1x1x32xf32> to vector<1x32xf32>
    %219 = arith.index_cast %c4_i32 : i32 to index
    %c0_60 = arith.constant 0 : index
    %220 = vector.load %arg6[%219, %c0_60] : memref<8x64xf32, #tpu.memory_space<vmem>>, vector<1x32xf32>
    tpu.vector_store %arg6[%219, %c0_60], %218 {strides = array<i32>} : memref<8x64xf32, #tpu.memory_space<vmem>>, vector<1x32xf32>,
    %221 = vector.extract_strided_slice %216 {offsets = [1, 0, 0], sizes = [1, 1, 32], strides = [1, 1, 1]} : vector<2x1x32xf32> to vector<1x1x32xf32>
    %222 = vector.shape_cast %221 : vector<1x1x32xf32> to vector<1x32xf32>
    %c7_i32_61 = arith.constant 7 : i32
    %223 = arith.subi %c7_i32_61, %c4_i32 : i32
    %224 = arith.index_cast %223 : i32 to index
    %c32_62 = arith.constant 32 : index
    %225 = vector.load %arg6[%224, %c32_62] : memref<8x64xf32, #tpu.memory_space<vmem>>, vector<1x32xf32>
    tpu.vector_store %arg6[%224, %c32_62], %222 {strides = array<i32>} : memref<8x64xf32, #tpu.memory_space<vmem>>, vector<1x32xf32>,
    "tpu.trace_start"() <{level = 10 : i32, message = "dbh,dho->dbo"}> : () -> ()
    %cst_63 = arith.constant dense<0.000000e+00> : vector<2x1x128xf32>
    %226 = tpu.matmul %216, %1, %cst_63 {dimension_numbers = #tpu.dot_dimension_numbers<[2], [1], [1], [2], [0, 0, 0, 1, 1, 2], [0], [0]>, precision = #tpu.contract_precision<fp32>} : vector<2x1x32xf32>, vector<2x32x128xf32>, vector<2x1x128xf32> -> vector<2x1x128xf32>
    "tpu.trace_stop"() : () -> ()
    %227 = vector.shape_cast %214 : vector<2x1x32xf32> to vector<2x32xf32>
    %cst_64 = arith.constant dense<0.000000e+00> : vector<2x16xf32>
    %228 = tpu.matmul %227, %3, %cst_64 {dimension_numbers = #tpu.dot_dimension_numbers<[1], [0], [0], [1], [0, 0, 1, 1], [], []>, precision = #tpu.contract_precision<fp32>} : vector<2x32xf32>, vector<32x16xf32>, vector<2x16xf32> -> vector<2x16xf32>
    %229 = vector.shape_cast %228 : vector<2x16xf32> to vector<2x1x16xf32>
    %c5_i32 = arith.constant 5 : i32
    %230 = vector.shape_cast %4 : vector<1x16xf32> to vector<1x1x16xf32>
    %231 = vector.broadcast %230 : vector<1x1x16xf32> to vector<2x1x16xf32>
    %232 = arith.addf %229, %231 : vector<2x1x16xf32>
    %233 = math.tanh %232 : vector<2x1x16xf32>
    %cst_65 = arith.constant 2.000000e+00 : f32
    %234 = vector.broadcast %cst_65 : f32 to vector<2x1x16xf32>
    %235 = arith.mulf %234, %233 : vector<2x1x16xf32>
    %236 = arith.index_cast %c5_i32 : i32 to index
    %c0_66 = arith.constant 0 : index
    %237 = vector.load %arg0[%236, %c0_66] : memref<8x16xf32, #tpu.memory_space<vmem>>, vector<1x16xf32>
    %c7_i32_67 = arith.constant 7 : i32
    %238 = arith.subi %c7_i32_67, %c5_i32 : i32
    %239 = arith.index_cast %238 : i32 to index
    %c0_68 = arith.constant 0 : index
    %240 = vector.load %arg0[%239, %c0_68] : memref<8x16xf32, #tpu.memory_space<vmem>>, vector<1x16xf32>
    %241 = vector.shape_cast %237 : vector<1x16xf32> to vector<1x1x16xf32>
    %242 = vector.shape_cast %240 : vector<1x16xf32> to vector<1x1x16xf32>
    %243 = tpu.concatenate %241, %242 in 0 : vector<1x1x16xf32>, vector<1x1x16xf32> -> vector<2x1x16xf32>
    %244 = arith.mulf %235, %243 : vector<2x1x16xf32>
    %245 = arith.mulf %235, %244 : vector<2x1x16xf32>
    %246 = arith.mulf %235, %245 : vector<2x1x16xf32>
    "tpu.trace_start"() <{level = 10 : i32, message = "dbi,dio->dbo"}> : () -> ()
    %cst_69 = arith.constant dense<0.000000e+00> : vector<2x1x128xf32>
    %247 = tpu.matmul %246, %0, %cst_69 {dimension_numbers = #tpu.dot_dimension_numbers<[2], [1], [1], [2], [0, 0, 0, 1, 1, 2], [0], [0]>, precision = #tpu.contract_precision<fp32>} : vector<2x1x16xf32>, vector<2x16x128xf32>, vector<2x1x128xf32> -> vector<2x1x128xf32>
    "tpu.trace_stop"() : () -> ()
    %248 = arith.addf %247, %226 : vector<2x1x128xf32>
    %249 = arith.addf %248, %2 : vector<2x1x128xf32>
    %250 = arith.negf %249 : vector<2x1x128xf32>
    %251 = math.exp %250 : vector<2x1x128xf32>
    %cst_70 = arith.constant 1.000000e+00 : f32
    %252 = vector.broadcast %cst_70 : f32 to vector<2x1x128xf32>
    %253 = arith.addf %252, %251 : vector<2x1x128xf32>
    %254 = arith.divf %252, %253 : vector<2x1x128xf32>
    %255 = math.tanh %249 : vector<2x1x128xf32>
    %256 = vector.extract_strided_slice %254 {offsets = [0, 0, 0], sizes = [2, 1, 32], strides = [1, 1, 1]} : vector<2x1x128xf32> to vector<2x1x32xf32>
    %257 = vector.extract_strided_slice %254 {offsets = [0, 0, 32], sizes = [2, 1, 32], strides = [1, 1, 1]} : vector<2x1x128xf32> to vector<2x1x32xf32>
    %258 = vector.extract_strided_slice %255 {offsets = [0, 0, 64], sizes = [2, 1, 32], strides = [1, 1, 1]} : vector<2x1x128xf32> to vector<2x1x32xf32>
    %259 = vector.extract_strided_slice %254 {offsets = [0, 0, 96], sizes = [2, 1, 32], strides = [1, 1, 1]} : vector<2x1x128xf32> to vector<2x1x32xf32>
    %260 = arith.mulf %257, %214 : vector<2x1x32xf32>
    %261 = arith.mulf %256, %258 : vector<2x1x32xf32>
    %262 = arith.addf %260, %261 : vector<2x1x32xf32>
    %263 = math.tanh %262 : vector<2x1x32xf32>
    %264 = arith.mulf %259, %263 : vector<2x1x32xf32>
    %265 = vector.extract_strided_slice %264 {offsets = [0, 0, 0], sizes = [1, 1, 32], strides = [1, 1, 1]} : vector<2x1x32xf32> to vector<1x1x32xf32>
    %266 = vector.shape_cast %265 : vector<1x1x32xf32> to vector<1x32xf32>
    %267 = arith.index_cast %c5_i32 : i32 to index
    %c0_71 = arith.constant 0 : index
    %268 = vector.load %arg6[%267, %c0_71] : memref<8x64xf32, #tpu.memory_space<vmem>>, vector<1x32xf32>
    tpu.vector_store %arg6[%267, %c0_71], %266 {strides = array<i32>} : memref<8x64xf32, #tpu.memory_space<vmem>>, vector<1x32xf32>,
    %269 = vector.extract_strided_slice %264 {offsets = [1, 0, 0], sizes = [1, 1, 32], strides = [1, 1, 1]} : vector<2x1x32xf32> to vector<1x1x32xf32>
    %270 = vector.shape_cast %269 : vector<1x1x32xf32> to vector<1x32xf32>
    %c7_i32_72 = arith.constant 7 : i32
    %271 = arith.subi %c7_i32_72, %c5_i32 : i32
    %272 = arith.index_cast %271 : i32 to index
    %c32_73 = arith.constant 32 : index
    %273 = vector.load %arg6[%272, %c32_73] : memref<8x64xf32, #tpu.memory_space<vmem>>, vector<1x32xf32>
    tpu.vector_store %arg6[%272, %c32_73], %270 {strides = array<i32>} : memref<8x64xf32, #tpu.memory_space<vmem>>, vector<1x32xf32>,
    "tpu.trace_start"() <{level = 10 : i32, message = "dbh,dho->dbo"}> : () -> ()
    %cst_74 = arith.constant dense<0.000000e+00> : vector<2x1x128xf32>
    %274 = tpu.matmul %264, %1, %cst_74 {dimension_numbers = #tpu.dot_dimension_numbers<[2], [1], [1], [2], [0, 0, 0, 1, 1, 2], [0], [0]>, precision = #tpu.contract_precision<fp32>} : vector<2x1x32xf32>, vector<2x32x128xf32>, vector<2x1x128xf32> -> vector<2x1x128xf32>
    "tpu.trace_stop"() : () -> ()
    %275 = vector.shape_cast %262 : vector<2x1x32xf32> to vector<2x32xf32>
    %cst_75 = arith.constant dense<0.000000e+00> : vector<2x16xf32>
    %276 = tpu.matmul %275, %3, %cst_75 {dimension_numbers = #tpu.dot_dimension_numbers<[1], [0], [0], [1], [0, 0, 1, 1], [], []>, precision = #tpu.contract_precision<fp32>} : vector<2x32xf32>, vector<32x16xf32>, vector<2x16xf32> -> vector<2x16xf32>
    %277 = vector.shape_cast %276 : vector<2x16xf32> to vector<2x1x16xf32>
    %c6_i32 = arith.constant 6 : i32
    %278 = vector.shape_cast %4 : vector<1x16xf32> to vector<1x1x16xf32>
    %279 = vector.broadcast %278 : vector<1x1x16xf32> to vector<2x1x16xf32>
    %280 = arith.addf %277, %279 : vector<2x1x16xf32>
    %281 = math.tanh %280 : vector<2x1x16xf32>
    %cst_76 = arith.constant 2.000000e+00 : f32
    %282 = vector.broadcast %cst_76 : f32 to vector<2x1x16xf32>
    %283 = arith.mulf %282, %281 : vector<2x1x16xf32>
    %284 = arith.index_cast %c6_i32 : i32 to index
    %c0_77 = arith.constant 0 : index
    %285 = vector.load %arg0[%284, %c0_77] : memref<8x16xf32, #tpu.memory_space<vmem>>, vector<1x16xf32>
    %c7_i32_78 = arith.constant 7 : i32
    %286 = arith.subi %c7_i32_78, %c6_i32 : i32
    %287 = arith.index_cast %286 : i32 to index
    %c0_79 = arith.constant 0 : index
    %288 = vector.load %arg0[%287, %c0_79] : memref<8x16xf32, #tpu.memory_space<vmem>>, vector<1x16xf32>
    %289 = vector.shape_cast %285 : vector<1x16xf32> to vector<1x1x16xf32>
    %290 = vector.shape_cast %288 : vector<1x16xf32> to vector<1x1x16xf32>
    %291 = tpu.concatenate %289, %290 in 0 : vector<1x1x16xf32>, vector<1x1x16xf32> -> vector<2x1x16xf32>
    %292 = arith.mulf %283, %291 : vector<2x1x16xf32>
    %293 = arith.mulf %283, %292 : vector<2x1x16xf32>
    %294 = arith.mulf %283, %293 : vector<2x1x16xf32>
    "tpu.trace_start"() <{level = 10 : i32, message = "dbi,dio->dbo"}> : () -> ()
    %cst_80 = arith.constant dense<0.000000e+00> : vector<2x1x128xf32>
    %295 = tpu.matmul %294, %0, %cst_80 {dimension_numbers = #tpu.dot_dimension_numbers<[2], [1], [1], [2], [0, 0, 0, 1, 1, 2], [0], [0]>, precision = #tpu.contract_precision<fp32>} : vector<2x1x16xf32>, vector<2x16x128xf32>, vector<2x1x128xf32> -> vector<2x1x128xf32>
    "tpu.trace_stop"() : () -> ()
    %296 = arith.addf %295, %274 : vector<2x1x128xf32>
    %297 = arith.addf %296, %2 : vector<2x1x128xf32>
    %298 = arith.negf %297 : vector<2x1x128xf32>
    %299 = math.exp %298 : vector<2x1x128xf32>
    %cst_81 = arith.constant 1.000000e+00 : f32
    %300 = vector.broadcast %cst_81 : f32 to vector<2x1x128xf32>
    %301 = arith.addf %300, %299 : vector<2x1x128xf32>
    %302 = arith.divf %300, %301 : vector<2x1x128xf32>
    %303 = math.tanh %297 : vector<2x1x128xf32>
    %304 = vector.extract_strided_slice %302 {offsets = [0, 0, 0], sizes = [2, 1, 32], strides = [1, 1, 1]} : vector<2x1x128xf32> to vector<2x1x32xf32>
    %305 = vector.extract_strided_slice %302 {offsets = [0, 0, 32], sizes = [2, 1, 32], strides = [1, 1, 1]} : vector<2x1x128xf32> to vector<2x1x32xf32>
    %306 = vector.extract_strided_slice %303 {offsets = [0, 0, 64], sizes = [2, 1, 32], strides = [1, 1, 1]} : vector<2x1x128xf32> to vector<2x1x32xf32>
    %307 = vector.extract_strided_slice %302 {offsets = [0, 0, 96], sizes = [2, 1, 32], strides = [1, 1, 1]} : vector<2x1x128xf32> to vector<2x1x32xf32>
    %308 = arith.mulf %305, %262 : vector<2x1x32xf32>
    %309 = arith.mulf %304, %306 : vector<2x1x32xf32>
    %310 = arith.addf %308, %309 : vector<2x1x32xf32>
    %311 = math.tanh %310 : vector<2x1x32xf32>
    %312 = arith.mulf %307, %311 : vector<2x1x32xf32>
    %313 = vector.extract_strided_slice %312 {offsets = [0, 0, 0], sizes = [1, 1, 32], strides = [1, 1, 1]} : vector<2x1x32xf32> to vector<1x1x32xf32>
    %314 = vector.shape_cast %313 : vector<1x1x32xf32> to vector<1x32xf32>
    %315 = arith.index_cast %c6_i32 : i32 to index
    %c0_82 = arith.constant 0 : index
    %316 = vector.load %arg6[%315, %c0_82] : memref<8x64xf32, #tpu.memory_space<vmem>>, vector<1x32xf32>
    tpu.vector_store %arg6[%315, %c0_82], %314 {strides = array<i32>} : memref<8x64xf32, #tpu.memory_space<vmem>>, vector<1x32xf32>,
    %317 = vector.extract_strided_slice %312 {offsets = [1, 0, 0], sizes = [1, 1, 32], strides = [1, 1, 1]} : vector<2x1x32xf32> to vector<1x1x32xf32>
    %318 = vector.shape_cast %317 : vector<1x1x32xf32> to vector<1x32xf32>
    %c7_i32_83 = arith.constant 7 : i32
    %319 = arith.subi %c7_i32_83, %c6_i32 : i32
    %320 = arith.index_cast %319 : i32 to index
    %c32_84 = arith.constant 32 : index
    %321 = vector.load %arg6[%320, %c32_84] : memref<8x64xf32, #tpu.memory_space<vmem>>, vector<1x32xf32>
    tpu.vector_store %arg6[%320, %c32_84], %318 {strides = array<i32>} : memref<8x64xf32, #tpu.memory_space<vmem>>, vector<1x32xf32>,
    "tpu.trace_start"() <{level = 10 : i32, message = "dbh,dho->dbo"}> : () -> ()
    %cst_85 = arith.constant dense<0.000000e+00> : vector<2x1x128xf32>
    %322 = tpu.matmul %312, %1, %cst_85 {dimension_numbers = #tpu.dot_dimension_numbers<[2], [1], [1], [2], [0, 0, 0, 1, 1, 2], [0], [0]>, precision = #tpu.contract_precision<fp32>} : vector<2x1x32xf32>, vector<2x32x128xf32>, vector<2x1x128xf32> -> vector<2x1x128xf32>
    "tpu.trace_stop"() : () -> ()
    %323 = vector.shape_cast %310 : vector<2x1x32xf32> to vector<2x32xf32>
    %cst_86 = arith.constant dense<0.000000e+00> : vector<2x16xf32>
    %324 = tpu.matmul %323, %3, %cst_86 {dimension_numbers = #tpu.dot_dimension_numbers<[1], [0], [0], [1], [0, 0, 1, 1], [], []>, precision = #tpu.contract_precision<fp32>} : vector<2x32xf32>, vector<32x16xf32>, vector<2x16xf32> -> vector<2x16xf32>
    %325 = vector.shape_cast %324 : vector<2x16xf32> to vector<2x1x16xf32>
    %c7_i32_87 = arith.constant 7 : i32
    %326 = vector.shape_cast %4 : vector<1x16xf32> to vector<1x1x16xf32>
    %327 = vector.broadcast %326 : vector<1x1x16xf32> to vector<2x1x16xf32>
    %328 = arith.addf %325, %327 : vector<2x1x16xf32>
    %329 = math.tanh %328 : vector<2x1x16xf32>
    %cst_88 = arith.constant 2.000000e+00 : f32
    %330 = vector.broadcast %cst_88 : f32 to vector<2x1x16xf32>
    %331 = arith.mulf %330, %329 : vector<2x1x16xf32>
    %332 = arith.index_cast %c7_i32_87 : i32 to index
    %c0_89 = arith.constant 0 : index
    %333 = vector.load %arg0[%332, %c0_89] : memref<8x16xf32, #tpu.memory_space<vmem>>, vector<1x16xf32>
    %c7_i32_90 = arith.constant 7 : i32
    %334 = arith.subi %c7_i32_90, %c7_i32_87 : i32
    %335 = arith.index_cast %334 : i32 to index
    %c0_91 = arith.constant 0 : index
    %336 = vector.load %arg0[%335, %c0_91] : memref<8x16xf32, #tpu.memory_space<vmem>>, vector<1x16xf32>
    %337 = vector.shape_cast %333 : vector<1x16xf32> to vector<1x1x16xf32>
    %338 = vector.shape_cast %336 : vector<1x16xf32> to vector<1x1x16xf32>
    %339 = tpu.concatenate %337, %338 in 0 : vector<1x1x16xf32>, vector<1x1x16xf32> -> vector<2x1x16xf32>
    %340 = arith.mulf %331, %339 : vector<2x1x16xf32>
    %341 = arith.mulf %331, %340 : vector<2x1x16xf32>
    %342 = arith.mulf %331, %341 : vector<2x1x16xf32>
    "tpu.trace_start"() <{level = 10 : i32, message = "dbi,dio->dbo"}> : () -> ()
    %cst_92 = arith.constant dense<0.000000e+00> : vector<2x1x128xf32>
    %343 = tpu.matmul %342, %0, %cst_92 {dimension_numbers = #tpu.dot_dimension_numbers<[2], [1], [1], [2], [0, 0, 0, 1, 1, 2], [0], [0]>, precision = #tpu.contract_precision<fp32>} : vector<2x1x16xf32>, vector<2x16x128xf32>, vector<2x1x128xf32> -> vector<2x1x128xf32>
    "tpu.trace_stop"() : () -> ()
    %344 = arith.addf %343, %322 : vector<2x1x128xf32>
    %345 = arith.addf %344, %2 : vector<2x1x128xf32>
    %346 = arith.negf %345 : vector<2x1x128xf32>
    %347 = math.exp %346 : vector<2x1x128xf32>
    %cst_93 = arith.constant 1.000000e+00 : f32
    %348 = vector.broadcast %cst_93 : f32 to vector<2x1x128xf32>
    %349 = arith.addf %348, %347 : vector<2x1x128xf32>
    %350 = arith.divf %348, %349 : vector<2x1x128xf32>
    %351 = math.tanh %345 : vector<2x1x128xf32>
    %352 = vector.extract_strided_slice %350 {offsets = [0, 0, 0], sizes = [2, 1, 32], strides = [1, 1, 1]} : vector<2x1x128xf32> to vector<2x1x32xf32>
    %353 = vector.extract_strided_slice %350 {offsets = [0, 0, 32], sizes = [2, 1, 32], strides = [1, 1, 1]} : vector<2x1x128xf32> to vector<2x1x32xf32>
    %354 = vector.extract_strided_slice %351 {offsets = [0, 0, 64], sizes = [2, 1, 32], strides = [1, 1, 1]} : vector<2x1x128xf32> to vector<2x1x32xf32>
    %355 = vector.extract_strided_slice %350 {offsets = [0, 0, 96], sizes = [2, 1, 32], strides = [1, 1, 1]} : vector<2x1x128xf32> to vector<2x1x32xf32>
    %356 = arith.mulf %353, %310 : vector<2x1x32xf32>
    %357 = arith.mulf %352, %354 : vector<2x1x32xf32>
    %358 = arith.addf %356, %357 : vector<2x1x32xf32>
    %359 = math.tanh %358 : vector<2x1x32xf32>
    %360 = arith.mulf %355, %359 : vector<2x1x32xf32>
    %361 = vector.extract_strided_slice %360 {offsets = [0, 0, 0], sizes = [1, 1, 32], strides = [1, 1, 1]} : vector<2x1x32xf32> to vector<1x1x32xf32>
    %362 = vector.shape_cast %361 : vector<1x1x32xf32> to vector<1x32xf32>
    %363 = arith.index_cast %c7_i32_87 : i32 to index
    %c0_94 = arith.constant 0 : index
    %364 = vector.load %arg6[%363, %c0_94] : memref<8x64xf32, #tpu.memory_space<vmem>>, vector<1x32xf32>
    tpu.vector_store %arg6[%363, %c0_94], %362 {strides = array<i32>} : memref<8x64xf32, #tpu.memory_space<vmem>>, vector<1x32xf32>,
    %365 = vector.extract_strided_slice %360 {offsets = [1, 0, 0], sizes = [1, 1, 32], strides = [1, 1, 1]} : vector<2x1x32xf32> to vector<1x1x32xf32>
    %366 = vector.shape_cast %365 : vector<1x1x32xf32> to vector<1x32xf32>
    %c7_i32_95 = arith.constant 7 : i32
    %367 = arith.subi %c7_i32_95, %c7_i32_87 : i32
    %368 = arith.index_cast %367 : i32 to index
    %c32_96 = arith.constant 32 : index
    %369 = vector.load %arg6[%368, %c32_96] : memref<8x64xf32, #tpu.memory_space<vmem>>, vector<1x32xf32>
    tpu.vector_store %arg6[%368, %c32_96], %366 {strides = array<i32>} : memref<8x64xf32, #tpu.memory_space<vmem>>, vector<1x32xf32>,
    "tpu.trace_start"() <{level = 10 : i32, message = "dbh,dho->dbo"}> : () -> ()
    %cst_97 = arith.constant dense<0.000000e+00> : vector<2x1x128xf32>
    %370 = tpu.matmul %360, %1, %cst_97 {dimension_numbers = #tpu.dot_dimension_numbers<[2], [1], [1], [2], [0, 0, 0, 1, 1, 2], [0], [0]>, precision = #tpu.contract_precision<fp32>} : vector<2x1x32xf32>, vector<2x32x128xf32>, vector<2x1x128xf32> -> vector<2x1x128xf32>
    "tpu.trace_stop"() : () -> ()
    %371 = vector.shape_cast %358 : vector<2x1x32xf32> to vector<2x32xf32>
    %cst_98 = arith.constant dense<0.000000e+00> : vector<2x16xf32>
    %372 = tpu.matmul %371, %3, %cst_98 {dimension_numbers = #tpu.dot_dimension_numbers<[1], [0], [0], [1], [0, 0, 1, 1], [], []>, precision = #tpu.contract_precision<fp32>} : vector<2x32xf32>, vector<32x16xf32>, vector<2x16xf32> -> vector<2x16xf32>
    %373 = vector.shape_cast %372 : vector<2x16xf32> to vector<2x1x16xf32>
    %c7_i32_99 = arith.constant 7 : i32
    return
  }
}

</mosaic_0001>

<bundles_post_ra>
// kernel: tpu_custom_call.1
= control target key start
LH: loop header
LB: loop body
LE: loop exit
PB: predicated region body
PF: predicated region fallthrough
CT: control target
= control target key end

     0   :  { %11 = vsyncpa [#allocation3], 0  ;;  %s24383_s0 = inlined_call_operand.vmem [shape: f32[8,16], index: 0, kind: input, shape index: {}]   ;;  %s24384_s1 = inlined_call_operand.vmem [shape: f32[2,16,128], index: 1, kind: input, shape index: {}]   ;;  %s24385_s2 = inlined_call_operand.hbm [shape: f32[2,32,128], index: 2, kind: input, shape index: {}]   ;;  %s24386_s3 = inlined_call_operand.vmem [shape: f32[2,1,128], index: 3, kind: input, shape index: {}]   ;;  %s24387_s4 = inlined_call_operand.vmem [shape: f32[32,16], index: 4, kind: input, shape index: {}]   ;;  %s24388_s5 = inlined_call_operand.vmem [shape: f32[1,16], index: 5, kind: input, shape index: {}]   ;;  %s24389_s6 = inlined_call_operand.hbm [shape: f32[8,64], index: 6, kind: output, shape index: {}]  }
   0x1   :  { %12 = vsyncpa [#allocation4], 0  ;;  %s21718_s21 = smov [#allocation2]  }
   0x2   :  { %s22_s22 = sshll.u32 %s21718_s21, 4  ;;  %s23_s22 = int_to_ptr.vmem [resolvable:$true] %s22_s22 }
   0x3   :  { %s21682_s23 = scalar_lea.vmem %s23_s22, 1024  ;;  %p21687_p1 = scmp.lt.s32.totalorder %s23_s22, %s23_s22 }
   0x4   :  { %p21683_p0 = scmp.ne.s32.totalorder %s23_s22, %s21682_s23  ;;  %p21688_p2 = scmp.lt.s32.totalorder %s21682_s23, %s21682_s23 }
   0x6   :  { %p21689_p3 = por %p21688_p2, %p21687_p1 }
   0x8   :  { %p21690_p4 = pnand %p21689_p3, %p21683_p0 }
   0xa   :  { %21693 = shalt.err (!%p21690_p4)
}
   0xb   :  { %s21719_s24 = smov 128   ;;  %s21720_s25 = smov 8  }
   0xc   :  { %28 = dma.hbm_to_vmem [thread:$0]  %s24385_s2, 1024, %s23_s22, [#allocation3], %s21719_s24, %s21719_s24, %s21720_s25  }
   0xd   :  { %21714 = dma.done.wait [#allocation3], 1024  }
   0xe   :  { %21715 = vsyncadd [#allocation3], 4294966272  ;;  %v24435_v0 = vmov 0.0   ;;  %vm21722_vm0 = vmmov 0   ;;  %vm59_vm1 = vcmask 130048   ;;  %v39_v1 = vld [vmem:[%s24384_s1 + $0x8] sm:$0xff] }
   0xf   :  { %19439 = vmatprep.subr.mxu0 %v24435_v0  ;;  %19446 = vmatprep.subr.mxu1 %v24435_v0  ;;  %v38_v2 = vld [vmem:[%s24384_s1] sm:$0xff]  ;;  %v21781_v4 = vand.u32 4294901760, %v39_v1  ;;  %v41_v14 = vld [vmem:[%s24384_s1 + $0x18] sm:$0xff]  ;;  %v40_v19 = vld [vmem:[%s24384_s1 + $0x10] sm:$0xff]  ;;  %s21723_s18 = smov 64   ;;  %s21724_s19 = smov 32  }
  0x10   :  { %19443 = vmatprep.mubr.msk.f32.mxu0 %vm21722_vm0, %v24435_v0  ;;  %19450 = vmatprep.mubr.msk.f32.mxu1 %vm21722_vm0, %v24435_v0  ;;  %v57_v3 = vld [vmem:[%s24383_s0] sm:$0x1]  ;;  %v21783_v5 = vand.u32 4294901760, %v38_v2  ;;  %v58_v10 = vld [vmem:[%s24383_s0 + $0x7] sm:$0x1]  ;;  %v21819_v21 = vand.u32 4294901760, %v41_v14 }
  0x11   :  { %v61_v6 = vsel %vm59_vm1, %v57_v3, 0  ;;  %19440 = vmatpush3.msra.mxu0 %v21781_v4  ;;  %v21790_v8 = vsub.f32 %v39_v1, %v21781_v4  ;;  %v523_v16 = vsel %vm59_vm1, %v58_v10, 0  ;;  %v21827_v26 = vand.u32 4294901760, %v40_v19  ;;  %v50_v39 = vld [vmem:[%s24386_s3] sm:$0x1]  ;;  %s21725_s20 = smov 96  }
  0x12   :  { %v21786_v7 = vand.u32 4294901760, %v61_v6  ;;  %v21793_v9 = vsub.f32 %v38_v2, %v21783_v5  ;;  %19441 = vmatprep.subr.mxu0 %v24435_v0  ;;  %v21825_v24 = vand.u32 4294901760, %v523_v16  ;;  %v21832_v27 = vsub.f32 %v41_v14, %v21819_v21  ;;  %v51_v57 = vld [vmem:[%s24386_s3 + $0x1] sm:$0x1] }
  0x13   :  { %19442 = vmatpush3.msra.mxu0 %v21783_v5  ;;  %v21802_v12 = vand.u32 4294901760, %v21790_v8  ;;  %v21840_v29 = vsub.f32 %v40_v19, %v21827_v26  ;;  %vm2024_vm2 = vcmask 1041409   ;;  %vm1036_vm3 = vcmask 253952  }
  0x14   :  { %v131_v11 = vsub.f32 %v61_v6, %v21786_v7  ;;  %v21805_v13 = vand.u32 4294901760, %v21793_v9  ;;  %19453 = vmatprep.subr.mxu0 %v24435_v0  ;;  %v593_v28 = vsub.f32 %v523_v16, %v21825_v24  ;;  %v21848_v30 = vand.u32 4294901760, %v21832_v27 }
  0x15   :  { %v172_v17 = vsub.f32 %v21790_v8, %v21802_v12  ;;  %v21854_v32 = vand.u32 4294901760, %v21840_v29  ;;  %vm1044_vm4 = vcmask 261120   ;;  %vm1042_vm5 = vcmask 516352  }
  0x16   :  { %v132_v15 = vand.u32 4294901760, %v131_v11  ;;  %v179_v18 = vsub.f32 %v21793_v9, %v21805_v13  ;;  %v594_v31 = vand.u32 4294901760, %v593_v28  ;;  %v634_v33 = vsub.f32 %v21832_v27, %v21848_v30 }
  0x17   :  { %v21821_v22 = vand.u32 4294901760, %v172_v17  ;;  %24498 = vst [vmem:[#allocation10_spill] sm:$0xff] %v21854_v32  ;;  %v641_v35 = vsub.f32 %v21840_v29, %v21854_v32 }
  0x18   :  { %v133_v20 = vsub.f32 %v131_v11, %v132_v15  ;;  %v21823_v23 = vand.u32 4294901760, %v179_v18  ;;  %v595_v34 = vsub.f32 %v593_v28, %v594_v31  ;;  %v21873_v36 = vand.u32 4294901760, %v634_v33 }
  0x19   :  { %24496 = vst [vmem:[#allocation8_spill] sm:$0xff] %v21821_v22  ;;  %19447 = vmatpush3.msra.mxu1 %v21821_v22  ;;  %v21880_v38 = vand.u32 4294901760, %v641_v35 }
  0x1a   :  { %24497 = vst [vmem:[#allocation9_spill] sm:$0xff] %v21823_v23  ;;  %v134_v25 = vand.u32 4294901760, %v133_v20  ;;  %19448 = vmatprep.subr.mxu1 %v24435_v0  ;;  %v596_v37 = vand.u32 4294901760, %v595_v34 }
  0x1b   :  { %19449 = vmatpush3.msra.mxu1 %v21823_v23 }
  0x1c   :  { %19444 = vmatmul.mubr.f32.vlgmr.msra.gmra.mxu0 %v134_v25  ;;  %19451 = vmatmul.mubr.f32.vlgmr.msra.gmra.mxu1 %v21786_v7 }
  0x1d   :  { %19454 = vmatpush3.msra.mxu0 %v21790_v8  ;;  %19460 = vmatprep.subr.mxu1 %v24435_v0 }
  0x1e   :  { %19455 = vmatprep.subr.mxu0 %v24435_v0  ;;  %19457 = vmatprep.mubr.msk.f32.mxu0 %vm21722_vm0, %v24435_v0 }
  0x1f   :  { %19456 = vmatpush3.msra.mxu0 %v21793_v9  ;;  %19461 = vmatpush3.msra.mxu1 %v21781_v4 }
  0x20   :  { %19458 = vmatmul.mubr.f32.vlgmr.msra.gmra.mxu0 %v131_v11  ;;  %19462 = vmatprep.subr.mxu1 %v24435_v0 }
  0x21   :  { %19467 = vmatprep.subr.mxu0 %v24435_v0  ;;  %19463 = vmatpush3.msra.mxu1 %v21783_v5 }
  0x22   :  { %19464 = vmatprep.mubr.msk.f32.mxu1 %vm21722_vm0, %v24435_v0  ;;  %19468 = vmatpush3.msra.mxu0 %v21802_v12 }
  0x23   :  { %19465 = vmatmul.mubr.f32.vlgmr.msra.gmra.mxu1 %v132_v15  ;;  %19469 = vmatprep.subr.mxu0 %v24435_v0 }
  0x24   :  { %19474 = vmatprep.subr.mxu1 %v24435_v0  ;;  %19470 = vmatpush3.msra.mxu0 %v21805_v13 }
  0x25   :  { %19471 = vmatprep.mubr.msk.f32.mxu0 %vm21722_vm0, %v24435_v0  ;;  %19475 = vmatpush3.msra.mxu1 %v21781_v4 }
  0x26   :  { %19472 = vmatmul.mubr.f32.vlgmr.msra.gmra.mxu0 %v21786_v7  ;;  %19476 = vmatprep.subr.mxu1 %v24435_v0 }
  0x27   :  { %19481 = vmatprep.subr.mxu0 %v24435_v0  ;;  %19477 = vmatpush3.msra.mxu1 %v21783_v5 }
  0x28   :  { %19478 = vmatprep.mubr.msk.f32.mxu1 %vm21722_vm0, %v24435_v0  ;;  %19482 = vmatpush3.msra.mxu0 %v21819_v21 }
  0x29   :  { %19479 = vmatmul.mubr.f32.vlgmr.msra.gmra.mxu1 %v21786_v7  ;;  %19483 = vmatprep.subr.mxu0 %v24435_v0 }
  0x2a   :  { %19488 = vmatprep.subr.mxu1 %v24435_v0  ;;  %19484 = vmatpush3.msra.mxu0 %v21827_v26 }
  0x2b   :  { %19485 = vmatprep.mubr.msk.f32.mxu0 %vm21722_vm0, %v24435_v0  ;;  %19489 = vmatpush3.msra.mxu1 %v21873_v36 }
  0x2c   :  { %19486 = vmatmul.mubr.f32.vlgmr.msra.gmra.mxu0 %v596_v37  ;;  %19490 = vmatprep.subr.mxu1 %v24435_v0 }
  0x2d   :  { %19495 = vmatprep.subr.mxu0 %v24435_v0  ;;  %19491 = vmatpush3.msra.mxu1 %v21880_v38 }
  0x2e   :  { %19492 = vmatprep.mubr.msk.f32.mxu1 %vm21722_vm0, %v24435_v0  ;;  %19496 = vmatpush3.msra.mxu0 %v21832_v27 }
  0x2f   :  { %19493 = vmatmul.mubr.f32.vlgmr.msra.gmra.mxu1 %v21825_v24  ;;  %19497 = vmatprep.subr.mxu0 %v24435_v0 }
  0x30   :  { %19502 = vmatprep.subr.mxu1 %v24435_v0  ;;  %19498 = vmatpush3.msra.mxu0 %v21840_v29 }
  0x31   :  { %19499 = vmatprep.mubr.msk.f32.mxu0 %vm21722_vm0, %v24435_v0  ;;  %19503 = vmatpush3.msra.mxu1 %v21819_v21 }
  0x32   :  { %19500 = vmatmul.mubr.f32.vlgmr.msra.gmra.mxu0 %v593_v28  ;;  %19504 = vmatprep.subr.mxu1 %v24435_v0 }
  0x33   :  { %19509 = vmatprep.subr.mxu0 %v24435_v0  ;;  %19505 = vmatpush3.msra.mxu1 %v21827_v26 }
  0x34   :  { %19506 = vmatprep.mubr.msk.f32.mxu1 %vm21722_vm0, %v24435_v0  ;;  %19510 = vmatpush3.msra.mxu0 %v21848_v30 }
  0x35   :  { %19507 = vmatmul.mubr.f32.vlgmr.msra.gmra.mxu1 %v594_v31  ;;  %19511 = vmatprep.subr.mxu0 %v24435_v0 }
  0x36   :  { %19516 = vmatprep.subr.mxu1 %v24435_v0  ;;  %19512 = vmatpush3.msra.mxu0 %v21854_v32 }
  0x37   :  { %19513 = vmatprep.mubr.msk.f32.mxu0 %vm21722_vm0, %v24435_v0  ;;  %19517 = vmatpush3.msra.mxu1 %v21819_v21 }
  0x38   :  { %19514 = vmatmul.mubr.f32.vlgmr.msra.gmra.mxu0 %v21825_v24  ;;  %19518 = vmatprep.subr.mxu1 %v24435_v0 }
  0x39   :  { %19519 = vmatpush3.msra.mxu1 %v21827_v26  ;;  %19520 = vmatprep.mubr.msk.f32.mxu1 %vm21722_vm0, %v24435_v0 }
  0x3a   :  { %19521 = vmatmul.mubr.f32.vlgmr.msra.gmra.mxu1 %v21825_v24  ;;  %19534 = vmatprep.subr.mxu1 %v24435_v0 }
  0x3b   :  { %19523 = vmatprep.subr.mxu0 %v24435_v0  ;;  %19542 = vmatprep.mubr.msk.f32.mxu1 %vm21722_vm0, %v24435_v0 }
  0x3c   :  { %19531 = vmatprep.mubr.msk.f32.mxu0 %vm21722_vm0, %v24435_v0 }
  0xdc   :  { %v136_v40 = vpop.f32.mrf.mxu0  ;;  %v217_v43 = vpop.f32.mrf.mxu1 }
  0xdd   :  { %v137_v41 = vadd.f32 %v136_v40, %v50_v39 }
  0xde   :  { %v19445_v42 = vpop.f32.mrf.mxu0  ;;  %v19452_v45 = vpop.f32.mrf.mxu1 }
  0xdf   :  { %v218_v44 = vadd.f32 %v217_v43, %v137_v41 }
  0xe0   :  { %v293_v46 = vpop.f32.mrf.mxu0 }
  0xe1   :  { %v294_v47 = vadd.f32 %v293_v46, %v218_v44 }
  0xe2   :  { %v19459_v48 = vpop.f32.mrf.mxu0 }
  0xe3   :  { %v368_v49 = vpop.f32.mrf.mxu1 }
  0xe4   :  { %v369_v50 = vadd.f32 %v368_v49, %v294_v47 }
  0xe5   :  { %v19466_v51 = vpop.f32.mrf.mxu1 }
  0xe6   :  { %v445_v52 = vpop.f32.mrf.mxu0  ;;  %v45_v51 = vld [vmem:[#allocation2 + $0x18] sm:$0xff] }
  0xe7   :  { %v446_v53 = vadd.f32 %v445_v52, %v369_v50  ;;  %v44_v52 = vld [vmem:[#allocation2 + $0x10] sm:$0xff] }
  0xe8   :  { %v19473_v54 = vpop.f32.mrf.mxu0 }
  0xe9   :  { %v518_v55 = vpop.f32.mrf.mxu1  ;;  %v21949_v54 = vand.u32 4294901760, %v45_v51 }
  0xea   :  { %v519_v56 = vadd.f32 %v518_v55, %v446_v53  ;;  %v43_v53 = vld [vmem:[#allocation2 + $0x8] sm:$0xff]  ;;  %v21951_v55 = vand.u32 4294901760, %v44_v52 }
  0xeb   :  { %v19480_v58 = vpop.f32.mrf.mxu1  ;;  %19524 = vmatpush3.msra.mxu0 %v21949_v54 }
  0xec   :  { %21507 = vtanh.f32 %v519_v56  ;;  %v598_v59 = vpop.f32.mrf.mxu0  ;;  %v18505_v25 = vmul.f32 -1.442695, %v519_v56  ;;  %v21953_v56 = vand.u32 4294901760, %v43_v53  ;;  %v21959_v58 = vsub.f32 %v44_v52, %v21951_v55  ;;  %19525 = vmatprep.subr.mxu0 %v24435_v0 }
  0xed   :  { %v599_v60 = vadd.f32 %v598_v59, %v51_v57  ;;  %v21956_v57 = vsub.f32 %v45_v51, %v21949_v54  ;;  %19526 = vmatpush3.msra.mxu0 %v21951_v55 }
  0xee   :  { %v19487_v61 = vpop.f32.mrf.mxu0  ;;  %v21962_v59 = vsub.f32 %v43_v53, %v21953_v56  ;;  %19527 = vmatprep.subr.mxu0 %v24435_v0 }
  0xef   :  { %v679_v62 = vpop.f32.mrf.mxu1  ;;  %v21970_v61 = vand.u32 4294901760, %v21959_v58  ;;  %19528 = vmatpush3.msra.mxu0 %v21953_v56 }
  0xf0   :  { %v680_v63 = vadd.f32 %v679_v62, %v599_v60  ;;  %v21967_v60 = vand.u32 4294901760, %v21956_v57  ;;  %v21973_v62 = vand.u32 4294901760, %v21962_v59  ;;  %19529 = vmatprep.subr.mxu0 %v24435_v0 }
  0xf1   :  { %v19494_v1 = vpop.f32.mrf.mxu1 }
  0xf2   :  { %v755_v2 = vpop.f32.mrf.mxu0  ;;  %v1161_v1 = vsub.f32 %v21959_v58, %v21970_v61 }
  0xf3   :  { %v756_v3 = vadd.f32 %v755_v2, %v680_v63  ;;  %v1154_v63 = vsub.f32 %v21956_v57, %v21967_v60  ;;  %v1168_v2 = vsub.f32 %v21962_v59, %v21973_v62 }
  0xf4   :  { %v19501_v6 = vpop.f32.mrf.mxu0 }
  0xf5   :  { %v830_v7 = vpop.f32.mrf.mxu1  ;;  %v21987_v6 = vand.u32 4294901760, %v1161_v1 }
  0xf6   :  { %v831_v10 = vadd.f32 %v830_v7, %v756_v3  ;;  %v21985_v3 = vand.u32 4294901760, %v1154_v63 }
  0xf7   :  { %v19508_v11 = vpop.f32.mrf.mxu1  ;;  %24499 = vst [vmem:[#allocation11_spill] sm:$0xff] %v21987_v6 }
  0xf8   :  { %v907_v14 = vpop.f32.mrf.mxu0  ;;  %19535 = vmatpush3.msra.mxu1 %v21985_v3  ;;  %v42_v11 = vld [vmem:[#allocation2] sm:$0xff] }
  0xf9   :  { %v21508_v15 = vpop.eup %21507  ;;  %v908_v16 = vadd.f32 %v907_v14, %v831_v10  ;;  %v21991_v10 = vand.u32 4294901760, %v1168_v2  ;;  %19536 = vmatprep.subr.mxu1 %v24435_v0  ;;  %v21998_v14 = vand.u32 4294901760, %v42_v11 }
  0xfa   :  { %v980_v17 = vpop.f32.mrf.mxu1  ;;  %1002 = vrot.lane.b32.xlu0 %v21508_v15, %s21723_s18  ;;  %v19515_v18 = vpop.f32.mrf.mxu0  ;;  %19537 = vmatpush3.msra.mxu1 %v21987_v6 }
  0xfb   :  { %v981_v19 = vadd.f32 %v980_v17, %v908_v16  ;;  %24500 = vst [vmem:[#allocation12_spill] sm:$0xff] %v21991_v10  ;;  %19538 = vmatprep.subr.mxu1 %v24435_v0  ;;  %v22001_v15 = vsub.f32 %v42_v11, %v21998_v14  ;;  %19530 = vmatpush3.msra.mxu0 %v21998_v14 }
  0xfc   :  { %v19522_v20 = vpop.f32.mrf.mxu1  ;;  %19539 = vmatpush3.msra.mxu1 %v21991_v10  ;;  %19545 = vmatprep.subr.mxu0 %v24435_v0 }
  0xfd   :  { %21509 = vtanh.f32 %v981_v19  ;;  %v18506_v31 = vmul.f32 -1.442695, %v981_v19  ;;  %19540 = vmatprep.subr.mxu1 %v24435_v0  ;;  %v22006_v16 = vand.u32 4294901760, %v22001_v15 }
  0xfe   :  { %21511 = vpow2.f32 %v18505_v25 }
  0xff   :  { %21513 = vpow2.f32 %v18506_v31  ;;  %24501 = vst [vmem:[#allocation13_spill] sm:$0xff] %v22006_v16  ;;  %v1175_v17 = vsub.f32 %v22001_v15, %v22006_v16 }
 0x101   :  { %v22010_v18 = vand.u32 4294901760, %v1175_v17 }
 0x103   :  { %24502 = vst [vmem:[#allocation14_spill] sm:$0xff] %v22010_v18  ;;  %19541 = vmatpush3.msra.mxu1 %v22010_v18 }
 0x104   :  { %19556 = vmatprep.subr.mxu1 %v24435_v0 }
 0x10a   :  { %v21510_v24 = vpop.eup %21509 }
 0x10b   :  { %1004 = vrot.lane.b32.xlu0 %v21510_v24, %s21723_s18  ;;  %v21512_v28 = vpop.eup %21511 }
 0x10c   :  { %v990_v33 = vadd.f32 1.0, %v21512_v28  ;;  %v21514_v34 = vpop.eup %21513 }
 0x10d   :  { %v991_v37 = vadd.f32 1.0, %v21514_v34 }
 0x10e   :  { %21515 = vrcp.f32 %v990_v33 }
 0x10f   :  { %21517 = vrcp.f32 %v991_v37 }
 0x11b   :  { %v21932_v35 = vpop.eup %21515 }
 0x11c   :  { %v21936_v41 = vpop.eup %21517  ;;  %v998_v44 = vmul.f32 0.0, %v21932_v35 }
 0x11d   :  { %v999_v48 = vmul.f32 0.0, %v21936_v41 }
 0x16c   :  { %v1003_v39 = vpop.permute.xlu0 %1002 }
 0x16d   :  { %v1008_v40 = vmul.f32 %v21932_v35, %v1003_v39  ;;  %v48_v39 = vld [vmem:[#allocation2 + $0x30] sm:$0xff] }
 0x16f   :  { %1012 = vrot.lane.b32.xlu1 %v1008_v40, %s21724_s19 }
 0x17d   :  { %v1005_v42 = vpop.permute.xlu0 %1004 }
 0x17e   :  { %v1009_v43 = vmul.f32 %v21936_v41, %v1005_v42  ;;  %v47_v42 = vld [vmem:[#allocation2 + $0x28] sm:$0xff] }
 0x180   :  { %1014 = vrot.lane.b32.xlu1 %v1009_v43, %s21724_s19 }
 0x1e1   :  { %v1013_v45 = vpop.permute.xlu1 %1012 }
 0x1e2   :  { %v21941_v46 = vadd.f32 %v1013_v45, %v998_v44  ;;  %v22037_v44 = vand.u32 4294901760, %v48_v39  ;;  %v46_v45 = vld [vmem:[#allocation2 + $0x20] sm:$0xff] }
 0x1e3   :  { %v22051_v53 = vand.u32 4294901760, %v46_v45 }
 0x1e4   :  { %21519 = vtanh.f32 %v21941_v46  ;;  %24504 = vst [vmem:[#allocation16_spill] sm:$0xff] %v22037_v44  ;;  %v22049_v52 = vsub.f32 %v48_v39, %v22037_v44 }
 0x1e5   :  { %24508 = vst [vmem:[#allocation20_spill] sm:$0xff] %v22051_v53 }
 0x1e6   :  { %24507 = vst [vmem:[#allocation19_spill] sm:$0xff] %v22049_v52  ;;  %v22065_v2 = vand.u32 4294901760, %v22049_v52 }
 0x1e8   :  { %24511 = vst [vmem:[#allocation23_spill] sm:$0xff] %v22065_v2 }
 0x1f1   :  { %v21520_v47 = vpop.eup %21519 }
 0x1f2   :  { %v1015_v49 = vpop.permute.xlu1 %1014  ;;  %1024 = vrot.lane.b32.xlu0 %v21520_v47, %s21723_s18 }
 0x1f3   :  { %v21946_v50 = vadd.f32 %v1015_v49, %v999_v48  ;;  %v22044_v49 = vand.u32 4294901760, %v47_v42 }
 0x1f5   :  { %21521 = vtanh.f32 %v21946_v50  ;;  %v2023_v24 = vrot.slane %v21946_v50, 7  ;;  %24506 = vst [vmem:[#allocation18_spill] sm:$0xff] %v22044_v49  ;;  %v22059_v1 = vsub.f32 %v47_v42, %v22044_v49 }
 0x1f7   :  { %v2025_v25 = vsel %vm2024_vm2, %v2023_v24, %v21941_v46  ;;  %24510 = vst [vmem:[#allocation22_spill] sm:$0xff] %v22059_v1  ;;  %v22077_v17 = vand.u32 4294901760, %v22059_v1 }
 0x1f9   :  { %24513 = vst [vmem:[#allocation25_spill] sm:$0xff] %v22077_v17 }
 0x202   :  { %v21522_v7 = vpop.eup %21521 }
 0x203   :  { %1026 = vrot.lane.b32.xlu1 %v21522_v7, %s21723_s18  ;;  %v22068_v7 = vsub.f32 %v46_v45, %v22051_v53 }
 0x205   :  { %24512 = vst [vmem:[#allocation24_spill] sm:$0xff] %v22068_v7  ;;  %v22086_v24 = vand.u32 4294901760, %v22068_v7 }
 0x207   :  { %24514 = vst [vmem:[#allocation26_spill] sm:$0xff] %v22086_v24 }
 0x264   :  { %v1025_v19 = vpop.permute.xlu0 %1024 }
 0x265   :  { %v1030_v20 = vmul.f32 %v21932_v35, %v1025_v19  ;;  %v49_v35 = vld [vmem:[#allocation2 + $0x38] sm:$0xff] }
 0x267   :  { %1033 = vrot.lane.b32.xlu0 %v1030_v20, %s21724_s19  ;;  %v1650_v20 = vsub.f32 %v22049_v52, %v22065_v2 }
 0x26b   :  { %2026 = vrot.lane.b32.xlu0 %v2025_v25, %s21725_s20 }
 0x275   :  { %v1027_v28 = vpop.permute.xlu1 %1026 }
 0x276   :  { %v22021_v31 = vmul.f32 %v21936_v41, %v1027_v28  ;;  %v22031_v41 = vand.u32 4294901760, %v49_v35 }
 0x278   :  { %24503 = vst [vmem:[#allocation15_spill] sm:$0xff] %v22021_v31  ;;  %1532 = vrot.lane.b32.xlu1 %v22021_v31, %s21724_s19  ;;  %v22042_v48 = vsub.f32 %v49_v35, %v22031_v41  ;;  %v1664_v35 = vsub.f32 %v22068_v7, %v22086_v24 }
 0x27a   :  { %24505 = vst [vmem:[#allocation17_spill] sm:$0xff] %v22042_v48  ;;  %v22056_v63 = vand.u32 4294901760, %v22042_v48  ;;  %v22118_v42 = vand.u32 4294901760, %v1664_v35 }
 0x27c   :  { %24509 = vst [vmem:[#allocation21_spill] sm:$0xff] %v22056_v63  ;;  %v1643_v11 = vsub.f32 %v22042_v48, %v22056_v63  ;;  %24515 = vst [vmem:[#allocation27_spill] sm:$0xff] %v22118_v42 }
 0x27e   :  { %v22094_v28 = vand.u32 4294901760, %v1643_v11 }
 0x2d9   :  { %v1034_v33 = vpop.permute.xlu0 %1033 }
 0x2da   :  { %1037 = vst.msk [vmem:[#allocation5] sm:$0x1] %vm1036_vm3, %v1034_v33  ;;  %v1045_v34 = vsel %vm1044_vm4, %v1034_v33, 0  ;;  %v1657_v33 = vsub.f32 %v22059_v1, %v22077_v17 }
 0x2db   :  { %v22027_v37 = vand.u32 4294901760, %v1045_v34 }
 0x2dd   :  { %v1117_v40 = vsub.f32 %v1045_v34, %v22027_v37  ;;  %19543 = vmatmul.mubr.f32.vlgmr.msra.gmra.mxu1 %v22027_v37  ;;  %v22102_v34 = vand.u32 4294901760, %v1650_v20 }
 0x2de   :  { %19557 = vmatpush3.msra.mxu1 %v21949_v54  ;;  %19564 = vmatprep.mubr.msk.f32.mxu1 %vm21722_vm0, %v24435_v0 }
 0x2df   :  { %v1118_v43 = vand.u32 4294901760, %v1117_v40  ;;  %19558 = vmatprep.subr.mxu1 %v24435_v0 }
 0x2e0   :  { %19559 = vmatpush3.msra.mxu1 %v21951_v55 }
 0x2e1   :  { %v1119_v47 = vsub.f32 %v1117_v40, %v1118_v43  ;;  %19560 = vmatprep.subr.mxu1 %v24435_v0 }
 0x2e2   :  { %19561 = vmatpush3.msra.mxu1 %v21953_v56 }
 0x2e3   :  { %19562 = vmatprep.subr.mxu1 %v24435_v0  ;;  %v1120_v51 = vand.u32 4294901760, %v1119_v47  ;;  %v55_v47 = vld [vmem:[%s24387_s4 + $0x18] sm:$0xff] }
 0x2e4   :  { %19563 = vmatpush3.msra.mxu1 %v21998_v14 }
 0x2e5   :  { %19565 = vmatmul.mubr.f32.vlgmr.msra.gmra.mxu1 %v1118_v43  ;;  %19578 = vmatprep.subr.mxu1 %v24435_v0 }
 0x2e6   :  { %19532 = vmatmul.mubr.f32.vlgmr.msra.gmra.mxu0 %v1120_v51  ;;  %19579 = vmatpush3.msra.mxu1 %v21949_v54  ;;  %v54_v51 = vld [vmem:[%s24387_s4 + $0x10] sm:$0xff] }
 0x2e7   :  { %19546 = vmatpush3.msra.mxu0 %v21956_v57  ;;  %19580 = vmatprep.subr.mxu1 %v24435_v0  ;;  %v22158_v20 = vand.u32 4294901760, %v54_v51 }
 0x2e8   :  { %19547 = vmatprep.subr.mxu0 %v24435_v0  ;;  %19581 = vmatpush3.msra.mxu1 %v21951_v55 }
 0x2e9   :  { %19548 = vmatpush3.msra.mxu0 %v21959_v58  ;;  %19582 = vmatprep.subr.mxu1 %v24435_v0  ;;  %24517 = vst [vmem:[#allocation29_spill] sm:$0xff] %v22158_v20 }
 0x2ea   :  { %v1533_v19 = vpop.permute.xlu1 %1532  ;;  %19549 = vmatprep.subr.mxu0 %v24435_v0  ;;  %19583 = vmatpush3.msra.mxu1 %v21953_v56 }
 0x2eb   :  { %19550 = vmatpush3.msra.mxu0 %v21962_v59  ;;  %19584 = vmatprep.subr.mxu1 %v24435_v0  ;;  %v1534_v25 = vsel %vm1044_vm4, %v1533_v19, 0  ;;  %v53_v19 = vld [vmem:[%s24387_s4 + $0x8] sm:$0xff] }
 0x2ec   :  { %19551 = vmatprep.subr.mxu0 %v24435_v0  ;;  %19553 = vmatprep.mubr.msk.f32.mxu0 %vm21722_vm0, %v24435_v0  ;;  %v22106_v39 = vand.u32 4294901760, %v1534_v25  ;;  %v22170_v35 = vand.u32 4294901760, %v53_v19 }
 0x2ed   :  { %19552 = vmatpush3.msra.mxu0 %v22001_v15  ;;  %19585 = vmatpush3.msra.mxu1 %v21998_v14 }
 0x2ee   :  { %19586 = vmatprep.mubr.msk.f32.mxu1 %vm21722_vm0, %v24435_v0  ;;  %19554 = vmatmul.mubr.f32.vlgmr.msra.gmra.mxu0 %v1117_v40  ;;  %v22112_v40 = vand.u32 4294901760, %v1657_v33  ;;  %v22121_v43 = vsub.f32 %v1534_v25, %v22106_v39  ;;  %v52_v25 = vld [vmem:[%s24387_s4] sm:$0xff]  ;;  %24519 = vst [vmem:[#allocation31_spill] sm:$0xff] %v22170_v35 }
 0x2ef   :  { %19567 = vmatprep.subr.mxu0 %v24435_v0  ;;  %19587 = vmatmul.mubr.f32.vlgmr.msra.gmra.mxu1 %v22027_v37 }
 0x2f0   :  { %19600 = vmatprep.subr.mxu1 %v24435_v0  ;;  %19568 = vmatpush3.msra.mxu0 %v21967_v60  ;;  %v1607_v45 = vand.u32 4294901760, %v22121_v43 }
 0x2f1   :  { %19601 = vmatpush3.msra.mxu1 %v22094_v28  ;;  %19569 = vmatprep.subr.mxu0 %v24435_v0 }
 0x2f2   :  { %19602 = vmatprep.subr.mxu1 %v24435_v0  ;;  %19570 = vmatpush3.msra.mxu0 %v21970_v61  ;;  %v1608_v11 = vsub.f32 %v22121_v43, %v1607_v45 }
 0x2f3   :  { %19603 = vmatpush3.msra.mxu1 %v22102_v34  ;;  %19571 = vmatprep.subr.mxu0 %v24435_v0 }
 0x2f4   :  { %19604 = vmatprep.subr.mxu1 %v24435_v0  ;;  %19572 = vmatpush3.msra.mxu0 %v21973_v62  ;;  %v1609_v31 = vand.u32 4294901760, %v1608_v11  ;;  %v22189_v11 = vsub.f32 %v53_v19, %v22170_v35 }
 0x2f5   :  { %19605 = vmatpush3.msra.mxu1 %v22112_v40  ;;  %19573 = vmatprep.subr.mxu0 %v24435_v0 }
 0x2f6   :  { %19606 = vmatprep.subr.mxu1 %v24435_v0  ;;  %19574 = vmatpush3.msra.mxu0 %v22006_v16  ;;  %v22180_v16 = vand.u32 4294901760, %v52_v25  ;;  %24523 = vst [vmem:[#allocation35_spill] sm:$0xff] %v22189_v11  ;;  %v22208_v19 = vand.u32 4294901760, %v22189_v11 }
 0x2f7   :  { %19575 = vmatprep.mubr.msk.f32.mxu0 %vm21722_vm0, %v24435_v0  ;;  %19607 = vmatpush3.msra.mxu1 %v22118_v42  ;;  %v22178_v42 = vsub.f32 %v54_v51, %v22158_v20 }
 0x2f8   :  { %19608 = vmatprep.mubr.msk.f32.mxu1 %vm21722_vm0, %v24435_v0  ;;  %19576 = vmatmul.mubr.f32.vlgmr.msra.gmra.mxu0 %v22027_v37  ;;  %v22148_v37 = vand.u32 4294901760, %v55_v47  ;;  %24521 = vst [vmem:[#allocation33_spill] sm:$0xff] %v22180_v16  ;;  %24526 = vst [vmem:[#allocation38_spill] sm:$0xff] %v22208_v19 }
 0x2f9   :  { %19589 = vmatprep.subr.mxu0 %v24435_v0  ;;  %19609 = vmatmul.mubr.f32.vlgmr.msra.gmra.mxu1 %v22106_v39  ;;  %24520 = vst [vmem:[#allocation32_spill] sm:$0xff] %v22178_v42  ;;  %v22196_v51 = vand.u32 4294901760, %v22178_v42 }
 0x2fa   :  { %19622 = vmatprep.subr.mxu1 %v24435_v0  ;;  %19590 = vmatpush3.msra.mxu0 %v22031_v41  ;;  %24516 = vst [vmem:[#allocation28_spill] sm:$0xff] %v22148_v37  ;;  %v22168_v33 = vsub.f32 %v55_v47, %v22148_v37 }
 0x2fb   :  { %19623 = vmatpush3.msra.mxu1 %v22031_v41  ;;  %19591 = vmatprep.subr.mxu0 %v24435_v0  ;;  %24524 = vst [vmem:[#allocation36_spill] sm:$0xff] %v22196_v51 }
 0x2fc   :  { %19624 = vmatprep.subr.mxu1 %v24435_v0  ;;  %19592 = vmatpush3.msra.mxu0 %v22037_v44  ;;  %24518 = vst [vmem:[#allocation30_spill] sm:$0xff] %v22168_v33  ;;  %v22186_v47 = vand.u32 4294901760, %v22168_v33 }
 0x2fd   :  { %19625 = vmatpush3.msra.mxu1 %v22037_v44  ;;  %19593 = vmatprep.subr.mxu0 %v24435_v0 }
 0x2fe   :  { %19626 = vmatprep.subr.mxu1 %v24435_v0  ;;  %19594 = vmatpush3.msra.mxu0 %v22044_v49  ;;  %24522 = vst [vmem:[#allocation34_spill] sm:$0xff] %v22186_v47 }
 0x2ff   :  { %19627 = vmatpush3.msra.mxu1 %v22044_v49  ;;  %19595 = vmatprep.subr.mxu0 %v24435_v0 }
 0x300   :  { %19628 = vmatprep.subr.mxu1 %v24435_v0  ;;  %19596 = vmatpush3.msra.mxu0 %v22051_v53 }
 0x301   :  { %19597 = vmatprep.mubr.msk.f32.mxu0 %vm21722_vm0, %v24435_v0  ;;  %19629 = vmatpush3.msra.mxu1 %v22051_v53 }
 0x302   :  { %19630 = vmatprep.mubr.msk.f32.mxu1 %vm21722_vm0, %v24435_v0  ;;  %19598 = vmatmul.mubr.f32.vlgmr.msra.gmra.mxu0 %v1609_v31  ;;  %v22199_v31 = vsub.f32 %v52_v25, %v22180_v16  ;;  %v2144_v25 = vsub.f32 %v22178_v42, %v22196_v51 }
 0x303   :  { %19611 = vmatprep.subr.mxu0 %v24435_v0  ;;  %19631 = vmatmul.mubr.f32.vlgmr.msra.gmra.mxu1 %v1607_v45  ;;  %v2137_v45 = vsub.f32 %v22168_v33, %v22186_v47 }
 0x304   :  { %19644 = vmatprep.subr.mxu1 %v24435_v0  ;;  %19612 = vmatpush3.msra.mxu0 %v22042_v48  ;;  %24525 = vst [vmem:[#allocation37_spill] sm:$0xff] %v22199_v31  ;;  %v2027_v48 = vpop.permute.xlu0 %2026 }
 0x305   :  { %19645 = vmatpush3.msra.mxu1 %v22031_v41  ;;  %19613 = vmatprep.subr.mxu0 %v24435_v0 }
 0x306   :  { %19646 = vmatprep.subr.mxu1 %v24435_v0  ;;  %19614 = vmatpush3.msra.mxu0 %v22049_v52  ;;  %v22217_v52 = vand.u32 4294901760, %v22199_v31 }
 0x307   :  { %19647 = vmatpush3.msra.mxu1 %v22037_v44  ;;  %19615 = vmatprep.subr.mxu0 %v24435_v0  ;;  %v2028_v44 = vsel %vm1044_vm4, %v2027_v48, 0  ;;  %v22234_v48 = vand.u32 4294901760, %v2144_v25 }
 0x308   :  { %19648 = vmatprep.subr.mxu1 %v24435_v0  ;;  %19616 = vmatpush3.msra.mxu0 %v22059_v1  ;;  %24527 = vst [vmem:[#allocation39_spill] sm:$0xff] %v22217_v52  ;;  %v22225_v1 = vand.u32 4294901760, %v2137_v45 }
 0x309   :  { %19649 = vmatpush3.msra.mxu1 %v22044_v49  ;;  %19617 = vmatprep.subr.mxu0 %v24435_v0  ;;  %v2151_v49 = vsub.f32 %v22189_v11, %v22208_v19  ;;  %24529 = vst [vmem:[#allocation41_spill] sm:$0xff] %v22234_v48 }
 0x30a   :  { %19650 = vmatprep.subr.mxu1 %v24435_v0  ;;  %19618 = vmatpush3.msra.mxu0 %v22068_v7  ;;  %24528 = vst [vmem:[#allocation40_spill] sm:$0xff] %v22225_v1  ;;  %v2158_v7 = vsub.f32 %v22199_v31, %v22217_v52 }
 0x30b   :  { %19619 = vmatprep.mubr.msk.f32.mxu0 %vm21722_vm0, %v24435_v0  ;;  %19651 = vmatpush3.msra.mxu1 %v22051_v53  ;;  %v22238_v53 = vand.u32 4294901760, %v2028_v44 }
 0x30c   :  { %19652 = vmatprep.mubr.msk.f32.mxu1 %vm21722_vm0, %v24435_v0  ;;  %19620 = vmatmul.mubr.f32.vlgmr.msra.gmra.mxu0 %v22121_v43  ;;  %v22244_v43 = vand.u32 4294901760, %v2151_v49  ;;  %v22250_v45 = vand.u32 4294901760, %v2158_v7 }
 0x30d   :  { %19633 = vmatprep.subr.mxu0 %v24435_v0  ;;  %19653 = vmatmul.mubr.f32.vlgmr.msra.gmra.mxu1 %v22106_v39  ;;  %v2100_v25 = vsub.f32 %v2028_v44, %v22238_v53 }
 0x30e   :  { %19666 = vmatprep.subr.mxu1 %v24435_v0  ;;  %19634 = vmatpush3.msra.mxu0 %v22056_v63  ;;  %24530 = vst [vmem:[#allocation42_spill] sm:$0xff] %v22244_v43  ;;  %24531 = vst [vmem:[#allocation43_spill] sm:$0xff] %v22250_v45 }
 0x30f   :  { %19667 = vmatpush3.msra.mxu1 %v22225_v1  ;;  %19635 = vmatprep.subr.mxu0 %v24435_v0  ;;  %v2101_v49 = vand.u32 4294901760, %v2100_v25 }
 0x310   :  { %19668 = vmatprep.subr.mxu1 %v24435_v0  ;;  %19636 = vmatpush3.msra.mxu0 %v22065_v2 }
 0x311   :  { %19669 = vmatpush3.msra.mxu1 %v22234_v48  ;;  %19637 = vmatprep.subr.mxu0 %v24435_v0  ;;  %v2102_v44 = vsub.f32 %v2100_v25, %v2101_v49 }
 0x312   :  { %19670 = vmatprep.subr.mxu1 %v24435_v0  ;;  %19638 = vmatpush3.msra.mxu0 %v22077_v17 }
 0x313   :  { %19671 = vmatpush3.msra.mxu1 %v22244_v43  ;;  %19639 = vmatprep.subr.mxu0 %v24435_v0  ;;  %v2103_v7 = vand.u32 4294901760, %v2102_v44 }
 0x314   :  { %19672 = vmatprep.subr.mxu1 %v24435_v0  ;;  %19640 = vmatpush3.msra.mxu0 %v22086_v24 }
 0x315   :  { %19641 = vmatprep.mubr.msk.f32.mxu0 %vm21722_vm0, %v24435_v0  ;;  %19673 = vmatpush3.msra.mxu1 %v22250_v45 }
 0x316   :  { %19674 = vmatprep.mubr.msk.f32.mxu1 %vm21722_vm0, %v24435_v0  ;;  %19642 = vmatmul.mubr.f32.vlgmr.msra.gmra.mxu0 %v22106_v39 }
 0x317   :  { %19655 = vmatprep.subr.mxu0 %v24435_v0  ;;  %19675 = vmatmul.mubr.f32.vlgmr.msra.gmra.mxu1 %v22238_v53 }
 0x318   :  { %19688 = vmatprep.subr.mxu1 %v24435_v0  ;;  %19656 = vmatpush3.msra.mxu0 %v22148_v37 }
 0x319   :  { %19689 = vmatpush3.msra.mxu1 %v22148_v37  ;;  %19657 = vmatprep.subr.mxu0 %v24435_v0 }
 0x31a   :  { %19690 = vmatprep.subr.mxu1 %v24435_v0  ;;  %19658 = vmatpush3.msra.mxu0 %v22158_v20 }
 0x31b   :  { %19691 = vmatpush3.msra.mxu1 %v22158_v20  ;;  %19659 = vmatprep.subr.mxu0 %v24435_v0 }
 0x31c   :  { %19692 = vmatprep.subr.mxu1 %v24435_v0  ;;  %19660 = vmatpush3.msra.mxu0 %v22170_v35 }
 0x31d   :  { %19693 = vmatpush3.msra.mxu1 %v22170_v35  ;;  %19661 = vmatprep.subr.mxu0 %v24435_v0 }
 0x31e   :  { %19694 = vmatprep.subr.mxu1 %v24435_v0  ;;  %19662 = vmatpush3.msra.mxu0 %v22180_v16 }
 0x31f   :  { %19663 = vmatprep.mubr.msk.f32.mxu0 %vm21722_vm0, %v24435_v0  ;;  %19695 = vmatpush3.msra.mxu1 %v22180_v16 }
 0x320   :  { %19696 = vmatprep.mubr.msk.f32.mxu1 %vm21722_vm0, %v24435_v0  ;;  %19664 = vmatmul.mubr.f32.vlgmr.msra.gmra.mxu0 %v2103_v7 }
 0x321   :  { %19677 = vmatprep.subr.mxu0 %v24435_v0  ;;  %19697 = vmatmul.mubr.f32.vlgmr.msra.gmra.mxu1 %v2101_v49 }
 0x322   :  { %19710 = vmatprep.subr.mxu1 %v24435_v0  ;;  %19678 = vmatpush3.msra.mxu0 %v22168_v33 }
 0x323   :  { %19711 = vmatpush3.msra.mxu1 %v22148_v37  ;;  %19679 = vmatprep.subr.mxu0 %v24435_v0 }
 0x324   :  { %19712 = vmatprep.subr.mxu1 %v24435_v0  ;;  %19680 = vmatpush3.msra.mxu0 %v22178_v42 }
 0x325   :  { %19713 = vmatpush3.msra.mxu1 %v22158_v20  ;;  %19681 = vmatprep.subr.mxu0 %v24435_v0 }
 0x326   :  { %19714 = vmatprep.subr.mxu1 %v24435_v0  ;;  %19682 = vmatpush3.msra.mxu0 %v22189_v11 }
 0x327   :  { %19715 = vmatpush3.msra.mxu1 %v22170_v35  ;;  %19683 = vmatprep.subr.mxu0 %v24435_v0 }
 0x328   :  { %19716 = vmatprep.subr.mxu1 %v24435_v0  ;;  %19684 = vmatpush3.msra.mxu0 %v22199_v31 }
 0x329   :  { %19685 = vmatprep.mubr.msk.f32.mxu0 %vm21722_vm0, %v24435_v0  ;;  %19717 = vmatpush3.msra.mxu1 %v22180_v16 }
 0x32a   :  { %19718 = vmatprep.mubr.msk.f32.mxu1 %vm21722_vm0, %v24435_v0  ;;  %19686 = vmatmul.mubr.f32.vlgmr.msra.gmra.mxu0 %v2100_v25 }
 0x32b   :  { %19699 = vmatprep.subr.mxu0 %v24435_v0  ;;  %19719 = vmatmul.mubr.f32.vlgmr.msra.gmra.mxu1 %v22238_v53 }
 0x32c   :  { %19700 = vmatpush3.msra.mxu0 %v22186_v47  ;;  %19707 = vmatprep.mubr.msk.f32.mxu0 %vm21722_vm0, %v24435_v0 }
 0x32d   :  { %19701 = vmatprep.subr.mxu0 %v24435_v0  ;;  %19728 = vmatprep.subr.mxu1 %v24435_v0 }
 0x32e   :  { %19702 = vmatpush3.msra.mxu0 %v22196_v51  ;;  %19729 = vmatpush3.msra.mxu1 %v21821_v22 }
 0x32f   :  { %19703 = vmatprep.subr.mxu0 %v24435_v0  ;;  %19730 = vmatprep.subr.mxu1 %v24435_v0 }
 0x330   :  { %19704 = vmatpush3.msra.mxu0 %v22208_v19  ;;  %19731 = vmatpush3.msra.mxu1 %v21823_v23 }
 0x331   :  { %19705 = vmatprep.subr.mxu0 %v24435_v0  ;;  %19732 = vmatprep.mubr.msk.f32.mxu1 %vm21722_vm0, %v24435_v0 }
 0x332   :  { %19706 = vmatpush3.msra.mxu0 %v22217_v52  ;;  %19742 = vmatprep.subr.mxu1 %v24435_v0 }
 0x333   :  { %19708 = vmatmul.mubr.f32.vlgmr.msra.gmra.mxu0 %v22238_v53  ;;  %19721 = vmatprep.subr.mxu0 %v24435_v0 }
 0x334   :  { %19722 = vmatpush3.msra.mxu0 %v21781_v4  ;;  %19725 = vmatprep.mubr.msk.f32.mxu0 %vm21722_vm0, %v24435_v0 }
 0x335   :  { %19723 = vmatprep.subr.mxu0 %v24435_v0 }
 0x336   :  { %19724 = vmatpush3.msra.mxu0 %v21783_v5 }
 0x337   :  { %19735 = vmatprep.subr.mxu0 %v24435_v0 }
 0x39d   :  { %v1213_v39 = vpop.f32.mrf.mxu1 }
 0x39f   :  { %v19544_v25 = vpop.f32.mrf.mxu1 }
 0x3a5   :  { %v1370_v49 = vpop.f32.mrf.mxu1 }
 0x3a6   :  { %v1122_v44 = vpop.f32.mrf.mxu0 }
 0x3a7   :  { %v1214_v7 = vadd.f32 %v1213_v39, %v1122_v44  ;;  %v19566_v52 = vpop.f32.mrf.mxu1 }
 0x3a8   :  { %v19533_v53 = vpop.f32.mrf.mxu0 }
 0x3ae   :  { %v1293_v23 = vpop.f32.mrf.mxu0 }
 0x3af   :  { %v1294_v19 = vadd.f32 %v1293_v23, %v1214_v7  ;;  %v1528_v22 = vpop.f32.mrf.mxu1 }
 0x3b0   :  { %v19555_v51 = vpop.f32.mrf.mxu0 }
 0x3b1   :  { %v19588_v47 = vpop.f32.mrf.mxu1  ;;  %v1371_v31 = vadd.f32 %v1370_v49, %v1294_v19 }
 0x3b8   :  { %v1453_v11 = vpop.f32.mrf.mxu0 }
 0x3b9   :  { %v1454_v42 = vadd.f32 %v1453_v11, %v1371_v31  ;;  %v1702_v33 = vpop.f32.mrf.mxu1 }
 0x3ba   :  { %v19577_v16 = vpop.f32.mrf.mxu0 }
 0x3bb   :  { %v19610_v35 = vpop.f32.mrf.mxu1  ;;  %v22332_v20 = vadd.f32 %v1528_v22, %v1454_v42 }
 0x3c2   :  { %v1611_v0 = vpop.f32.mrf.mxu0 }
 0x3c3   :  { %v1703_v25 = vadd.f32 %v1702_v33, %v1611_v0  ;;  %v1859_v37 = vpop.f32.mrf.mxu1 }
 0x3c4   :  { %v19599_v45 = vpop.f32.mrf.mxu0 }
 0x3c5   :  { %v19632_v39 = vpop.f32.mrf.mxu1 }
 0x3cc   :  { %v1782_v52 = vpop.f32.mrf.mxu0 }
 0x3cd   :  { %v1783_v44 = vadd.f32 %v1782_v52, %v1703_v25  ;;  %v2017_v53 = vpop.f32.mrf.mxu1  ;;  %v21726_v25 = vmov 1966171168  }
 0x3ce   :  { %v19621_v23 = vpop.f32.mrf.mxu0  ;;  %v2517_v52 = vunpack.c.l.s4 %v21726_v25 }
 0x3cf   :  { %v19654_v7 = vpop.f32.mrf.mxu1  ;;  %v1860_v51 = vadd.f32 %v1859_v37, %v1783_v44  ;;  %v2519_v23 = vlaneseq }
 0x3d0   :  { %v2518_v44 = vunpack.c.0.s8 %v2517_v52  ;;  %v2547_v52 = vld [vmem:[%s24383_s0 + $0x6] sm:$0x1] }
 0x3d6   :  { %v1942_v47 = vpop.f32.mrf.mxu0 }
 0x3d7   :  { %v1943_v19 = vadd.f32 %v1942_v47, %v1860_v51  ;;  %v2196_v49 = vpop.f32.mrf.mxu1  ;;  %v2520_v51 = vshrl.u32 %v2519_v23, 7 }
 0x3d8   :  { %v19643_v11 = vpop.f32.mrf.mxu0 }
 0x3d9   :  { %v19676_v31 = vpop.f32.mrf.mxu1  ;;  %v22334_v16 = vadd.f32 %v2017_v53, %v1943_v19  ;;  %v22336_v53 = vsub.s32 %v2518_v44, %v2520_v51 }
 0x3e0   :  { %v2105_v22 = vpop.f32.mrf.mxu0 }
 0x3e1   :  { %v2353_v42 = vpop.f32.mrf.mxu1  ;;  %v2197_v39 = vadd.f32 %v2196_v49, %v2105_v22 }
 0x3e2   :  { %v19665_v35 = vpop.f32.mrf.mxu0 }
 0x3e3   :  { %v19698_v0 = vpop.f32.mrf.mxu1 }
 0x3ea   :  { %v2276_v33 = vpop.f32.mrf.mxu0 }
 0x3eb   :  { %v2511_v45 = vpop.f32.mrf.mxu1  ;;  %v2277_v37 = vadd.f32 %v2276_v33, %v2197_v39 }
 0x3ec   :  { %v19687_v24 = vpop.f32.mrf.mxu0 }
 0x3ed   :  { %v19720_v7 = vpop.f32.mrf.mxu1  ;;  %v2354_v47 = vadd.f32 %v2353_v42, %v2277_v37  ;;  %v22342_v24 = vld [vmem:[%s24388_s5] sm:$0x1] }
 0x3f3   :  { %v2436_v11 = vpop.f32.mrf.mxu0 }
 0x3f4   :  { %v2437_v31 = vadd.f32 %v2436_v11, %v2354_v47 }
 0x3f5   :  { %v19709_v19 = vpop.f32.mrf.mxu0 }
 0x3f6   :  { %v2512_v43 = vadd.f32 %v2511_v45, %v2437_v31 }
 0x3f8   :  { %v2522_v35 = vrot.slane %v2512_v43, %v22336_v53  ;;  %v2546_v43 = vld [vmem:[%s24383_s0 + $0x1] sm:$0x1] }
 0x3fa   :  { %v2523_v49 = vcombine.high %v2522_v35, %v2522_v35  ;;  %v2530_v22 = vrot.slane %v2522_v35, %v22336_v53 }
 0x3fc   :  { %v2537_v0 = vrot.slane %v2523_v49, %v22336_v53  ;;  %v2540_v42 = vadd.f32 %v2530_v22, %v22342_v24  ;;  %v24532_v49 = vmov 0.0  }
 0x3fe   :  { %v2541_v33 = vadd.f32 %v2537_v0, %v22342_v24  ;;  %21523 = vtanh.f32 %v2540_v42 }
 0x400   :  { %21525 = vtanh.f32 %v2541_v33 }
 0x40b   :  { %v21524_v39 = vpop.eup %21523 }
 0x40c   :  { %v2544_v45 = vmul.f32 2.0, %v21524_v39 }
 0x40d   :  { %v21526_v25 = vpop.eup %21525 }
 0x40e   :  { %v2545_v23 = vmul.f32 2.0, %v21526_v25  ;;  %v2548_v7 = vmul.f32 %v2546_v43, %v2544_v45 }
 0x410   :  { %v2550_v37 = vmul.f32 %v2548_v7, %v2544_v45  ;;  %v2549_v44 = vmul.f32 %v2547_v52, %v2545_v23 }
 0x412   :  { %v2552_v51 = vmul.f32 %v2550_v37, %v2544_v45  ;;  %v2551_v47 = vmul.f32 %v2549_v44, %v2545_v23 }
 0x414   :  { %v2555_v11 = vsel %vm59_vm1, %v2552_v51, 0  ;;  %v2553_v35 = vmul.f32 %v2551_v47, %v2545_v23 }
 0x415   :  { %v2624_v31 = vand.u32 4294901760, %v2555_v11 }
 0x416   :  { %v3017_v42 = vsel %vm59_vm1, %v2553_v35, 0 }
 0x417   :  { %v2625_v19 = vsub.f32 %v2555_v11, %v2624_v31  ;;  %19733 = vmatmul.mubr.f32.vlgmr.msra.gmra.mxu1 %v2624_v31  ;;  %v3086_v39 = vand.u32 4294901760, %v3017_v42 }
 0x418   :  { %19743 = vmatpush3.msra.mxu1 %v21781_v4  ;;  %19746 = vmatprep.mubr.msk.f32.mxu1 %vm21722_vm0, %v24532_v49 }
 0x419   :  { %19744 = vmatprep.subr.mxu1 %v24532_v49  ;;  %v2626_v22 = vand.u32 4294901760, %v2625_v19  ;;  %v3087_v43 = vsub.f32 %v3017_v42, %v3086_v39 }
 0x41a   :  { %19745 = vmatpush3.msra.mxu1 %v21783_v5 }
 0x41b   :  { %19747 = vmatmul.mubr.f32.vlgmr.msra.gmra.mxu1 %v2626_v22  ;;  %19756 = vmatprep.subr.mxu1 %v24532_v49  ;;  %v2627_v0 = vsub.f32 %v2625_v19, %v2626_v22  ;;  %v3088_v45 = vand.u32 4294901760, %v3087_v43 }
 0x41c   :  { %19757 = vmatpush3.msra.mxu1 %v21781_v4  ;;  %19760 = vmatprep.mubr.msk.f32.mxu1 %vm21722_vm0, %v24532_v49 }
 0x41d   :  { %19758 = vmatprep.subr.mxu1 %v24532_v49  ;;  %v2628_v33 = vand.u32 4294901760, %v2627_v0  ;;  %v3089_v25 = vsub.f32 %v3087_v43, %v3088_v45 }
 0x41e   :  { %19759 = vmatpush3.msra.mxu1 %v21783_v5 }
 0x41f   :  { %19726 = vmatmul.mubr.f32.vlgmr.msra.gmra.mxu0 %v2628_v33  ;;  %19761 = vmatmul.mubr.f32.vlgmr.msra.gmra.mxu1 %v2624_v31  ;;  %v3090_v52 = vand.u32 4294901760, %v3089_v25 }
 0x420   :  { %19770 = vmatprep.subr.mxu1 %v24532_v49  ;;  %19736 = vmatpush3.msra.mxu0 %v21790_v8 }
 0x421   :  { %19771 = vmatpush3.msra.mxu1 %v21873_v36  ;;  %19737 = vmatprep.subr.mxu0 %v24532_v49 }
 0x422   :  { %19772 = vmatprep.subr.mxu1 %v24532_v49  ;;  %19738 = vmatpush3.msra.mxu0 %v21793_v9 }
 0x423   :  { %19739 = vmatprep.mubr.msk.f32.mxu0 %vm21722_vm0, %v24532_v49  ;;  %19773 = vmatpush3.msra.mxu1 %v21880_v38 }
 0x424   :  { %19774 = vmatprep.mubr.msk.f32.mxu1 %vm21722_vm0, %v24532_v49  ;;  %19740 = vmatmul.mubr.f32.vlgmr.msra.gmra.mxu0 %v2625_v19 }
 0x425   :  { %19749 = vmatprep.subr.mxu0 %v24532_v49  ;;  %19775 = vmatmul.mubr.f32.vlgmr.msra.gmra.mxu1 %v3086_v39 }
 0x426   :  { %19784 = vmatprep.subr.mxu1 %v24532_v49  ;;  %19750 = vmatpush3.msra.mxu0 %v21802_v12 }
 0x427   :  { %19785 = vmatpush3.msra.mxu1 %v21819_v21  ;;  %19751 = vmatprep.subr.mxu0 %v24532_v49 }
 0x428   :  { %19786 = vmatprep.subr.mxu1 %v24532_v49  ;;  %19752 = vmatpush3.msra.mxu0 %v21805_v13 }
 0x429   :  { %19753 = vmatprep.mubr.msk.f32.mxu0 %vm21722_vm0, %v24532_v49  ;;  %19787 = vmatpush3.msra.mxu1 %v21827_v26 }
 0x42a   :  { %19788 = vmatprep.mubr.msk.f32.mxu1 %vm21722_vm0, %v24532_v49  ;;  %19754 = vmatmul.mubr.f32.vlgmr.msra.gmra.mxu0 %v2624_v31 }
 0x42b   :  { %19763 = vmatprep.subr.mxu0 %v24532_v49  ;;  %19789 = vmatmul.mubr.f32.vlgmr.msra.gmra.mxu1 %v3088_v45 }
 0x42c   :  { %19798 = vmatprep.subr.mxu1 %v24532_v49  ;;  %19764 = vmatpush3.msra.mxu0 %v21819_v21 }
 0x42d   :  { %19799 = vmatpush3.msra.mxu1 %v21819_v21  ;;  %19765 = vmatprep.subr.mxu0 %v24532_v49 }
 0x42e   :  { %19800 = vmatprep.subr.mxu1 %v24532_v49  ;;  %19766 = vmatpush3.msra.mxu0 %v21827_v26 }
 0x42f   :  { %19767 = vmatprep.mubr.msk.f32.mxu0 %vm21722_vm0, %v24532_v49  ;;  %19801 = vmatpush3.msra.mxu1 %v21827_v26 }
 0x430   :  { %19802 = vmatprep.mubr.msk.f32.mxu1 %vm21722_vm0, %v24532_v49  ;;  %19768 = vmatmul.mubr.f32.vlgmr.msra.gmra.mxu0 %v3090_v52 }
 0x431   :  { %19777 = vmatprep.subr.mxu0 %v24532_v49  ;;  %19803 = vmatmul.mubr.f32.vlgmr.msra.gmra.mxu1 %v3086_v39 }
 0x432   :  { %19778 = vmatpush3.msra.mxu0 %v21832_v27  ;;  %19781 = vmatprep.mubr.msk.f32.mxu0 %vm21722_vm0, %v24532_v49 }
 0x433   :  { %19779 = vmatprep.subr.mxu0 %v24532_v49  ;;  %19816 = vmatprep.subr.mxu1 %v24532_v49 }
 0x434   :  { %19780 = vmatpush3.msra.mxu0 %v21840_v29  ;;  %19817 = vmatpush3.msra.mxu1 %v21985_v3 }
 0x435   :  { %19782 = vmatmul.mubr.f32.vlgmr.msra.gmra.mxu0 %v3087_v43  ;;  %19791 = vmatprep.subr.mxu0 %v24532_v49 }
 0x436   :  { %19792 = vmatpush3.msra.mxu0 %v21848_v30  ;;  %19795 = vmatprep.mubr.msk.f32.mxu0 %vm21722_vm0, %v24532_v49 }
 0x437   :  { %19793 = vmatprep.subr.mxu0 %v24532_v49  ;;  %19818 = vmatprep.subr.mxu1 %v24532_v49 }
 0x438   :  { %19794 = vmatpush3.msra.mxu0 %v21854_v32  ;;  %19819 = vmatpush3.msra.mxu1 %v21987_v6 }
 0x439   :  { %19796 = vmatmul.mubr.f32.vlgmr.msra.gmra.mxu0 %v3086_v39  ;;  %19820 = vmatprep.subr.mxu1 %v24532_v49 }
 0x43a   :  { %19821 = vmatpush3.msra.mxu1 %v21991_v10  ;;  %19805 = vmatprep.subr.mxu0 %v24532_v49 }
 0x43b   :  { %19822 = vmatprep.subr.mxu1 %v24532_v49  ;;  %19824 = vmatprep.mubr.msk.f32.mxu1 %vm21722_vm0, %v24532_v49 }
 0x43c   :  { %19823 = vmatpush3.msra.mxu1 %v22010_v18  ;;  %19806 = vmatpush3.msra.mxu0 %v21949_v54 }
 0x43d   :  { %19838 = vmatprep.subr.mxu1 %v24532_v49  ;;  %19807 = vmatprep.subr.mxu0 %v24532_v49 }
 0x43e   :  { %19808 = vmatpush3.msra.mxu0 %v21951_v55  ;;  %19813 = vmatprep.mubr.msk.f32.mxu0 %vm21722_vm0, %v24532_v49 }
 0x43f   :  { %19809 = vmatprep.subr.mxu0 %v24532_v49 }
 0x440   :  { %19810 = vmatpush3.msra.mxu0 %v21953_v56 }
 0x441   :  { %19811 = vmatprep.subr.mxu0 %v24532_v49 }
 0x442   :  { %19812 = vmatpush3.msra.mxu0 %v21998_v14 }
 0x443   :  { %19827 = vmatprep.subr.mxu0 %v24532_v49 }
 0x4d7   :  { %v2711_v23 = vpop.f32.mrf.mxu1 }
 0x4d9   :  { %v19734_v7 = vpop.f32.mrf.mxu1 }
 0x4db   :  { %v2862_v37 = vpop.f32.mrf.mxu1 }
 0x4dd   :  { %v19748_v44 = vpop.f32.mrf.mxu1 }
 0x4de   :  { %v22440_v44 = vld [vmem:[%s24386_s3] sm:$0x1] }
 0x4df   :  { %v2630_v51 = vpop.f32.mrf.mxu0  ;;  %v3012_v47 = vpop.f32.mrf.mxu1 }
 0x4e0   :  { %v2631_v11 = vadd.f32 %v2630_v51, %v22332_v20 }
 0x4e1   :  { %v19727_v31 = vpop.f32.mrf.mxu0  ;;  %v19762_v19 = vpop.f32.mrf.mxu1 }
 0x4e2   :  { %v2712_v35 = vadd.f32 %v2711_v23, %v2631_v11 }
 0x4e4   :  { %v2787_v22 = vpop.f32.mrf.mxu0 }
 0x4e5   :  { %v2788_v0 = vadd.f32 %v2787_v22, %v2712_v35  ;;  %v3173_v42 = vpop.f32.mrf.mxu1 }
 0x4e6   :  { %v19741_v33 = vpop.f32.mrf.mxu0 }
 0x4e7   :  { %v19776_v39 = vpop.f32.mrf.mxu1  ;;  %v2863_v43 = vadd.f32 %v2862_v37, %v2788_v0 }
 0x4ea   :  { %v2939_v45 = vpop.f32.mrf.mxu0 }
 0x4eb   :  { %v2940_v25 = vadd.f32 %v2939_v45, %v2863_v43  ;;  %v3324_v52 = vpop.f32.mrf.mxu1  ;;  %v22447_v45 = vld [vmem:[%s24386_s3 + $0x1] sm:$0x1] }
 0x4ec   :  { %v19755_v18 = vpop.f32.mrf.mxu0 }
 0x4ed   :  { %v3013_v7 = vadd.f32 %v3012_v47, %v2940_v25  ;;  %v19790_v10 = vpop.f32.mrf.mxu1 }
 0x4ef   :  { %v3478_v20 = vadd.f32 %v22440_v44, %v3013_v7 }
 0x4f0   :  { %v3092_v23 = vpop.f32.mrf.mxu0 }
 0x4f1   :  { %21527 = vtanh.f32 %v3478_v20  ;;  %v3093_v51 = vadd.f32 %v3092_v23, %v22334_v16  ;;  %v3474_v11 = vpop.f32.mrf.mxu1  ;;  %v18507_v25 = vmul.f32 -1.442695, %v3478_v20 }
 0x4f2   :  { %v19769_v31 = vpop.f32.mrf.mxu0 }
 0x4f3   :  { %v19804_v37 = vpop.f32.mrf.mxu1  ;;  %v3174_v19 = vadd.f32 %v3173_v42, %v3093_v51 }
 0x4f5   :  { %v3249_v35 = vpop.f32.mrf.mxu0 }
 0x4f6   :  { %v3250_v22 = vadd.f32 %v3249_v35, %v3174_v19 }
 0x4f7   :  { %v19783_v18 = vpop.f32.mrf.mxu0 }
 0x4f8   :  { %v3325_v47 = vadd.f32 %v3324_v52, %v3250_v22 }
 0x4f9   :  { %v3401_v10 = vpop.f32.mrf.mxu0 }
 0x4fa   :  { %v3402_v0 = vadd.f32 %v3401_v10, %v3325_v47 }
 0x4fb   :  { %v19797_v33 = vpop.f32.mrf.mxu0 }
 0x4fc   :  { %v3475_v39 = vadd.f32 %v3474_v11, %v3402_v0 }
 0x4fe   :  { %v21528_v43 = vpop.eup %21527  ;;  %v3479_v16 = vadd.f32 %v22447_v45, %v3475_v39 }
 0x4ff   :  { %3498 = vrot.lane.b32.xlu1 %v21528_v43, %s21723_s18 }
 0x500   :  { %21529 = vtanh.f32 %v3479_v16  ;;  %v18508_v52 = vmul.f32 -1.442695, %v3479_v16 }
 0x501   :  { %21531 = vpow2.f32 %v18507_v25 }
 0x502   :  { %21533 = vpow2.f32 %v18508_v52 }
 0x50d   :  { %v21530_v42 = vpop.eup %21529 }
 0x50e   :  { %3500 = vrot.lane.b32.xlu0 %v21530_v42, %s21723_s18  ;;  %v21532_v7 = vpop.eup %21531 }
 0x50f   :  { %v3486_v23 = vadd.f32 1.0, %v21532_v7  ;;  %v21534_v51 = vpop.eup %21533 }
 0x510   :  { %v3487_v11 = vadd.f32 1.0, %v21534_v51 }
 0x511   :  { %21535 = vrcp.f32 %v3486_v23 }
 0x512   :  { %21537 = vrcp.f32 %v3487_v11 }
 0x51e   :  { %v21536_v31 = vpop.eup %21535 }
 0x51f   :  { %v21538_v35 = vpop.eup %21537  ;;  %v3494_v20 = vmul.f32 %v21536_v31, %v21941_v46 }
 0x520   :  { %v3495_v0 = vmul.f32 %v21538_v35, %v21946_v50 }
 0x571   :  { %v3499_v37 = vpop.permute.xlu1 %3498 }
 0x572   :  { %v3504_v19 = vmul.f32 %v21536_v31, %v3499_v37 }
 0x574   :  { %3508 = vrot.lane.b32.xlu1 %v3504_v19, %s21724_s19 }
 0x580   :  { %v3501_v22 = vpop.permute.xlu0 %3500 }
 0x581   :  { %v3505_v18 = vmul.f32 %v21538_v35, %v3501_v22 }
 0x583   :  { %3510 = vrot.lane.b32.xlu0 %v3505_v18, %s21724_s19 }
 0x5e6   :  { %v3509_v47 = vpop.permute.xlu1 %3508 }
 0x5e7   :  { %v22455_v10 = vadd.f32 %v3509_v47, %v3494_v20 }
 0x5e9   :  { %21539 = vtanh.f32 %v22455_v10 }
 0x5f5   :  { %v3511_v33 = vpop.permute.xlu0 %3510 }
 0x5f6   :  { %v21540_v39 = vpop.eup %21539  ;;  %v22459_v43 = vadd.f32 %v3511_v33, %v3495_v0  ;;  %v24534_v0 = vld [vmem:[#allocation13_spill] sm:$0xff]  ;;  %v24535_v33 = vld [vmem:[#allocation27_spill] sm:$0xff] }
 0x5f7   :  { %3520 = vrot.lane.b32.xlu1 %v21540_v39, %s21723_s18 }
 0x5f8   :  { %21541 = vtanh.f32 %v22459_v43  ;;  %v4516_v25 = vrot.slane %v22459_v43, 7 }
 0x5fa   :  { %v4517_v50 = vsel %vm2024_vm2, %v4516_v25, %v22455_v10 }
 0x605   :  { %v21542_v16 = vpop.eup %21541 }
 0x606   :  { %3522 = vrot.lane.b32.xlu0 %v21542_v16, %s21723_s18 }
 0x669   :  { %v3521_v42 = vpop.permute.xlu1 %3520 }
 0x66a   :  { %v3526_v46 = vmul.f32 %v21536_v31, %v3521_v42  ;;  %v24536_v42 = vld [vmem:[#allocation16_spill] sm:$0xff] }
 0x66c   :  { %3529 = vrot.lane.b32.xlu1 %v3526_v46, %s21724_s19  ;;  %v24537_v46 = vld [vmem:[#allocation18_spill] sm:$0xff] }
 0x670   :  { %4518 = vrot.lane.b32.xlu1 %v4517_v50, %s21725_s20  ;;  %v24538_v50 = vld [vmem:[#allocation20_spill] sm:$0xff] }
 0x678   :  { %v3523_v52 = vpop.permute.xlu0 %3522 }
 0x679   :  { %v22469_v7 = vmul.f32 %v21538_v35, %v3523_v52  ;;  %v24539_v52 = vld [vmem:[#allocation17_spill] sm:$0xff] }
 0x67b   :  { %24533 = vst [vmem:[#allocation44_spill] sm:$0xff] %v22469_v7  ;;  %4025 = vrot.lane.b32.xlu0 %v22469_v7, %s21724_s19  ;;  %v24549_v7 = vld [vmem:[#allocation33_spill] sm:$0xff] }
 0x6de   :  { %v3530_v23 = vpop.permute.xlu1 %3529 }
 0x6df   :  { %3532 = vst.msk [vmem:[#allocation5 + $0x1] sm:$0x1] %vm1036_vm3, %v3530_v23  ;;  %v3538_v51 = vsel %vm1044_vm4, %v3530_v23, 0  ;;  %v24540_v23 = vld [vmem:[#allocation19_spill] sm:$0xff] }
 0x6e0   :  { %v3609_v11 = vand.u32 4294901760, %v3538_v51 }
 0x6e2   :  { %v3610_v31 = vsub.f32 %v3538_v51, %v3609_v11  ;;  %19825 = vmatmul.mubr.f32.vlgmr.msra.gmra.mxu1 %v3609_v11  ;;  %v4519_v51 = vpop.permute.xlu1 %4518 }
 0x6e3   :  { %19839 = vmatpush3.msra.mxu1 %v21949_v54  ;;  %19846 = vmatprep.mubr.msk.f32.mxu1 %vm21722_vm0, %v24532_v49 }
 0x6e4   :  { %v3611_v37 = vand.u32 4294901760, %v3610_v31  ;;  %19840 = vmatprep.subr.mxu1 %v24532_v49 }
 0x6e5   :  { %19841 = vmatpush3.msra.mxu1 %v21951_v55 }
 0x6e6   :  { %v3612_v19 = vsub.f32 %v3610_v31, %v3611_v37  ;;  %19842 = vmatprep.subr.mxu1 %v24532_v49 }
 0x6e7   :  { %19843 = vmatpush3.msra.mxu1 %v21953_v56 }
 0x6e8   :  { %19844 = vmatprep.subr.mxu1 %v24532_v49  ;;  %v3613_v35 = vand.u32 4294901760, %v3612_v19 }
 0x6e9   :  { %19845 = vmatpush3.msra.mxu1 %v21998_v14 }
 0x6ea   :  { %19847 = vmatmul.mubr.f32.vlgmr.msra.gmra.mxu1 %v3611_v37  ;;  %19860 = vmatprep.subr.mxu1 %v24532_v49  ;;  %v4520_v37 = vsel %vm1044_vm4, %v4519_v51, 0  ;;  %v24547_v51 = vld [vmem:[#allocation29_spill] sm:$0xff] }
 0x6eb   :  { %19814 = vmatmul.mubr.f32.vlgmr.msra.gmra.mxu0 %v3613_v35  ;;  %19861 = vmatpush3.msra.mxu1 %v21949_v54  ;;  %v22571_v19 = vand.u32 4294901760, %v4520_v37 }
 0x6ec   :  { %19828 = vmatpush3.msra.mxu0 %v21956_v57  ;;  %19862 = vmatprep.subr.mxu1 %v24532_v49 }
 0x6ed   :  { %19829 = vmatprep.subr.mxu0 %v24532_v49  ;;  %19863 = vmatpush3.msra.mxu1 %v21951_v55  ;;  %v4026_v22 = vpop.permute.xlu0 %4025  ;;  %v4592_v35 = vsub.f32 %v4520_v37, %v22571_v19 }
 0x6ee   :  { %19830 = vmatpush3.msra.mxu0 %v21959_v58  ;;  %19864 = vmatprep.subr.mxu1 %v24532_v49  ;;  %v4027_v18 = vsel %vm1044_vm4, %v4026_v22, 0  ;;  %v24543_v22 = vld [vmem:[#allocation42_spill] sm:$0xff] }
 0x6ef   :  { %19831 = vmatprep.subr.mxu0 %v24532_v49  ;;  %19865 = vmatpush3.msra.mxu1 %v21953_v56  ;;  %v22505_v20 = vand.u32 4294901760, %v4027_v18 }
 0x6f0   :  { %19832 = vmatpush3.msra.mxu0 %v21962_v59  ;;  %19866 = vmatprep.subr.mxu1 %v24532_v49 }
 0x6f1   :  { %19833 = vmatprep.subr.mxu0 %v24532_v49  ;;  %19835 = vmatprep.mubr.msk.f32.mxu0 %vm21722_vm0, %v24532_v49  ;;  %v4099_v47 = vsub.f32 %v4027_v18, %v22505_v20  ;;  %v24544_v18 = vld [vmem:[#allocation26_spill] sm:$0xff] }
 0x6f2   :  { %19834 = vmatpush3.msra.mxu0 %v22001_v15  ;;  %19867 = vmatpush3.msra.mxu1 %v21998_v14 }
 0x6f3   :  { %19868 = vmatprep.mubr.msk.f32.mxu1 %vm21722_vm0, %v24532_v49  ;;  %19836 = vmatmul.mubr.f32.vlgmr.msra.gmra.mxu0 %v3610_v31  ;;  %v4100_v39 = vand.u32 4294901760, %v4099_v47  ;;  %v24542_v31 = vld [vmem:[#allocation24_spill] sm:$0xff] }
 0x6f4   :  { %19849 = vmatprep.subr.mxu0 %v24532_v49  ;;  %19869 = vmatmul.mubr.f32.vlgmr.msra.gmra.mxu1 %v3609_v11 }
 0x6f5   :  { %19882 = vmatprep.subr.mxu1 %v24532_v49  ;;  %19850 = vmatpush3.msra.mxu0 %v21967_v60  ;;  %v4101_v16 = vsub.f32 %v4099_v47, %v4100_v39 }
 0x6f6   :  { %19883 = vmatpush3.msra.mxu1 %v22094_v28  ;;  %19851 = vmatprep.subr.mxu0 %v24532_v49 }
 0x6f7   :  { %19884 = vmatprep.subr.mxu1 %v24532_v49  ;;  %19852 = vmatpush3.msra.mxu0 %v21970_v61  ;;  %v4102_v25 = vand.u32 4294901760, %v4101_v16  ;;  %v24546_v16 = vld [vmem:[#allocation28_spill] sm:$0xff] }
 0x6f8   :  { %19885 = vmatpush3.msra.mxu1 %v22102_v34  ;;  %19853 = vmatprep.subr.mxu0 %v24532_v49 }
 0x6f9   :  { %19886 = vmatprep.subr.mxu1 %v24532_v49  ;;  %19854 = vmatpush3.msra.mxu0 %v21973_v62 }
 0x6fa   :  { %19887 = vmatpush3.msra.mxu1 %v22112_v40  ;;  %19855 = vmatprep.subr.mxu0 %v24532_v49 }
 0x6fb   :  { %19888 = vmatprep.subr.mxu1 %v24532_v49  ;;  %19856 = vmatpush3.msra.mxu0 %v24534_v0 }
 0x6fc   :  { %19857 = vmatprep.mubr.msk.f32.mxu0 %vm21722_vm0, %v24532_v49  ;;  %19889 = vmatpush3.msra.mxu1 %v24535_v33 }
 0x6fd   :  { %19890 = vmatprep.mubr.msk.f32.mxu1 %vm21722_vm0, %v24532_v49  ;;  %19858 = vmatmul.mubr.f32.vlgmr.msra.gmra.mxu0 %v3609_v11  ;;  %v24541_v11 = vld [vmem:[#allocation22_spill] sm:$0xff] }
 0x6fe   :  { %19871 = vmatprep.subr.mxu0 %v24532_v49  ;;  %19891 = vmatmul.mubr.f32.vlgmr.msra.gmra.mxu1 %v22505_v20 }
 0x6ff   :  { %19904 = vmatprep.subr.mxu1 %v24532_v49  ;;  %19872 = vmatpush3.msra.mxu0 %v22031_v41 }
 0x700   :  { %19905 = vmatpush3.msra.mxu1 %v22031_v41  ;;  %19873 = vmatprep.subr.mxu0 %v24532_v49 }
 0x701   :  { %19906 = vmatprep.subr.mxu1 %v24532_v49  ;;  %19874 = vmatpush3.msra.mxu0 %v24536_v42 }
 0x702   :  { %19907 = vmatpush3.msra.mxu1 %v24536_v42  ;;  %19875 = vmatprep.subr.mxu0 %v24532_v49 }
 0x703   :  { %19908 = vmatprep.subr.mxu1 %v24532_v49  ;;  %19876 = vmatpush3.msra.mxu0 %v24537_v46 }
 0x704   :  { %19909 = vmatpush3.msra.mxu1 %v24537_v46  ;;  %19877 = vmatprep.subr.mxu0 %v24532_v49 }
 0x705   :  { %19910 = vmatprep.subr.mxu1 %v24532_v49  ;;  %19878 = vmatpush3.msra.mxu0 %v24538_v50 }
 0x706   :  { %19879 = vmatprep.mubr.msk.f32.mxu0 %vm21722_vm0, %v24532_v49  ;;  %19911 = vmatpush3.msra.mxu1 %v24538_v50 }
 0x707   :  { %19912 = vmatprep.mubr.msk.f32.mxu1 %vm21722_vm0, %v24532_v49  ;;  %19880 = vmatmul.mubr.f32.vlgmr.msra.gmra.mxu0 %v4102_v25 }
 0x708   :  { %19893 = vmatprep.subr.mxu0 %v24532_v49  ;;  %19913 = vmatmul.mubr.f32.vlgmr.msra.gmra.mxu1 %v4100_v39  ;;  %v4593_v39 = vand.u32 4294901760, %v4592_v35 }
 0x709   :  { %19926 = vmatprep.subr.mxu1 %v24532_v49  ;;  %19894 = vmatpush3.msra.mxu0 %v24539_v52 }
 0x70a   :  { %19927 = vmatpush3.msra.mxu1 %v22031_v41  ;;  %19895 = vmatprep.subr.mxu0 %v24532_v49  ;;  %v4594_v25 = vsub.f32 %v4592_v35, %v4593_v39 }
 0x70b   :  { %19928 = vmatprep.subr.mxu1 %v24532_v49  ;;  %19896 = vmatpush3.msra.mxu0 %v24540_v23 }
 0x70c   :  { %19929 = vmatpush3.msra.mxu1 %v24536_v42  ;;  %19897 = vmatprep.subr.mxu0 %v24532_v49  ;;  %v4595_v37 = vand.u32 4294901760, %v4594_v25  ;;  %v24551_v25 = vld [vmem:[#allocation32_spill] sm:$0xff] }
 0x70d   :  { %19930 = vmatprep.subr.mxu1 %v24532_v49  ;;  %19898 = vmatpush3.msra.mxu0 %v24541_v11 }
 0x70e   :  { %19931 = vmatpush3.msra.mxu1 %v24537_v46  ;;  %19899 = vmatprep.subr.mxu0 %v24532_v49 }
 0x70f   :  { %19932 = vmatprep.subr.mxu1 %v24532_v49  ;;  %19900 = vmatpush3.msra.mxu0 %v24542_v31 }
 0x710   :  { %19901 = vmatprep.mubr.msk.f32.mxu0 %vm21722_vm0, %v24532_v49  ;;  %19933 = vmatpush3.msra.mxu1 %v24538_v50 }
 0x711   :  { %19934 = vmatprep.mubr.msk.f32.mxu1 %vm21722_vm0, %v24532_v49  ;;  %19902 = vmatmul.mubr.f32.vlgmr.msra.gmra.mxu0 %v4099_v47  ;;  %v24545_v47 = vld [vmem:[#allocation43_spill] sm:$0xff] }
 0x712   :  { %19915 = vmatprep.subr.mxu0 %v24532_v49  ;;  %19935 = vmatmul.mubr.f32.vlgmr.msra.gmra.mxu1 %v22505_v20 }
 0x713   :  { %19948 = vmatprep.subr.mxu1 %v24532_v49  ;;  %19916 = vmatpush3.msra.mxu0 %v22056_v63 }
 0x714   :  { %19949 = vmatpush3.msra.mxu1 %v22225_v1  ;;  %19917 = vmatprep.subr.mxu0 %v24532_v49 }
 0x715   :  { %19950 = vmatprep.subr.mxu1 %v24532_v49  ;;  %19918 = vmatpush3.msra.mxu0 %v22065_v2 }
 0x716   :  { %19951 = vmatpush3.msra.mxu1 %v22234_v48  ;;  %19919 = vmatprep.subr.mxu0 %v24532_v49 }
 0x717   :  { %19952 = vmatprep.subr.mxu1 %v24532_v49  ;;  %19920 = vmatpush3.msra.mxu0 %v22077_v17 }
 0x718   :  { %19953 = vmatpush3.msra.mxu1 %v24543_v22  ;;  %19921 = vmatprep.subr.mxu0 %v24532_v49 }
 0x719   :  { %19954 = vmatprep.subr.mxu1 %v24532_v49  ;;  %19922 = vmatpush3.msra.mxu0 %v24544_v18 }
 0x71a   :  { %19923 = vmatprep.mubr.msk.f32.mxu0 %vm21722_vm0, %v24532_v49  ;;  %19955 = vmatpush3.msra.mxu1 %v24545_v47  ;;  %v24550_v47 = vld [vmem:[#allocation30_spill] sm:$0xff] }
 0x71b   :  { %19956 = vmatprep.mubr.msk.f32.mxu1 %vm21722_vm0, %v24532_v49  ;;  %19924 = vmatmul.mubr.f32.vlgmr.msra.gmra.mxu0 %v22505_v20  ;;  %v24548_v20 = vld [vmem:[#allocation31_spill] sm:$0xff] }
 0x71c   :  { %19937 = vmatprep.subr.mxu0 %v24532_v49  ;;  %19957 = vmatmul.mubr.f32.vlgmr.msra.gmra.mxu1 %v22571_v19 }
 0x71d   :  { %19970 = vmatprep.subr.mxu1 %v24532_v49  ;;  %19938 = vmatpush3.msra.mxu0 %v24546_v16 }
 0x71e   :  { %19971 = vmatpush3.msra.mxu1 %v24546_v16  ;;  %19939 = vmatprep.subr.mxu0 %v24532_v49 }
 0x71f   :  { %19972 = vmatprep.subr.mxu1 %v24532_v49  ;;  %19940 = vmatpush3.msra.mxu0 %v24547_v51 }
 0x720   :  { %19973 = vmatpush3.msra.mxu1 %v24547_v51  ;;  %19941 = vmatprep.subr.mxu0 %v24532_v49 }
 0x721   :  { %19974 = vmatprep.subr.mxu1 %v24532_v49  ;;  %19942 = vmatpush3.msra.mxu0 %v24548_v20 }
 0x722   :  { %19975 = vmatpush3.msra.mxu1 %v24548_v20  ;;  %19943 = vmatprep.subr.mxu0 %v24532_v49 }
 0x723   :  { %19976 = vmatprep.subr.mxu1 %v24532_v49  ;;  %19944 = vmatpush3.msra.mxu0 %v24549_v7 }
 0x724   :  { %19945 = vmatprep.mubr.msk.f32.mxu0 %vm21722_vm0, %v24532_v49  ;;  %19977 = vmatpush3.msra.mxu1 %v24549_v7 }
 0x725   :  { %19978 = vmatprep.mubr.msk.f32.mxu1 %vm21722_vm0, %v24532_v49  ;;  %19946 = vmatmul.mubr.f32.vlgmr.msra.gmra.mxu0 %v4595_v37  ;;  %v24552_v37 = vld [vmem:[#allocation35_spill] sm:$0xff] }
 0x726   :  { %19959 = vmatprep.subr.mxu0 %v24532_v49  ;;  %19979 = vmatmul.mubr.f32.vlgmr.msra.gmra.mxu1 %v4593_v39  ;;  %v24553_v39 = vld [vmem:[#allocation37_spill] sm:$0xff] }
 0x727   :  { %19992 = vmatprep.subr.mxu1 %v24532_v49  ;;  %19960 = vmatpush3.msra.mxu0 %v24550_v47  ;;  %v24558_v47 = vld [vmem:[#allocation9_spill] sm:$0xff] }
 0x728   :  { %19993 = vmatpush3.msra.mxu1 %v24546_v16  ;;  %19961 = vmatprep.subr.mxu0 %v24532_v49 }
 0x729   :  { %19994 = vmatprep.subr.mxu1 %v24532_v49  ;;  %19962 = vmatpush3.msra.mxu0 %v24551_v25  ;;  %v24556_v25 = vld [vmem:[#allocation8_spill] sm:$0xff] }
 0x72a   :  { %19995 = vmatpush3.msra.mxu1 %v24547_v51  ;;  %19963 = vmatprep.subr.mxu0 %v24532_v49 }
 0x72b   :  { %19996 = vmatprep.subr.mxu1 %v24532_v49  ;;  %19964 = vmatpush3.msra.mxu0 %v24552_v37  ;;  %v24554_v37 = vld [vmem:[#allocation34_spill] sm:$0xff] }
 0x72c   :  { %19997 = vmatpush3.msra.mxu1 %v24548_v20  ;;  %19965 = vmatprep.subr.mxu0 %v24532_v49 }
 0x72d   :  { %19998 = vmatprep.subr.mxu1 %v24532_v49  ;;  %19966 = vmatpush3.msra.mxu0 %v24553_v39  ;;  %v24555_v39 = vld [vmem:[#allocation36_spill] sm:$0xff] }
 0x72e   :  { %19967 = vmatprep.mubr.msk.f32.mxu0 %vm21722_vm0, %v24532_v49  ;;  %19999 = vmatpush3.msra.mxu1 %v24549_v7 }
 0x72f   :  { %20000 = vmatprep.mubr.msk.f32.mxu1 %vm21722_vm0, %v24532_v49  ;;  %19968 = vmatmul.mubr.f32.vlgmr.msra.gmra.mxu0 %v4592_v35  ;;  %v24557_v35 = vld [vmem:[#allocation38_spill] sm:$0xff] }
 0x730   :  { %19981 = vmatprep.subr.mxu0 %v24532_v49  ;;  %20001 = vmatmul.mubr.f32.vlgmr.msra.gmra.mxu1 %v22571_v19 }
 0x731   :  { %19982 = vmatpush3.msra.mxu0 %v24554_v37  ;;  %19989 = vmatprep.mubr.msk.f32.mxu0 %vm21722_vm0, %v24532_v49  ;;  %v24559_v37 = vld [vmem:[#allocation39_spill] sm:$0xff] }
 0x732   :  { %19983 = vmatprep.subr.mxu0 %v24532_v49  ;;  %20010 = vmatprep.subr.mxu1 %v24532_v49 }
 0x733   :  { %19984 = vmatpush3.msra.mxu0 %v24555_v39  ;;  %20011 = vmatpush3.msra.mxu1 %v24556_v25 }
 0x734   :  { %19985 = vmatprep.subr.mxu0 %v24532_v49  ;;  %20012 = vmatprep.subr.mxu1 %v24532_v49 }
 0x735   :  { %19986 = vmatpush3.msra.mxu0 %v24557_v35  ;;  %20013 = vmatpush3.msra.mxu1 %v24558_v47 }
 0x736   :  { %19987 = vmatprep.subr.mxu0 %v24532_v49  ;;  %20014 = vmatprep.mubr.msk.f32.mxu1 %vm21722_vm0, %v24532_v49 }
 0x737   :  { %19988 = vmatpush3.msra.mxu0 %v24559_v37  ;;  %20024 = vmatprep.subr.mxu1 %v24532_v49 }
 0x738   :  { %19990 = vmatmul.mubr.f32.vlgmr.msra.gmra.mxu0 %v22571_v19  ;;  %20003 = vmatprep.subr.mxu0 %v24532_v49 }
 0x739   :  { %20004 = vmatpush3.msra.mxu0 %v21781_v4  ;;  %20007 = vmatprep.mubr.msk.f32.mxu0 %vm21722_vm0, %v24532_v49 }
 0x73a   :  { %20005 = vmatprep.subr.mxu0 %v24532_v49 }
 0x73b   :  { %20006 = vmatpush3.msra.mxu0 %v21783_v5 }
 0x73c   :  { %20017 = vmatprep.subr.mxu0 %v24532_v49 }
 0x7a2   :  { %v3706_v47 = vpop.f32.mrf.mxu1 }
 0x7a4   :  { %v19826_v35 = vpop.f32.mrf.mxu1 }
 0x7aa   :  { %v3863_v37 = vpop.f32.mrf.mxu1 }
 0x7ab   :  { %v3615_v25 = vpop.f32.mrf.mxu0 }
 0x7ac   :  { %v3707_v39 = vadd.f32 %v3706_v47, %v3615_v25  ;;  %v19848_v7 = vpop.f32.mrf.mxu1 }
 0x7ad   :  { %v19815_v19 = vpop.f32.mrf.mxu0 }
 0x7b3   :  { %v3786_v20 = vpop.f32.mrf.mxu0 }
 0x7b4   :  { %v3787_v51 = vadd.f32 %v3786_v20, %v3707_v39  ;;  %v4021_v16 = vpop.f32.mrf.mxu1 }
 0x7b5   :  { %v19837_v18 = vpop.f32.mrf.mxu0 }
 0x7b6   :  { %v19870_v22 = vpop.f32.mrf.mxu1  ;;  %v3864_v17 = vadd.f32 %v3863_v37, %v3787_v51 }
 0x7bd   :  { %v3946_v48 = vpop.f32.mrf.mxu0 }
 0x7be   :  { %v3947_v2 = vadd.f32 %v3946_v48, %v3864_v17  ;;  %v4195_v1 = vpop.f32.mrf.mxu1 }
 0x7bf   :  { %v19859_v63 = vpop.f32.mrf.mxu0 }
 0x7c0   :  { %v19892_v31 = vpop.f32.mrf.mxu1  ;;  %v22661_v11 = vadd.f32 %v4021_v16, %v3947_v2 }
 0x7c7   :  { %v4104_v23 = vpop.f32.mrf.mxu0 }
 0x7c8   :  { %v4196_v35 = vadd.f32 %v4195_v1, %v4104_v23  ;;  %v4352_v52 = vpop.f32.mrf.mxu1 }
 0x7c9   :  { %v19881_v50 = vpop.f32.mrf.mxu0 }
 0x7ca   :  { %v19914_v47 = vpop.f32.mrf.mxu1 }
 0x7d1   :  { %v4275_v7 = vpop.f32.mrf.mxu0 }
 0x7d2   :  { %v4276_v25 = vadd.f32 %v4275_v7, %v4196_v35  ;;  %v4510_v19 = vpop.f32.mrf.mxu1 }
 0x7d3   :  { %v19903_v20 = vpop.f32.mrf.mxu0 }
 0x7d4   :  { %v19936_v39 = vpop.f32.mrf.mxu1  ;;  %v4353_v18 = vadd.f32 %v4352_v52, %v4276_v25 }
 0x7db   :  { %v4435_v22 = vpop.f32.mrf.mxu0 }
 0x7dc   :  { %v4436_v51 = vadd.f32 %v4435_v22, %v4353_v18  ;;  %v4688_v37 = vpop.f32.mrf.mxu1 }
 0x7dd   :  { %v19925_v17 = vpop.f32.mrf.mxu0 }
 0x7de   :  { %v19958_v48 = vpop.f32.mrf.mxu1  ;;  %v22663_v63 = vadd.f32 %v4510_v19, %v4436_v51 }
 0x7e5   :  { %v4597_v2 = vpop.f32.mrf.mxu0 }
 0x7e6   :  { %v4845_v31 = vpop.f32.mrf.mxu1  ;;  %v4689_v47 = vadd.f32 %v4688_v37, %v4597_v2  ;;  %v5038_v37 = vld [vmem:[%s24383_s0 + $0x2] sm:$0x1] }
 0x7e7   :  { %v19947_v16 = vpop.f32.mrf.mxu0 }
 0x7e8   :  { %v19980_v1 = vpop.f32.mrf.mxu1 }
 0x7e9   :  { %v5039_v1 = vld [vmem:[%s24383_s0 + $0x5] sm:$0x1] }
 0x7ef   :  { %v4768_v23 = vpop.f32.mrf.mxu0 }
 0x7f0   :  { %v5003_v50 = vpop.f32.mrf.mxu1  ;;  %v4769_v7 = vadd.f32 %v4768_v23, %v4689_v47 }
 0x7f1   :  { %v19969_v46 = vpop.f32.mrf.mxu0 }
 0x7f2   :  { %v20002_v35 = vpop.f32.mrf.mxu1  ;;  %v4846_v20 = vadd.f32 %v4845_v31, %v4769_v7 }
 0x7f8   :  { %v4928_v39 = vpop.f32.mrf.mxu0 }
 0x7f9   :  { %v4929_v52 = vadd.f32 %v4928_v39, %v4846_v20 }
 0x7fa   :  { %v19991_v25 = vpop.f32.mrf.mxu0 }
 0x7fb   :  { %v5004_v18 = vadd.f32 %v5003_v50, %v4929_v52 }
 0x7fd   :  { %v5014_v22 = vrot.slane %v5004_v18, %v22336_v53 }
 0x7ff   :  { %v5015_v17 = vcombine.high %v5014_v22, %v5014_v22  ;;  %v5022_v19 = vrot.slane %v5014_v22, %v22336_v53 }
 0x801   :  { %v5029_v51 = vrot.slane %v5015_v17, %v22336_v53  ;;  %v5032_v48 = vadd.f32 %v5022_v19, %v22342_v24 }
 0x803   :  { %v5033_v16 = vadd.f32 %v5029_v51, %v22342_v24  ;;  %21543 = vtanh.f32 %v5032_v48 }
 0x805   :  { %21545 = vtanh.f32 %v5033_v16 }
 0x810   :  { %v21544_v46 = vpop.eup %21543 }
 0x811   :  { %v5036_v2 = vmul.f32 2.0, %v21544_v46 }
 0x812   :  { %v21546_v31 = vpop.eup %21545 }
 0x813   :  { %v5037_v23 = vmul.f32 2.0, %v21546_v31  ;;  %v5040_v50 = vmul.f32 %v5038_v37, %v5036_v2  ;;  %v24561_v31 = vld [vmem:[#allocation14_spill] sm:$0xff] }
 0x815   :  { %v5042_v47 = vmul.f32 %v5040_v50, %v5036_v2  ;;  %v5041_v35 = vmul.f32 %v5039_v1, %v5037_v23 }
 0x817   :  { %v5044_v7 = vmul.f32 %v5042_v47, %v5036_v2  ;;  %v5043_v20 = vmul.f32 %v5041_v35, %v5037_v23  ;;  %v24560_v2 = vld [vmem:[#allocation12_spill] sm:$0xff] }
 0x819   :  { %v5047_v24 = vsel %vm59_vm1, %v5044_v7, 0  ;;  %v5045_v25 = vmul.f32 %v5043_v20, %v5037_v23 }
 0x81a   :  { %v5116_v39 = vand.u32 4294901760, %v5047_v24 }
 0x81b   :  { %v5509_v17 = vsel %vm59_vm1, %v5045_v25, 0 }
 0x81c   :  { %v5117_v52 = vsub.f32 %v5047_v24, %v5116_v39  ;;  %20015 = vmatmul.mubr.f32.vlgmr.msra.gmra.mxu1 %v5116_v39  ;;  %v5578_v51 = vand.u32 4294901760, %v5509_v17 }
 0x81d   :  { %20025 = vmatpush3.msra.mxu1 %v21781_v4  ;;  %20028 = vmatprep.mubr.msk.f32.mxu1 %vm21722_vm0, %v24532_v49 }
 0x81e   :  { %20026 = vmatprep.subr.mxu1 %v24532_v49  ;;  %v5118_v18 = vand.u32 4294901760, %v5117_v52  ;;  %v5579_v48 = vsub.f32 %v5509_v17, %v5578_v51 }
 0x81f   :  { %20027 = vmatpush3.msra.mxu1 %v21783_v5 }
 0x820   :  { %20029 = vmatmul.mubr.f32.vlgmr.msra.gmra.mxu1 %v5118_v18  ;;  %20038 = vmatprep.subr.mxu1 %v24532_v49  ;;  %v5119_v22 = vsub.f32 %v5117_v52, %v5118_v18  ;;  %v5580_v16 = vand.u32 4294901760, %v5579_v48 }
 0x821   :  { %20039 = vmatpush3.msra.mxu1 %v21781_v4  ;;  %20042 = vmatprep.mubr.msk.f32.mxu1 %vm21722_vm0, %v24532_v49 }
 0x822   :  { %20040 = vmatprep.subr.mxu1 %v24532_v49  ;;  %v5120_v19 = vand.u32 4294901760, %v5119_v22  ;;  %v5581_v46 = vsub.f32 %v5579_v48, %v5580_v16 }
 0x823   :  { %20041 = vmatpush3.msra.mxu1 %v21783_v5 }
 0x824   :  { %20008 = vmatmul.mubr.f32.vlgmr.msra.gmra.mxu0 %v5120_v19  ;;  %20043 = vmatmul.mubr.f32.vlgmr.msra.gmra.mxu1 %v5116_v39  ;;  %v5582_v37 = vand.u32 4294901760, %v5581_v46 }
 0x825   :  { %20052 = vmatprep.subr.mxu1 %v24532_v49  ;;  %20018 = vmatpush3.msra.mxu0 %v21790_v8 }
 0x826   :  { %20053 = vmatpush3.msra.mxu1 %v21873_v36  ;;  %20019 = vmatprep.subr.mxu0 %v24532_v49 }
 0x827   :  { %20054 = vmatprep.subr.mxu1 %v24532_v49  ;;  %20020 = vmatpush3.msra.mxu0 %v21793_v9 }
 0x828   :  { %20021 = vmatprep.mubr.msk.f32.mxu0 %vm21722_vm0, %v24532_v49  ;;  %20055 = vmatpush3.msra.mxu1 %v21880_v38 }
 0x829   :  { %20056 = vmatprep.mubr.msk.f32.mxu1 %vm21722_vm0, %v24532_v49  ;;  %20022 = vmatmul.mubr.f32.vlgmr.msra.gmra.mxu0 %v5117_v52 }
 0x82a   :  { %20031 = vmatprep.subr.mxu0 %v24532_v49  ;;  %20057 = vmatmul.mubr.f32.vlgmr.msra.gmra.mxu1 %v5578_v51 }
 0x82b   :  { %20066 = vmatprep.subr.mxu1 %v24532_v49  ;;  %20032 = vmatpush3.msra.mxu0 %v21802_v12 }
 0x82c   :  { %20067 = vmatpush3.msra.mxu1 %v21819_v21  ;;  %20033 = vmatprep.subr.mxu0 %v24532_v49 }
 0x82d   :  { %20068 = vmatprep.subr.mxu1 %v24532_v49  ;;  %20034 = vmatpush3.msra.mxu0 %v21805_v13 }
 0x82e   :  { %20035 = vmatprep.mubr.msk.f32.mxu0 %vm21722_vm0, %v24532_v49  ;;  %20069 = vmatpush3.msra.mxu1 %v21827_v26 }
 0x82f   :  { %20070 = vmatprep.mubr.msk.f32.mxu1 %vm21722_vm0, %v24532_v49  ;;  %20036 = vmatmul.mubr.f32.vlgmr.msra.gmra.mxu0 %v5116_v39 }
 0x830   :  { %20045 = vmatprep.subr.mxu0 %v24532_v49  ;;  %20071 = vmatmul.mubr.f32.vlgmr.msra.gmra.mxu1 %v5580_v16 }
 0x831   :  { %20080 = vmatprep.subr.mxu1 %v24532_v49  ;;  %20046 = vmatpush3.msra.mxu0 %v21819_v21 }
 0x832   :  { %20081 = vmatpush3.msra.mxu1 %v21819_v21  ;;  %20047 = vmatprep.subr.mxu0 %v24532_v49 }
 0x833   :  { %20082 = vmatprep.subr.mxu1 %v24532_v49  ;;  %20048 = vmatpush3.msra.mxu0 %v21827_v26 }
 0x834   :  { %20049 = vmatprep.mubr.msk.f32.mxu0 %vm21722_vm0, %v24532_v49  ;;  %20083 = vmatpush3.msra.mxu1 %v21827_v26 }
 0x835   :  { %20084 = vmatprep.mubr.msk.f32.mxu1 %vm21722_vm0, %v24532_v49  ;;  %20050 = vmatmul.mubr.f32.vlgmr.msra.gmra.mxu0 %v5582_v37 }
 0x836   :  { %20059 = vmatprep.subr.mxu0 %v24532_v49  ;;  %20085 = vmatmul.mubr.f32.vlgmr.msra.gmra.mxu1 %v5578_v51 }
 0x837   :  { %20060 = vmatpush3.msra.mxu0 %v21832_v27  ;;  %20063 = vmatprep.mubr.msk.f32.mxu0 %vm21722_vm0, %v24532_v49 }
 0x838   :  { %20061 = vmatprep.subr.mxu0 %v24532_v49  ;;  %20098 = vmatprep.subr.mxu1 %v24532_v49 }
 0x839   :  { %20062 = vmatpush3.msra.mxu0 %v21840_v29  ;;  %20099 = vmatpush3.msra.mxu1 %v21985_v3 }
 0x83a   :  { %20064 = vmatmul.mubr.f32.vlgmr.msra.gmra.mxu0 %v5579_v48  ;;  %20073 = vmatprep.subr.mxu0 %v24532_v49 }
 0x83b   :  { %20074 = vmatpush3.msra.mxu0 %v21848_v30  ;;  %20077 = vmatprep.mubr.msk.f32.mxu0 %vm21722_vm0, %v24532_v49 }
 0x83c   :  { %20075 = vmatprep.subr.mxu0 %v24532_v49  ;;  %20100 = vmatprep.subr.mxu1 %v24532_v49 }
 0x83d   :  { %20076 = vmatpush3.msra.mxu0 %v21854_v32  ;;  %20101 = vmatpush3.msra.mxu1 %v21987_v6 }
 0x83e   :  { %20078 = vmatmul.mubr.f32.vlgmr.msra.gmra.mxu0 %v5578_v51  ;;  %20102 = vmatprep.subr.mxu1 %v24532_v49 }
 0x83f   :  { %20103 = vmatpush3.msra.mxu1 %v24560_v2  ;;  %20087 = vmatprep.subr.mxu0 %v24532_v49 }
 0x840   :  { %20104 = vmatprep.subr.mxu1 %v24532_v49  ;;  %20106 = vmatprep.mubr.msk.f32.mxu1 %vm21722_vm0, %v24532_v49 }
 0x841   :  { %20105 = vmatpush3.msra.mxu1 %v24561_v31  ;;  %20088 = vmatpush3.msra.mxu0 %v21949_v54 }
 0x842   :  { %20120 = vmatprep.subr.mxu1 %v24532_v49  ;;  %20089 = vmatprep.subr.mxu0 %v24532_v49 }
 0x843   :  { %20090 = vmatpush3.msra.mxu0 %v21951_v55  ;;  %20095 = vmatprep.mubr.msk.f32.mxu0 %vm21722_vm0, %v24532_v49 }
 0x844   :  { %20091 = vmatprep.subr.mxu0 %v24532_v49 }
 0x845   :  { %20092 = vmatpush3.msra.mxu0 %v21953_v56 }
 0x846   :  { %20093 = vmatprep.subr.mxu0 %v24532_v49 }
 0x847   :  { %20094 = vmatpush3.msra.mxu0 %v21998_v14 }
 0x848   :  { %20109 = vmatprep.subr.mxu0 %v24532_v49 }
 0x8dc   :  { %v5203_v1 = vpop.f32.mrf.mxu1 }
 0x8de   :  { %v20016_v23 = vpop.f32.mrf.mxu1 }
 0x8e0   :  { %v5354_v50 = vpop.f32.mrf.mxu1 }
 0x8e2   :  { %v20030_v47 = vpop.f32.mrf.mxu1 }
 0x8e4   :  { %v5122_v35 = vpop.f32.mrf.mxu0  ;;  %v5504_v7 = vpop.f32.mrf.mxu1 }
 0x8e5   :  { %v5123_v20 = vadd.f32 %v5122_v35, %v22661_v11 }
 0x8e6   :  { %v20009_v24 = vpop.f32.mrf.mxu0  ;;  %v20044_v39 = vpop.f32.mrf.mxu1 }
 0x8e7   :  { %v5204_v52 = vadd.f32 %v5203_v1, %v5123_v20 }
 0x8e9   :  { %v5279_v25 = vpop.f32.mrf.mxu0 }
 0x8ea   :  { %v5280_v18 = vadd.f32 %v5279_v25, %v5204_v52  ;;  %v5665_v22 = vpop.f32.mrf.mxu1 }
 0x8eb   :  { %v20023_v17 = vpop.f32.mrf.mxu0 }
 0x8ec   :  { %v20058_v19 = vpop.f32.mrf.mxu1  ;;  %v5355_v51 = vadd.f32 %v5354_v50, %v5280_v18 }
 0x8ef   :  { %v5431_v48 = vpop.f32.mrf.mxu0 }
 0x8f0   :  { %v5432_v16 = vadd.f32 %v5431_v48, %v5355_v51  ;;  %v5816_v46 = vpop.f32.mrf.mxu1 }
 0x8f1   :  { %v20037_v37 = vpop.f32.mrf.mxu0 }
 0x8f2   :  { %v5505_v23 = vadd.f32 %v5504_v7, %v5432_v16  ;;  %v20072_v31 = vpop.f32.mrf.mxu1 }
 0x8f4   :  { %v5970_v47 = vadd.f32 %v22440_v44, %v5505_v23 }
 0x8f5   :  { %v5584_v2 = vpop.f32.mrf.mxu0 }
 0x8f6   :  { %21547 = vtanh.f32 %v5970_v47  ;;  %v5585_v11 = vadd.f32 %v5584_v2, %v22663_v63  ;;  %v5966_v35 = vpop.f32.mrf.mxu1  ;;  %v18509_v63 = vmul.f32 -1.442695, %v5970_v47 }
 0x8f7   :  { %v20051_v1 = vpop.f32.mrf.mxu0 }
 0x8f8   :  { %v20086_v20 = vpop.f32.mrf.mxu1  ;;  %v5666_v24 = vadd.f32 %v5665_v22, %v5585_v11 }
 0x8fa   :  { %v5741_v39 = vpop.f32.mrf.mxu0 }
 0x8fb   :  { %v5742_v52 = vadd.f32 %v5741_v39, %v5666_v24 }
 0x8fc   :  { %v20065_v25 = vpop.f32.mrf.mxu0 }
 0x8fd   :  { %v5817_v50 = vadd.f32 %v5816_v46, %v5742_v52 }
 0x8fe   :  { %v5893_v18 = vpop.f32.mrf.mxu0 }
 0x8ff   :  { %v5894_v17 = vadd.f32 %v5893_v18, %v5817_v50 }
 0x900   :  { %v20079_v19 = vpop.f32.mrf.mxu0 }
 0x901   :  { %v5967_v51 = vadd.f32 %v5966_v35, %v5894_v17 }
 0x903   :  { %v21548_v7 = vpop.eup %21547  ;;  %v5971_v31 = vadd.f32 %v22447_v45, %v5967_v51 }
 0x904   :  { %5990 = vrot.lane.b32.xlu0 %v21548_v7, %s21723_s18 }
 0x905   :  { %21549 = vtanh.f32 %v5971_v31  ;;  %v18510_v2 = vmul.f32 -1.442695, %v5971_v31 }
 0x906   :  { %21551 = vpow2.f32 %v18509_v63 }
 0x907   :  { %21553 = vpow2.f32 %v18510_v2 }
 0x912   :  { %v21550_v44 = vpop.eup %21549 }
 0x913   :  { %5992 = vrot.lane.b32.xlu1 %v21550_v44, %s21723_s18  ;;  %v21552_v22 = vpop.eup %21551 }
 0x914   :  { %v5978_v48 = vadd.f32 1.0, %v21552_v22  ;;  %v21554_v16 = vpop.eup %21553 }
 0x915   :  { %v5979_v46 = vadd.f32 1.0, %v21554_v16 }
 0x916   :  { %21555 = vrcp.f32 %v5978_v48 }
 0x917   :  { %21557 = vrcp.f32 %v5979_v46 }
 0x923   :  { %v21556_v37 = vpop.eup %21555 }
 0x924   :  { %v21558_v45 = vpop.eup %21557  ;;  %v5986_v47 = vmul.f32 %v21556_v37, %v22455_v10 }
 0x925   :  { %v5987_v39 = vmul.f32 %v21558_v45, %v22459_v43 }
 0x976   :  { %v5991_v23 = vpop.permute.xlu0 %5990 }
 0x977   :  { %v5996_v11 = vmul.f32 %v21556_v37, %v5991_v23 }
 0x979   :  { %6000 = vrot.lane.b32.xlu0 %v5996_v11, %s21724_s19 }
 0x985   :  { %v5993_v35 = vpop.permute.xlu1 %5992 }
 0x986   :  { %v5997_v1 = vmul.f32 %v21558_v45, %v5993_v35 }
 0x988   :  { %6002 = vrot.lane.b32.xlu1 %v5997_v1, %s21724_s19  ;;  %v24563_v1 = vld [vmem:[#allocation18_spill] sm:$0xff] }
 0x9eb   :  { %v6001_v20 = vpop.permute.xlu0 %6000 }
 0x9ec   :  { %v22767_v24 = vadd.f32 %v6001_v20, %v5986_v47  ;;  %v24564_v20 = vld [vmem:[#allocation20_spill] sm:$0xff] }
 0x9ee   :  { %21559 = vtanh.f32 %v22767_v24 }
 0x9fa   :  { %v6003_v52 = vpop.permute.xlu1 %6002 }
 0x9fb   :  { %v21560_v25 = vpop.eup %21559  ;;  %v22771_v50 = vadd.f32 %v6003_v52, %v5987_v39  ;;  %v24565_v39 = vld [vmem:[#allocation17_spill] sm:$0xff]  ;;  %v24566_v52 = vld [vmem:[#allocation19_spill] sm:$0xff] }
 0x9fc   :  { %6012 = vrot.lane.b32.xlu0 %v21560_v25, %s21723_s18 }
 0x9fd   :  { %21561 = vtanh.f32 %v22771_v50  ;;  %v7008_v19 = vrot.slane %v22771_v50, 7 }
 0x9ff   :  { %v7009_v43 = vsel %vm2024_vm2, %v7008_v19, %v22767_v24 }
 0xa0a   :  { %v21562_v18 = vpop.eup %21561 }
 0xa0b   :  { %6014 = vrot.lane.b32.xlu1 %v21562_v18, %s21723_s18  ;;  %v24567_v18 = vld [vmem:[#allocation22_spill] sm:$0xff] }
 0xa6e   :  { %v6013_v17 = vpop.permute.xlu0 %6012 }
 0xa6f   :  { %v6018_v10 = vmul.f32 %v21556_v37, %v6013_v17  ;;  %v24568_v17 = vld [vmem:[#allocation24_spill] sm:$0xff] }
 0xa71   :  { %6021 = vrot.lane.b32.xlu0 %v6018_v10, %s21724_s19 }
 0xa75   :  { %7010 = vrot.lane.b32.xlu0 %v7009_v43, %s21725_s20  ;;  %v24569_v43 = vld [vmem:[#allocation21_spill] sm:$0xff] }
 0xa7d   :  { %v6015_v51 = vpop.permute.xlu1 %6014 }
 0xa7e   :  { %v22781_v7 = vmul.f32 %v21558_v45, %v6015_v51  ;;  %v24570_v51 = vld [vmem:[#allocation40_spill] sm:$0xff] }
 0xa80   :  { %24562 = vst [vmem:[#allocation13_spill] sm:$0xff] %v22781_v7  ;;  %6517 = vrot.lane.b32.xlu1 %v22781_v7, %s21724_s19  ;;  %v24586_v7 = vld [vmem:[#allocation36_spill] sm:$0xff] }
 0xae3   :  { %v6022_v31 = vpop.permute.xlu0 %6021 }
 0xae4   :  { %6024 = vst.msk [vmem:[#allocation5 + $0x2] sm:$0x1] %vm1036_vm3, %v6022_v31  ;;  %v6030_v44 = vsel %vm1044_vm4, %v6022_v31, 0  ;;  %v24571_v31 = vld [vmem:[#allocation23_spill] sm:$0xff] }
 0xae5   :  { %v6101_v63 = vand.u32 4294901760, %v6030_v44 }
 0xae7   :  { %v6102_v2 = vsub.f32 %v6030_v44, %v6101_v63  ;;  %20107 = vmatmul.mubr.f32.vlgmr.msra.gmra.mxu1 %v6101_v63  ;;  %v7011_v25 = vpop.permute.xlu0 %7010  ;;  %v24572_v44 = vld [vmem:[#allocation41_spill] sm:$0xff] }
 0xae8   :  { %20121 = vmatpush3.msra.mxu1 %v21949_v54  ;;  %20128 = vmatprep.mubr.msk.f32.mxu1 %vm21722_vm0, %v24532_v49  ;;  %v7012_v10 = vsel %vm1044_vm4, %v7011_v25, 0  ;;  %v24581_v25 = vld [vmem:[#allocation30_spill] sm:$0xff] }
 0xae9   :  { %v6103_v22 = vand.u32 4294901760, %v6102_v2  ;;  %20122 = vmatprep.subr.mxu1 %v24532_v49  ;;  %v22883_v19 = vand.u32 4294901760, %v7012_v10 }
 0xaea   :  { %20123 = vmatpush3.msra.mxu1 %v21951_v55 }
 0xaeb   :  { %v6104_v48 = vsub.f32 %v6102_v2, %v6103_v22  ;;  %20124 = vmatprep.subr.mxu1 %v24532_v49 }
 0xaec   :  { %20125 = vmatpush3.msra.mxu1 %v21953_v56 }
 0xaed   :  { %20126 = vmatprep.subr.mxu1 %v24532_v49  ;;  %v6105_v16 = vand.u32 4294901760, %v6104_v48  ;;  %v24575_v48 = vld [vmem:[#allocation26_spill] sm:$0xff] }
 0xaee   :  { %20127 = vmatpush3.msra.mxu1 %v21998_v14 }
 0xaef   :  { %20129 = vmatmul.mubr.f32.vlgmr.msra.gmra.mxu1 %v6103_v22  ;;  %20142 = vmatprep.subr.mxu1 %v24532_v49  ;;  %v24574_v22 = vld [vmem:[#allocation42_spill] sm:$0xff] }
 0xaf0   :  { %20096 = vmatmul.mubr.f32.vlgmr.msra.gmra.mxu0 %v6105_v16  ;;  %20143 = vmatpush3.msra.mxu1 %v21949_v54  ;;  %v24576_v16 = vld [vmem:[#allocation43_spill] sm:$0xff] }
 0xaf1   :  { %20110 = vmatpush3.msra.mxu0 %v21956_v57  ;;  %20144 = vmatprep.subr.mxu1 %v24532_v49 }
 0xaf2   :  { %20111 = vmatprep.subr.mxu0 %v24532_v49  ;;  %20145 = vmatpush3.msra.mxu1 %v21951_v55  ;;  %v6518_v46 = vpop.permute.xlu1 %6517 }
 0xaf3   :  { %20112 = vmatpush3.msra.mxu0 %v21959_v58  ;;  %20146 = vmatprep.subr.mxu1 %v24532_v49  ;;  %v6519_v37 = vsel %vm1044_vm4, %v6518_v46, 0 }
 0xaf4   :  { %20113 = vmatprep.subr.mxu0 %v24532_v49  ;;  %20147 = vmatpush3.msra.mxu1 %v21953_v56  ;;  %v22817_v23 = vand.u32 4294901760, %v6519_v37 }
 0xaf5   :  { %20114 = vmatpush3.msra.mxu0 %v21962_v59  ;;  %20148 = vmatprep.subr.mxu1 %v24532_v49 }
 0xaf6   :  { %20115 = vmatprep.subr.mxu0 %v24532_v49  ;;  %20117 = vmatprep.mubr.msk.f32.mxu0 %vm21722_vm0, %v24532_v49  ;;  %v6591_v11 = vsub.f32 %v6519_v37, %v22817_v23  ;;  %v24577_v37 = vld [vmem:[#allocation28_spill] sm:$0xff] }
 0xaf7   :  { %20116 = vmatpush3.msra.mxu0 %v22001_v15  ;;  %20149 = vmatpush3.msra.mxu1 %v21998_v14 }
 0xaf8   :  { %20150 = vmatprep.mubr.msk.f32.mxu1 %vm21722_vm0, %v24532_v49  ;;  %20118 = vmatmul.mubr.f32.vlgmr.msra.gmra.mxu0 %v6102_v2  ;;  %v6592_v45 = vand.u32 4294901760, %v6591_v11  ;;  %v24573_v2 = vld [vmem:[#allocation25_spill] sm:$0xff] }
 0xaf9   :  { %20131 = vmatprep.subr.mxu0 %v24532_v49  ;;  %20151 = vmatmul.mubr.f32.vlgmr.msra.gmra.mxu1 %v6101_v63 }
 0xafa   :  { %20164 = vmatprep.subr.mxu1 %v24532_v49  ;;  %20132 = vmatpush3.msra.mxu0 %v21967_v60  ;;  %v6593_v35 = vsub.f32 %v6591_v11, %v6592_v45 }
 0xafb   :  { %20165 = vmatpush3.msra.mxu1 %v22094_v28  ;;  %20133 = vmatprep.subr.mxu0 %v24532_v49 }
 0xafc   :  { %20166 = vmatprep.subr.mxu1 %v24532_v49  ;;  %20134 = vmatpush3.msra.mxu0 %v21970_v61  ;;  %v6594_v47 = vand.u32 4294901760, %v6593_v35 }
 0xafd   :  { %20167 = vmatpush3.msra.mxu1 %v22102_v34  ;;  %20135 = vmatprep.subr.mxu0 %v24532_v49 }
 0xafe   :  { %20168 = vmatprep.subr.mxu1 %v24532_v49  ;;  %20136 = vmatpush3.msra.mxu0 %v21973_v62 }
 0xaff   :  { %20169 = vmatpush3.msra.mxu1 %v22112_v40  ;;  %20137 = vmatprep.subr.mxu0 %v24532_v49 }
 0xb00   :  { %20170 = vmatprep.subr.mxu1 %v24532_v49  ;;  %20138 = vmatpush3.msra.mxu0 %v24534_v0 }
 0xb01   :  { %20139 = vmatprep.mubr.msk.f32.mxu0 %vm21722_vm0, %v24532_v49  ;;  %20171 = vmatpush3.msra.mxu1 %v24535_v33 }
 0xb02   :  { %20172 = vmatprep.mubr.msk.f32.mxu1 %vm21722_vm0, %v24532_v49  ;;  %20140 = vmatmul.mubr.f32.vlgmr.msra.gmra.mxu0 %v6101_v63  ;;  %v7084_v63 = vsub.f32 %v7012_v10, %v22883_v19  ;;  %v24582_v10 = vld [vmem:[#allocation32_spill] sm:$0xff] }
 0xb03   :  { %20153 = vmatprep.subr.mxu0 %v24532_v49  ;;  %20173 = vmatmul.mubr.f32.vlgmr.msra.gmra.mxu1 %v22817_v23 }
 0xb04   :  { %20186 = vmatprep.subr.mxu1 %v24532_v49  ;;  %20154 = vmatpush3.msra.mxu0 %v22031_v41  ;;  %v7085_v46 = vand.u32 4294901760, %v7084_v63 }
 0xb05   :  { %20187 = vmatpush3.msra.mxu1 %v22031_v41  ;;  %20155 = vmatprep.subr.mxu0 %v24532_v49 }
 0xb06   :  { %20188 = vmatprep.subr.mxu1 %v24532_v49  ;;  %20156 = vmatpush3.msra.mxu0 %v24536_v42 }
 0xb07   :  { %20189 = vmatpush3.msra.mxu1 %v24536_v42  ;;  %20157 = vmatprep.subr.mxu0 %v24532_v49 }
 0xb08   :  { %20190 = vmatprep.subr.mxu1 %v24532_v49  ;;  %20158 = vmatpush3.msra.mxu0 %v24563_v1 }
 0xb09   :  { %20191 = vmatpush3.msra.mxu1 %v24563_v1  ;;  %20159 = vmatprep.subr.mxu0 %v24532_v49 }
 0xb0a   :  { %20192 = vmatprep.subr.mxu1 %v24532_v49  ;;  %20160 = vmatpush3.msra.mxu0 %v24564_v20 }
 0xb0b   :  { %20161 = vmatprep.mubr.msk.f32.mxu0 %vm21722_vm0, %v24532_v49  ;;  %20193 = vmatpush3.msra.mxu1 %v24564_v20 }
 0xb0c   :  { %20194 = vmatprep.mubr.msk.f32.mxu1 %vm21722_vm0, %v24532_v49  ;;  %20162 = vmatmul.mubr.f32.vlgmr.msra.gmra.mxu0 %v6594_v47  ;;  %v24580_v47 = vld [vmem:[#allocation33_spill] sm:$0xff] }
 0xb0d   :  { %20175 = vmatprep.subr.mxu0 %v24532_v49  ;;  %20195 = vmatmul.mubr.f32.vlgmr.msra.gmra.mxu1 %v6592_v45  ;;  %v24578_v45 = vld [vmem:[#allocation29_spill] sm:$0xff] }
 0xb0e   :  { %20208 = vmatprep.subr.mxu1 %v24532_v49  ;;  %20176 = vmatpush3.msra.mxu0 %v24565_v39 }
 0xb0f   :  { %20209 = vmatpush3.msra.mxu1 %v22031_v41  ;;  %20177 = vmatprep.subr.mxu0 %v24532_v49 }
 0xb10   :  { %20210 = vmatprep.subr.mxu1 %v24532_v49  ;;  %20178 = vmatpush3.msra.mxu0 %v24566_v52 }
 0xb11   :  { %20211 = vmatpush3.msra.mxu1 %v24536_v42  ;;  %20179 = vmatprep.subr.mxu0 %v24532_v49 }
 0xb12   :  { %20212 = vmatprep.subr.mxu1 %v24532_v49  ;;  %20180 = vmatpush3.msra.mxu0 %v24567_v18 }
 0xb13   :  { %20213 = vmatpush3.msra.mxu1 %v24563_v1  ;;  %20181 = vmatprep.subr.mxu0 %v24532_v49 }
 0xb14   :  { %20214 = vmatprep.subr.mxu1 %v24532_v49  ;;  %20182 = vmatpush3.msra.mxu0 %v24568_v17 }
 0xb15   :  { %20183 = vmatprep.mubr.msk.f32.mxu0 %vm21722_vm0, %v24532_v49  ;;  %20215 = vmatpush3.msra.mxu1 %v24564_v20 }
 0xb16   :  { %20216 = vmatprep.mubr.msk.f32.mxu1 %vm21722_vm0, %v24532_v49  ;;  %20184 = vmatmul.mubr.f32.vlgmr.msra.gmra.mxu0 %v6591_v11  ;;  %v7086_v11 = vsub.f32 %v7084_v63, %v7085_v46 }
 0xb17   :  { %20197 = vmatprep.subr.mxu0 %v24532_v49  ;;  %20217 = vmatmul.mubr.f32.vlgmr.msra.gmra.mxu1 %v22817_v23 }
 0xb18   :  { %20230 = vmatprep.subr.mxu1 %v24532_v49  ;;  %20198 = vmatpush3.msra.mxu0 %v24569_v43  ;;  %v7087_v35 = vand.u32 4294901760, %v7086_v11  ;;  %v24583_v11 = vld [vmem:[#allocation35_spill] sm:$0xff] }
 0xb19   :  { %20231 = vmatpush3.msra.mxu1 %v24570_v51  ;;  %20199 = vmatprep.subr.mxu0 %v24532_v49 }
 0xb1a   :  { %20232 = vmatprep.subr.mxu1 %v24532_v49  ;;  %20200 = vmatpush3.msra.mxu0 %v24571_v31 }
 0xb1b   :  { %20233 = vmatpush3.msra.mxu1 %v24572_v44  ;;  %20201 = vmatprep.subr.mxu0 %v24532_v49 }
 0xb1c   :  { %20234 = vmatprep.subr.mxu1 %v24532_v49  ;;  %20202 = vmatpush3.msra.mxu0 %v24573_v2 }
 0xb1d   :  { %20235 = vmatpush3.msra.mxu1 %v24574_v22  ;;  %20203 = vmatprep.subr.mxu0 %v24532_v49 }
 0xb1e   :  { %20236 = vmatprep.subr.mxu1 %v24532_v49  ;;  %20204 = vmatpush3.msra.mxu0 %v24575_v48 }
 0xb1f   :  { %20205 = vmatprep.mubr.msk.f32.mxu0 %vm21722_vm0, %v24532_v49  ;;  %20237 = vmatpush3.msra.mxu1 %v24576_v16 }
 0xb20   :  { %20238 = vmatprep.mubr.msk.f32.mxu1 %vm21722_vm0, %v24532_v49  ;;  %20206 = vmatmul.mubr.f32.vlgmr.msra.gmra.mxu0 %v22817_v23  ;;  %v24579_v23 = vld [vmem:[#allocation31_spill] sm:$0xff] }
 0xb21   :  { %20219 = vmatprep.subr.mxu0 %v24532_v49  ;;  %20239 = vmatmul.mubr.f32.vlgmr.msra.gmra.mxu1 %v22883_v19 }
 0xb22   :  { %20252 = vmatprep.subr.mxu1 %v24532_v49  ;;  %20220 = vmatpush3.msra.mxu0 %v24577_v37 }
 0xb23   :  { %20253 = vmatpush3.msra.mxu1 %v24577_v37  ;;  %20221 = vmatprep.subr.mxu0 %v24532_v49 }
 0xb24   :  { %20254 = vmatprep.subr.mxu1 %v24532_v49  ;;  %20222 = vmatpush3.msra.mxu0 %v24578_v45 }
 0xb25   :  { %20255 = vmatpush3.msra.mxu1 %v24578_v45  ;;  %20223 = vmatprep.subr.mxu0 %v24532_v49 }
 0xb26   :  { %20256 = vmatprep.subr.mxu1 %v24532_v49  ;;  %20224 = vmatpush3.msra.mxu0 %v24579_v23 }
 0xb27   :  { %20257 = vmatpush3.msra.mxu1 %v24579_v23  ;;  %20225 = vmatprep.subr.mxu0 %v24532_v49 }
 0xb28   :  { %20258 = vmatprep.subr.mxu1 %v24532_v49  ;;  %20226 = vmatpush3.msra.mxu0 %v24580_v47 }
 0xb29   :  { %20227 = vmatprep.mubr.msk.f32.mxu0 %vm21722_vm0, %v24532_v49  ;;  %20259 = vmatpush3.msra.mxu1 %v24580_v47 }
 0xb2a   :  { %20260 = vmatprep.mubr.msk.f32.mxu1 %vm21722_vm0, %v24532_v49  ;;  %20228 = vmatmul.mubr.f32.vlgmr.msra.gmra.mxu0 %v7087_v35  ;;  %v24585_v35 = vld [vmem:[#allocation34_spill] sm:$0xff] }
 0xb2b   :  { %20241 = vmatprep.subr.mxu0 %v24532_v49  ;;  %20261 = vmatmul.mubr.f32.vlgmr.msra.gmra.mxu1 %v7085_v46  ;;  %v24584_v46 = vld [vmem:[#allocation37_spill] sm:$0xff] }
 0xb2c   :  { %20274 = vmatprep.subr.mxu1 %v24532_v49  ;;  %20242 = vmatpush3.msra.mxu0 %v24581_v25 }
 0xb2d   :  { %20275 = vmatpush3.msra.mxu1 %v24577_v37  ;;  %20243 = vmatprep.subr.mxu0 %v24532_v49 }
 0xb2e   :  { %20276 = vmatprep.subr.mxu1 %v24532_v49  ;;  %20244 = vmatpush3.msra.mxu0 %v24582_v10 }
 0xb2f   :  { %20277 = vmatpush3.msra.mxu1 %v24578_v45  ;;  %20245 = vmatprep.subr.mxu0 %v24532_v49 }
 0xb30   :  { %20278 = vmatprep.subr.mxu1 %v24532_v49  ;;  %20246 = vmatpush3.msra.mxu0 %v24583_v11  ;;  %v24589_v11 = vld [vmem:[#allocation9_spill] sm:$0xff] }
 0xb31   :  { %20279 = vmatpush3.msra.mxu1 %v24579_v23  ;;  %20247 = vmatprep.subr.mxu0 %v24532_v49 }
 0xb32   :  { %20280 = vmatprep.subr.mxu1 %v24532_v49  ;;  %20248 = vmatpush3.msra.mxu0 %v24584_v46  ;;  %v24587_v46 = vld [vmem:[#allocation8_spill] sm:$0xff] }
 0xb33   :  { %20249 = vmatprep.mubr.msk.f32.mxu0 %vm21722_vm0, %v24532_v49  ;;  %20281 = vmatpush3.msra.mxu1 %v24580_v47 }
 0xb34   :  { %20282 = vmatprep.mubr.msk.f32.mxu1 %vm21722_vm0, %v24532_v49  ;;  %20250 = vmatmul.mubr.f32.vlgmr.msra.gmra.mxu0 %v7084_v63  ;;  %v24588_v63 = vld [vmem:[#allocation38_spill] sm:$0xff] }
 0xb35   :  { %20263 = vmatprep.subr.mxu0 %v24532_v49  ;;  %20283 = vmatmul.mubr.f32.vlgmr.msra.gmra.mxu1 %v22883_v19 }
 0xb36   :  { %20264 = vmatpush3.msra.mxu0 %v24585_v35  ;;  %20271 = vmatprep.mubr.msk.f32.mxu0 %vm21722_vm0, %v24532_v49  ;;  %v24590_v35 = vld [vmem:[#allocation39_spill] sm:$0xff] }
 0xb37   :  { %20265 = vmatprep.subr.mxu0 %v24532_v49  ;;  %20292 = vmatprep.subr.mxu1 %v24532_v49 }
 0xb38   :  { %20266 = vmatpush3.msra.mxu0 %v24586_v7  ;;  %20293 = vmatpush3.msra.mxu1 %v24587_v46 }
 0xb39   :  { %20267 = vmatprep.subr.mxu0 %v24532_v49  ;;  %20294 = vmatprep.subr.mxu1 %v24532_v49 }
 0xb3a   :  { %20268 = vmatpush3.msra.mxu0 %v24588_v63  ;;  %20295 = vmatpush3.msra.mxu1 %v24589_v11 }
 0xb3b   :  { %20269 = vmatprep.subr.mxu0 %v24532_v49  ;;  %20296 = vmatprep.mubr.msk.f32.mxu1 %vm21722_vm0, %v24532_v49 }
 0xb3c   :  { %20270 = vmatpush3.msra.mxu0 %v24590_v35  ;;  %20306 = vmatprep.subr.mxu1 %v24532_v49 }
 0xb3d   :  { %20272 = vmatmul.mubr.f32.vlgmr.msra.gmra.mxu0 %v22883_v19  ;;  %20285 = vmatprep.subr.mxu0 %v24532_v49 }
 0xb3e   :  { %20286 = vmatpush3.msra.mxu0 %v21781_v4  ;;  %20289 = vmatprep.mubr.msk.f32.mxu0 %vm21722_vm0, %v24532_v49 }
 0xb3f   :  { %20287 = vmatprep.subr.mxu0 %v24532_v49 }
 0xb40   :  { %20288 = vmatpush3.msra.mxu0 %v21783_v5 }
 0xb41   :  { %20299 = vmatprep.subr.mxu0 %v24532_v49 }
 0xba7   :  { %v6198_v11 = vpop.f32.mrf.mxu1 }
 0xba9   :  { %v20108_v63 = vpop.f32.mrf.mxu1 }
 0xbaf   :  { %v6355_v35 = vpop.f32.mrf.mxu1 }
 0xbb0   :  { %v6107_v46 = vpop.f32.mrf.mxu0 }
 0xbb1   :  { %v6199_v7 = vadd.f32 %v6198_v11, %v6107_v46  ;;  %v20130_v10 = vpop.f32.mrf.mxu1 }
 0xbb2   :  { %v20097_v19 = vpop.f32.mrf.mxu0 }
 0xbb8   :  { %v6278_v25 = vpop.f32.mrf.mxu0 }
 0xbb9   :  { %v6279_v47 = vadd.f32 %v6278_v25, %v6199_v7  ;;  %v6513_v23 = vpop.f32.mrf.mxu1 }
 0xbba   :  { %v20119_v45 = vpop.f32.mrf.mxu0 }
 0xbbb   :  { %v20152_v37 = vpop.f32.mrf.mxu1  ;;  %v6356_v16 = vadd.f32 %v6355_v35, %v6279_v47 }
 0xbc2   :  { %v6438_v48 = vpop.f32.mrf.mxu0 }
 0xbc3   :  { %v6439_v22 = vadd.f32 %v6438_v48, %v6356_v16  ;;  %v6687_v2 = vpop.f32.mrf.mxu1 }
 0xbc4   :  { %v20141_v44 = vpop.f32.mrf.mxu0 }
 0xbc5   :  { %v20174_v31 = vpop.f32.mrf.mxu1  ;;  %v22973_v51 = vadd.f32 %v6513_v23, %v6439_v22 }
 0xbcc   :  { %v6596_v43 = vpop.f32.mrf.mxu0 }
 0xbcd   :  { %v6688_v63 = vadd.f32 %v6687_v2, %v6596_v43  ;;  %v6844_v17 = vpop.f32.mrf.mxu1 }
 0xbce   :  { %v20163_v18 = vpop.f32.mrf.mxu0 }
 0xbcf   :  { %v20196_v11 = vpop.f32.mrf.mxu1 }
 0xbd6   :  { %v6767_v10 = vpop.f32.mrf.mxu0 }
 0xbd7   :  { %v6768_v46 = vadd.f32 %v6767_v10, %v6688_v63  ;;  %v7002_v19 = vpop.f32.mrf.mxu1 }
 0xbd8   :  { %v20185_v7 = vpop.f32.mrf.mxu0 }
 0xbd9   :  { %v20218_v25 = vpop.f32.mrf.mxu1  ;;  %v6845_v45 = vadd.f32 %v6844_v17, %v6768_v46 }
 0xbe0   :  { %v6927_v37 = vpop.f32.mrf.mxu0 }
 0xbe1   :  { %v6928_v47 = vadd.f32 %v6927_v37, %v6845_v45  ;;  %v7180_v35 = vpop.f32.mrf.mxu1 }
 0xbe2   :  { %v20207_v48 = vpop.f32.mrf.mxu0 }
 0xbe3   :  { %v20240_v16 = vpop.f32.mrf.mxu1  ;;  %v22975_v44 = vadd.f32 %v7002_v19, %v6928_v47 }
 0xbe4   :  { %v22983_v16 = vld [vmem:[%s24388_s5] sm:$0x1] }
 0xbea   :  { %v7089_v31 = vpop.f32.mrf.mxu0 }
 0xbeb   :  { %v7337_v22 = vpop.f32.mrf.mxu1  ;;  %v7181_v11 = vadd.f32 %v7180_v35, %v7089_v31 }
 0xbec   :  { %v20229_v23 = vpop.f32.mrf.mxu0 }
 0xbed   :  { %v20262_v43 = vpop.f32.mrf.mxu1 }
 0xbf4   :  { %v7260_v2 = vpop.f32.mrf.mxu0 }
 0xbf5   :  { %v7495_v18 = vpop.f32.mrf.mxu1  ;;  %v7261_v10 = vadd.f32 %v7260_v2, %v7181_v11  ;;  %v7531_v2 = vld [vmem:[%s24383_s0 + $0x4] sm:$0x1] }
 0xbf6   :  { %v20251_v52 = vpop.f32.mrf.mxu0 }
 0xbf7   :  { %v20284_v63 = vpop.f32.mrf.mxu1  ;;  %v7338_v7 = vadd.f32 %v7337_v22, %v7261_v10  ;;  %v7530_v22 = vld [vmem:[%s24383_s0 + $0x3] sm:$0x1] }
 0xbfd   :  { %v7420_v25 = vpop.f32.mrf.mxu0 }
 0xbfe   :  { %v7421_v17 = vadd.f32 %v7420_v25, %v7338_v7 }
 0xbff   :  { %v20273_v46 = vpop.f32.mrf.mxu0 }
 0xc00   :  { %v7496_v45 = vadd.f32 %v7495_v18, %v7421_v17 }
 0xc02   :  { %v7506_v37 = vrot.slane %v7496_v45, %v22336_v53 }
 0xc04   :  { %v7507_v48 = vcombine.high %v7506_v37, %v7506_v37  ;;  %v7514_v19 = vrot.slane %v7506_v37, %v22336_v53 }
 0xc06   :  { %v7521_v47 = vrot.slane %v7507_v48, %v22336_v53  ;;  %v7524_v52 = vadd.f32 %v22983_v16, %v7514_v19 }
 0xc08   :  { %v7525_v35 = vadd.f32 %v22983_v16, %v7521_v47  ;;  %21563 = vtanh.f32 %v7524_v52 }
 0xc0a   :  { %21565 = vtanh.f32 %v7525_v35 }
 0xc15   :  { %v21564_v31 = vpop.eup %21563 }
 0xc16   :  { %v7528_v23 = vmul.f32 2.0, %v21564_v31 }
 0xc17   :  { %v21566_v43 = vpop.eup %21565 }
 0xc18   :  { %v7529_v18 = vmul.f32 2.0, %v21566_v43  ;;  %v7532_v11 = vmul.f32 %v7530_v22, %v7528_v23 }
 0xc1a   :  { %v7534_v63 = vmul.f32 %v7532_v11, %v7528_v23  ;;  %v7533_v10 = vmul.f32 %v7531_v2, %v7529_v18  ;;  %v24591_v2 = vld [vmem:[#allocation12_spill] sm:$0xff] }
 0xc1c   :  { %v7536_v7 = vmul.f32 %v7534_v63, %v7528_v23  ;;  %v7535_v25 = vmul.f32 %v7533_v10, %v7529_v18 }
 0xc1e   :  { %v7539_v17 = vsel %vm59_vm1, %v7536_v7, 0  ;;  %v7537_v37 = vmul.f32 %v7535_v25, %v7529_v18  ;;  %v24592_v18 = vld [vmem:[#allocation14_spill] sm:$0xff] }
 0xc1f   :  { %v7608_v46 = vand.u32 4294901760, %v7539_v17 }
 0xc20   :  { %v8001_v47 = vsel %vm59_vm1, %v7537_v37, 0 }
 0xc21   :  { %v7609_v45 = vsub.f32 %v7539_v17, %v7608_v46  ;;  %20297 = vmatmul.mubr.f32.vlgmr.msra.gmra.mxu1 %v7608_v46  ;;  %v8070_v35 = vand.u32 4294901760, %v8001_v47 }
 0xc22   :  { %20307 = vmatpush3.msra.mxu1 %v21781_v4  ;;  %20310 = vmatprep.mubr.msk.f32.mxu1 %vm21722_vm0, %v24532_v49 }
 0xc23   :  { %20308 = vmatprep.subr.mxu1 %v24532_v49  ;;  %v7610_v48 = vand.u32 4294901760, %v7609_v45  ;;  %v8071_v31 = vsub.f32 %v8001_v47, %v8070_v35 }
 0xc24   :  { %20309 = vmatpush3.msra.mxu1 %v21783_v5 }
 0xc25   :  { %20311 = vmatmul.mubr.f32.vlgmr.msra.gmra.mxu1 %v7610_v48  ;;  %20320 = vmatprep.subr.mxu1 %v24532_v49  ;;  %v7611_v19 = vsub.f32 %v7609_v45, %v7610_v48  ;;  %v8072_v22 = vand.u32 4294901760, %v8071_v31 }
 0xc26   :  { %20321 = vmatpush3.msra.mxu1 %v21781_v4  ;;  %20324 = vmatprep.mubr.msk.f32.mxu1 %vm21722_vm0, %v24532_v49 }
 0xc27   :  { %20322 = vmatprep.subr.mxu1 %v24532_v49  ;;  %v7612_v52 = vand.u32 4294901760, %v7611_v19  ;;  %v8073_v23 = vsub.f32 %v8071_v31, %v8072_v22 }
 0xc28   :  { %20323 = vmatpush3.msra.mxu1 %v21783_v5 }
 0xc29   :  { %20290 = vmatmul.mubr.f32.vlgmr.msra.gmra.mxu0 %v7612_v52  ;;  %20325 = vmatmul.mubr.f32.vlgmr.msra.gmra.mxu1 %v7608_v46  ;;  %v8074_v43 = vand.u32 4294901760, %v8073_v23 }
 0xc2a   :  { %20334 = vmatprep.subr.mxu1 %v24532_v49  ;;  %20300 = vmatpush3.msra.mxu0 %v21790_v8 }
 0xc2b   :  { %20335 = vmatpush3.msra.mxu1 %v21873_v36  ;;  %20301 = vmatprep.subr.mxu0 %v24532_v49 }
 0xc2c   :  { %20336 = vmatprep.subr.mxu1 %v24532_v49  ;;  %20302 = vmatpush3.msra.mxu0 %v21793_v9 }
 0xc2d   :  { %20303 = vmatprep.mubr.msk.f32.mxu0 %vm21722_vm0, %v24532_v49  ;;  %20337 = vmatpush3.msra.mxu1 %v21880_v38 }
 0xc2e   :  { %20338 = vmatprep.mubr.msk.f32.mxu1 %vm21722_vm0, %v24532_v49  ;;  %20304 = vmatmul.mubr.f32.vlgmr.msra.gmra.mxu0 %v7609_v45 }
 0xc2f   :  { %20313 = vmatprep.subr.mxu0 %v24532_v49  ;;  %20339 = vmatmul.mubr.f32.vlgmr.msra.gmra.mxu1 %v8070_v35 }
 0xc30   :  { %20348 = vmatprep.subr.mxu1 %v24532_v49  ;;  %20314 = vmatpush3.msra.mxu0 %v21802_v12 }
 0xc31   :  { %20349 = vmatpush3.msra.mxu1 %v21819_v21  ;;  %20315 = vmatprep.subr.mxu0 %v24532_v49 }
 0xc32   :  { %20350 = vmatprep.subr.mxu1 %v24532_v49  ;;  %20316 = vmatpush3.msra.mxu0 %v21805_v13 }
 0xc33   :  { %20317 = vmatprep.mubr.msk.f32.mxu0 %vm21722_vm0, %v24532_v49  ;;  %20351 = vmatpush3.msra.mxu1 %v21827_v26 }
 0xc34   :  { %20352 = vmatprep.mubr.msk.f32.mxu1 %vm21722_vm0, %v24532_v49  ;;  %20318 = vmatmul.mubr.f32.vlgmr.msra.gmra.mxu0 %v7608_v46 }
 0xc35   :  { %20327 = vmatprep.subr.mxu0 %v24532_v49  ;;  %20353 = vmatmul.mubr.f32.vlgmr.msra.gmra.mxu1 %v8072_v22 }
 0xc36   :  { %20362 = vmatprep.subr.mxu1 %v24532_v49  ;;  %20328 = vmatpush3.msra.mxu0 %v21819_v21 }
 0xc37   :  { %20363 = vmatpush3.msra.mxu1 %v21819_v21  ;;  %20329 = vmatprep.subr.mxu0 %v24532_v49 }
 0xc38   :  { %20364 = vmatprep.subr.mxu1 %v24532_v49  ;;  %20330 = vmatpush3.msra.mxu0 %v21827_v26 }
 0xc39   :  { %20331 = vmatprep.mubr.msk.f32.mxu0 %vm21722_vm0, %v24532_v49  ;;  %20365 = vmatpush3.msra.mxu1 %v21827_v26 }
 0xc3a   :  { %20366 = vmatprep.mubr.msk.f32.mxu1 %vm21722_vm0, %v24532_v49  ;;  %20332 = vmatmul.mubr.f32.vlgmr.msra.gmra.mxu0 %v8074_v43 }
 0xc3b   :  { %20341 = vmatprep.subr.mxu0 %v24532_v49  ;;  %20367 = vmatmul.mubr.f32.vlgmr.msra.gmra.mxu1 %v8070_v35 }
 0xc3c   :  { %20342 = vmatpush3.msra.mxu0 %v21832_v27  ;;  %20345 = vmatprep.mubr.msk.f32.mxu0 %vm21722_vm0, %v24532_v49 }
 0xc3d   :  { %20343 = vmatprep.subr.mxu0 %v24532_v49  ;;  %20380 = vmatprep.subr.mxu1 %v24532_v49 }
 0xc3e   :  { %20344 = vmatpush3.msra.mxu0 %v21840_v29  ;;  %20381 = vmatpush3.msra.mxu1 %v21985_v3 }
 0xc3f   :  { %20346 = vmatmul.mubr.f32.vlgmr.msra.gmra.mxu0 %v8071_v31  ;;  %20355 = vmatprep.subr.mxu0 %v24532_v49 }
 0xc40   :  { %20356 = vmatpush3.msra.mxu0 %v21848_v30  ;;  %20359 = vmatprep.mubr.msk.f32.mxu0 %vm21722_vm0, %v24532_v49 }
 0xc41   :  { %20357 = vmatprep.subr.mxu0 %v24532_v49  ;;  %20382 = vmatprep.subr.mxu1 %v24532_v49 }
 0xc42   :  { %20358 = vmatpush3.msra.mxu0 %v21854_v32  ;;  %20383 = vmatpush3.msra.mxu1 %v21987_v6 }
 0xc43   :  { %20360 = vmatmul.mubr.f32.vlgmr.msra.gmra.mxu0 %v8070_v35  ;;  %20384 = vmatprep.subr.mxu1 %v24532_v49 }
 0xc44   :  { %20385 = vmatpush3.msra.mxu1 %v24591_v2  ;;  %20369 = vmatprep.subr.mxu0 %v24532_v49 }
 0xc45   :  { %20386 = vmatprep.subr.mxu1 %v24532_v49  ;;  %20388 = vmatprep.mubr.msk.f32.mxu1 %vm21722_vm0, %v24532_v49 }
 0xc46   :  { %20387 = vmatpush3.msra.mxu1 %v24592_v18  ;;  %20370 = vmatpush3.msra.mxu0 %v21949_v54 }
 0xc47   :  { %20402 = vmatprep.subr.mxu1 %v24532_v49  ;;  %20371 = vmatprep.subr.mxu0 %v24532_v49 }
 0xc48   :  { %20372 = vmatpush3.msra.mxu0 %v21951_v55  ;;  %20377 = vmatprep.mubr.msk.f32.mxu0 %vm21722_vm0, %v24532_v49 }
 0xc49   :  { %20373 = vmatprep.subr.mxu0 %v24532_v49 }
 0xc4a   :  { %20374 = vmatpush3.msra.mxu0 %v21953_v56 }
 0xc4b   :  { %20375 = vmatprep.subr.mxu0 %v24532_v49 }
 0xc4c   :  { %20376 = vmatpush3.msra.mxu0 %v21998_v14 }
 0xc4d   :  { %20391 = vmatprep.subr.mxu0 %v24532_v49 }
 0xce1   :  { %v7695_v11 = vpop.f32.mrf.mxu1 }
 0xce3   :  { %v20298_v63 = vpop.f32.mrf.mxu1 }
 0xce5   :  { %v7846_v10 = vpop.f32.mrf.mxu1 }
 0xce7   :  { %v20312_v7 = vpop.f32.mrf.mxu1 }
 0xce8   :  { %v23079_v7 = vld [vmem:[%s24386_s3] sm:$0x1] }
 0xce9   :  { %v7614_v25 = vpop.f32.mrf.mxu0  ;;  %v7996_v17 = vpop.f32.mrf.mxu1 }
 0xcea   :  { %v7615_v46 = vadd.f32 %v7614_v25, %v22973_v51 }
 0xceb   :  { %v20291_v45 = vpop.f32.mrf.mxu0  ;;  %v20326_v37 = vpop.f32.mrf.mxu1 }
 0xcec   :  { %v7696_v48 = vadd.f32 %v7695_v11, %v7615_v46 }
 0xcee   :  { %v7771_v19 = vpop.f32.mrf.mxu0 }
 0xcef   :  { %v7772_v47 = vadd.f32 %v7771_v19, %v7696_v48  ;;  %v8157_v52 = vpop.f32.mrf.mxu1 }
 0xcf0   :  { %v20305_v35 = vpop.f32.mrf.mxu0 }
 0xcf1   :  { %v20340_v31 = vpop.f32.mrf.mxu1  ;;  %v7847_v22 = vadd.f32 %v7846_v10, %v7772_v47 }
 0xcf4   :  { %v7923_v23 = vpop.f32.mrf.mxu0 }
 0xcf5   :  { %v7924_v43 = vadd.f32 %v7923_v23, %v7847_v22  ;;  %v8308_v18 = vpop.f32.mrf.mxu1  ;;  %v23086_v23 = vld [vmem:[%s24386_s3 + $0x1] sm:$0x1] }
 0xcf6   :  { %v20319_v2 = vpop.f32.mrf.mxu0 }
 0xcf7   :  { %v7997_v63 = vadd.f32 %v7996_v17, %v7924_v43  ;;  %v20354_v6 = vpop.f32.mrf.mxu1 }
 0xcf9   :  { %v8462_v51 = vadd.f32 %v23079_v7, %v7997_v63 }
 0xcfa   :  { %v8076_v11 = vpop.f32.mrf.mxu0 }
 0xcfb   :  { %21567 = vtanh.f32 %v8462_v51  ;;  %v8077_v25 = vadd.f32 %v8076_v11, %v22975_v44  ;;  %v8458_v46 = vpop.f32.mrf.mxu1  ;;  %v18511_v43 = vmul.f32 -1.442695, %v8462_v51 }
 0xcfc   :  { %v20333_v45 = vpop.f32.mrf.mxu0 }
 0xcfd   :  { %v20368_v10 = vpop.f32.mrf.mxu1  ;;  %v8158_v37 = vadd.f32 %v8157_v52, %v8077_v25 }
 0xcff   :  { %v8233_v48 = vpop.f32.mrf.mxu0 }
 0xd00   :  { %v8234_v19 = vadd.f32 %v8233_v48, %v8158_v37 }
 0xd01   :  { %v20347_v2 = vpop.f32.mrf.mxu0 }
 0xd02   :  { %v8309_v17 = vadd.f32 %v8308_v18, %v8234_v19 }
 0xd03   :  { %v8385_v6 = vpop.f32.mrf.mxu0 }
 0xd04   :  { %v8386_v47 = vadd.f32 %v8385_v6, %v8309_v17 }
 0xd05   :  { %v20361_v35 = vpop.f32.mrf.mxu0 }
 0xd06   :  { %v8459_v31 = vadd.f32 %v8458_v46, %v8386_v47 }
 0xd08   :  { %v21568_v22 = vpop.eup %21567  ;;  %v8463_v44 = vadd.f32 %v23086_v23, %v8459_v31 }
 0xd09   :  { %8482 = vrot.lane.b32.xlu1 %v21568_v22, %s21723_s18 }
 0xd0a   :  { %21569 = vtanh.f32 %v8463_v44  ;;  %v18512_v18 = vmul.f32 -1.442695, %v8463_v44 }
 0xd0b   :  { %21571 = vpow2.f32 %v18511_v43 }
 0xd0c   :  { %21573 = vpow2.f32 %v18512_v18 }
 0xd17   :  { %v21570_v52 = vpop.eup %21569 }
 0xd18   :  { %8484 = vrot.lane.b32.xlu0 %v21570_v52, %s21723_s18  ;;  %v21572_v63 = vpop.eup %21571 }
 0xd19   :  { %v8470_v11 = vadd.f32 1.0, %v21572_v63  ;;  %v21574_v25 = vpop.eup %21573 }
 0xd1a   :  { %v8471_v46 = vadd.f32 1.0, %v21574_v25 }
 0xd1b   :  { %21575 = vrcp.f32 %v8470_v11 }
 0xd1c   :  { %21577 = vrcp.f32 %v8471_v46 }
 0xd28   :  { %v21576_v45 = vpop.eup %21575 }
 0xd29   :  { %v21578_v48 = vpop.eup %21577  ;;  %v8478_v51 = vmul.f32 %v21576_v45, %v22767_v24 }
 0xd2a   :  { %v8479_v47 = vmul.f32 %v21578_v48, %v22771_v50 }
 0xd7b   :  { %v8483_v10 = vpop.permute.xlu1 %8482 }
 0xd7c   :  { %v8488_v37 = vmul.f32 %v21576_v45, %v8483_v10 }
 0xd7e   :  { %8492 = vrot.lane.b32.xlu1 %v8488_v37, %s21724_s19 }
 0xd8a   :  { %v8485_v19 = vpop.permute.xlu0 %8484 }
 0xd8b   :  { %v8489_v2 = vmul.f32 %v21578_v48, %v8485_v19 }
 0xd8d   :  { %8494 = vrot.lane.b32.xlu0 %v8489_v2, %s21724_s19 }
 0xdf0   :  { %v8493_v17 = vpop.permute.xlu1 %8492 }
 0xdf1   :  { %v23094_v6 = vadd.f32 %v8493_v17, %v8478_v51 }
 0xdf3   :  { %21579 = vtanh.f32 %v23094_v6 }
 0xdff   :  { %v8495_v35 = vpop.permute.xlu0 %8494 }
 0xe00   :  { %v21580_v31 = vpop.eup %21579  ;;  %v23098_v22 = vadd.f32 %v8495_v35, %v8479_v47 }
 0xe01   :  { %8504 = vrot.lane.b32.xlu1 %v21580_v31, %s21723_s18 }
 0xe02   :  { %21581 = vtanh.f32 %v23098_v22  ;;  %v9500_v43 = vrot.slane %v23098_v22, 7 }
 0xe04   :  { %v9501_v50 = vsel %vm2024_vm2, %v9500_v43, %v23094_v6  ;;  %v24596_v43 = vld [vmem:[#allocation24_spill] sm:$0xff] }
 0xe0f   :  { %v21582_v44 = vpop.eup %21581 }
 0xe10   :  { %8506 = vrot.lane.b32.xlu0 %v21582_v44, %s21723_s18  ;;  %v24594_v44 = vld [vmem:[#allocation19_spill] sm:$0xff] }
 0xe73   :  { %v8505_v52 = vpop.permute.xlu1 %8504 }
 0xe74   :  { %v8510_v24 = vmul.f32 %v21576_v45, %v8505_v52 }
 0xe76   :  { %8513 = vrot.lane.b32.xlu1 %v8510_v24, %s21724_s19  ;;  %v24595_v24 = vld [vmem:[#allocation22_spill] sm:$0xff] }
 0xe7a   :  { %9502 = vrot.lane.b32.xlu1 %v9501_v50, %s21725_s20 }
 0xe82   :  { %v8507_v18 = vpop.permute.xlu0 %8506 }
 0xe83   :  { %v23108_v63 = vmul.f32 %v21578_v48, %v8507_v18 }
 0xe85   :  { %24593 = vst [vmem:[#allocation27_spill] sm:$0xff] %v23108_v63  ;;  %9009 = vrot.lane.b32.xlu0 %v23108_v63, %s21724_s19  ;;  %v24609_v63 = vld [vmem:[#allocation30_spill] sm:$0xff] }
 0xee8   :  { %v8514_v11 = vpop.permute.xlu1 %8513 }
 0xee9   :  { %8516 = vst.msk [vmem:[#allocation5 + $0x3] sm:$0x1] %vm1036_vm3, %v8514_v11  ;;  %v8522_v25 = vsel %vm1044_vm4, %v8514_v11, 0  ;;  %v24597_v11 = vld [vmem:[#allocation21_spill] sm:$0xff] }
 0xeea   :  { %v8593_v46 = vand.u32 4294901760, %v8522_v25 }
 0xeec   :  { %v8594_v45 = vsub.f32 %v8522_v25, %v8593_v46  ;;  %20389 = vmatmul.mubr.f32.vlgmr.msra.gmra.mxu1 %v8593_v46  ;;  %v9503_v52 = vpop.permute.xlu1 %9502  ;;  %v24598_v25 = vld [vmem:[#allocation40_spill] sm:$0xff] }
 0xeed   :  { %20403 = vmatpush3.msra.mxu1 %v21949_v54  ;;  %20410 = vmatprep.mubr.msk.f32.mxu1 %vm21722_vm0, %v24532_v49  ;;  %v9504_v50 = vsel %vm1044_vm4, %v9503_v52, 0 }
 0xeee   :  { %v8595_v10 = vand.u32 4294901760, %v8594_v45  ;;  %20404 = vmatprep.subr.mxu1 %v24532_v49  ;;  %v23210_v18 = vand.u32 4294901760, %v9504_v50 }
 0xeef   :  { %20405 = vmatpush3.msra.mxu1 %v21951_v55 }
 0xef0   :  { %v8596_v37 = vsub.f32 %v8594_v45, %v8595_v10  ;;  %20406 = vmatprep.subr.mxu1 %v24532_v49 }
 0xef1   :  { %20407 = vmatpush3.msra.mxu1 %v21953_v56 }
 0xef2   :  { %20408 = vmatprep.subr.mxu1 %v24532_v49  ;;  %v8597_v48 = vand.u32 4294901760, %v8596_v37  ;;  %v24601_v37 = vld [vmem:[#allocation25_spill] sm:$0xff] }
 0xef3   :  { %20409 = vmatpush3.msra.mxu1 %v21998_v14 }
 0xef4   :  { %20411 = vmatmul.mubr.f32.vlgmr.msra.gmra.mxu1 %v8595_v10  ;;  %20424 = vmatprep.subr.mxu1 %v24532_v49  ;;  %v9576_v10 = vsub.f32 %v9504_v50, %v23210_v18  ;;  %v24608_v50 = vld [vmem:[#allocation33_spill] sm:$0xff] }
 0xef5   :  { %20378 = vmatmul.mubr.f32.vlgmr.msra.gmra.mxu0 %v8597_v48  ;;  %20425 = vmatpush3.msra.mxu1 %v21949_v54  ;;  %v24602_v48 = vld [vmem:[#allocation42_spill] sm:$0xff] }
 0xef6   :  { %20392 = vmatpush3.msra.mxu0 %v21956_v57  ;;  %20426 = vmatprep.subr.mxu1 %v24532_v49 }
 0xef7   :  { %20393 = vmatprep.subr.mxu0 %v24532_v49  ;;  %20427 = vmatpush3.msra.mxu1 %v21951_v55  ;;  %v9010_v19 = vpop.permute.xlu0 %9009 }
 0xef8   :  { %20394 = vmatpush3.msra.mxu0 %v21959_v58  ;;  %20428 = vmatprep.subr.mxu1 %v24532_v49  ;;  %v9011_v2 = vsel %vm1044_vm4, %v9010_v19, 0  ;;  %v24603_v19 = vld [vmem:[#allocation26_spill] sm:$0xff] }
 0xef9   :  { %20395 = vmatprep.subr.mxu0 %v24532_v49  ;;  %20429 = vmatpush3.msra.mxu1 %v21953_v56  ;;  %v23144_v51 = vand.u32 4294901760, %v9011_v2 }
 0xefa   :  { %20396 = vmatpush3.msra.mxu0 %v21962_v59  ;;  %20430 = vmatprep.subr.mxu1 %v24532_v49 }
 0xefb   :  { %20397 = vmatprep.subr.mxu0 %v24532_v49  ;;  %20399 = vmatprep.mubr.msk.f32.mxu0 %vm21722_vm0, %v24532_v49  ;;  %v9083_v17 = vsub.f32 %v9011_v2, %v23144_v51  ;;  %v24604_v2 = vld [vmem:[#allocation43_spill] sm:$0xff] }
 0xefc   :  { %20398 = vmatpush3.msra.mxu0 %v22001_v15  ;;  %20431 = vmatpush3.msra.mxu1 %v21998_v14 }
 0xefd   :  { %20432 = vmatprep.mubr.msk.f32.mxu1 %vm21722_vm0, %v24532_v49  ;;  %20400 = vmatmul.mubr.f32.vlgmr.msra.gmra.mxu0 %v8594_v45  ;;  %v9084_v47 = vand.u32 4294901760, %v9083_v17  ;;  %v24600_v45 = vld [vmem:[#allocation41_spill] sm:$0xff] }
 0xefe   :  { %20413 = vmatprep.subr.mxu0 %v24532_v49  ;;  %20433 = vmatmul.mubr.f32.vlgmr.msra.gmra.mxu1 %v8593_v46 }
 0xeff   :  { %20446 = vmatprep.subr.mxu1 %v24532_v49  ;;  %20414 = vmatpush3.msra.mxu0 %v21967_v60  ;;  %v9085_v35 = vsub.f32 %v9083_v17, %v9084_v47 }
 0xf00   :  { %20447 = vmatpush3.msra.mxu1 %v22094_v28  ;;  %20415 = vmatprep.subr.mxu0 %v24532_v49 }
 0xf01   :  { %20448 = vmatprep.subr.mxu1 %v24532_v49  ;;  %20416 = vmatpush3.msra.mxu0 %v21970_v61  ;;  %v9086_v31 = vand.u32 4294901760, %v9085_v35 }
 0xf02   :  { %20449 = vmatpush3.msra.mxu1 %v22102_v34  ;;  %20417 = vmatprep.subr.mxu0 %v24532_v49 }
 0xf03   :  { %20450 = vmatprep.subr.mxu1 %v24532_v49  ;;  %20418 = vmatpush3.msra.mxu0 %v21973_v62 }
 0xf04   :  { %20451 = vmatpush3.msra.mxu1 %v22112_v40  ;;  %20419 = vmatprep.subr.mxu0 %v24532_v49 }
 0xf05   :  { %20452 = vmatprep.subr.mxu1 %v24532_v49  ;;  %20420 = vmatpush3.msra.mxu0 %v24534_v0 }
 0xf06   :  { %20421 = vmatprep.mubr.msk.f32.mxu0 %vm21722_vm0, %v24532_v49  ;;  %20453 = vmatpush3.msra.mxu1 %v24535_v33 }
 0xf07   :  { %20454 = vmatprep.mubr.msk.f32.mxu1 %vm21722_vm0, %v24532_v49  ;;  %20422 = vmatmul.mubr.f32.vlgmr.msra.gmra.mxu0 %v8593_v46  ;;  %v24599_v46 = vld [vmem:[#allocation23_spill] sm:$0xff] }
 0xf08   :  { %20435 = vmatprep.subr.mxu0 %v24532_v49  ;;  %20455 = vmatmul.mubr.f32.vlgmr.msra.gmra.mxu1 %v23144_v51 }
 0xf09   :  { %20468 = vmatprep.subr.mxu1 %v24532_v49  ;;  %20436 = vmatpush3.msra.mxu0 %v22031_v41 }
 0xf0a   :  { %20469 = vmatpush3.msra.mxu1 %v22031_v41  ;;  %20437 = vmatprep.subr.mxu0 %v24532_v49 }
 0xf0b   :  { %20470 = vmatprep.subr.mxu1 %v24532_v49  ;;  %20438 = vmatpush3.msra.mxu0 %v24536_v42 }
 0xf0c   :  { %20471 = vmatpush3.msra.mxu1 %v24536_v42  ;;  %20439 = vmatprep.subr.mxu0 %v24532_v49 }
 0xf0d   :  { %20472 = vmatprep.subr.mxu1 %v24532_v49  ;;  %20440 = vmatpush3.msra.mxu0 %v24563_v1 }
 0xf0e   :  { %20473 = vmatpush3.msra.mxu1 %v24563_v1  ;;  %20441 = vmatprep.subr.mxu0 %v24532_v49 }
 0xf0f   :  { %20474 = vmatprep.subr.mxu1 %v24532_v49  ;;  %20442 = vmatpush3.msra.mxu0 %v24564_v20 }
 0xf10   :  { %20443 = vmatprep.mubr.msk.f32.mxu0 %vm21722_vm0, %v24532_v49  ;;  %20475 = vmatpush3.msra.mxu1 %v24564_v20 }
 0xf11   :  { %20476 = vmatprep.mubr.msk.f32.mxu1 %vm21722_vm0, %v24532_v49  ;;  %20444 = vmatmul.mubr.f32.vlgmr.msra.gmra.mxu0 %v9086_v31  ;;  %v24606_v31 = vld [vmem:[#allocation29_spill] sm:$0xff] }
 0xf12   :  { %20457 = vmatprep.subr.mxu0 %v24532_v49  ;;  %20477 = vmatmul.mubr.f32.vlgmr.msra.gmra.mxu1 %v9084_v47  ;;  %v24605_v47 = vld [vmem:[#allocation28_spill] sm:$0xff] }
 0xf13   :  { %20490 = vmatprep.subr.mxu1 %v24532_v49  ;;  %20458 = vmatpush3.msra.mxu0 %v24565_v39 }
 0xf14   :  { %20491 = vmatpush3.msra.mxu1 %v22031_v41  ;;  %20459 = vmatprep.subr.mxu0 %v24532_v49 }
 0xf15   :  { %20492 = vmatprep.subr.mxu1 %v24532_v49  ;;  %20460 = vmatpush3.msra.mxu0 %v24594_v44 }
 0xf16   :  { %20493 = vmatpush3.msra.mxu1 %v24536_v42  ;;  %20461 = vmatprep.subr.mxu0 %v24532_v49 }
 0xf17   :  { %20494 = vmatprep.subr.mxu1 %v24532_v49  ;;  %20462 = vmatpush3.msra.mxu0 %v24595_v24 }
 0xf18   :  { %20495 = vmatpush3.msra.mxu1 %v24563_v1  ;;  %20463 = vmatprep.subr.mxu0 %v24532_v49 }
 0xf19   :  { %20496 = vmatprep.subr.mxu1 %v24532_v49  ;;  %20464 = vmatpush3.msra.mxu0 %v24596_v43 }
 0xf1a   :  { %20465 = vmatprep.mubr.msk.f32.mxu0 %vm21722_vm0, %v24532_v49  ;;  %20497 = vmatpush3.msra.mxu1 %v24564_v20 }
 0xf1b   :  { %20498 = vmatprep.mubr.msk.f32.mxu1 %vm21722_vm0, %v24532_v49  ;;  %20466 = vmatmul.mubr.f32.vlgmr.msra.gmra.mxu0 %v9083_v17  ;;  %v9577_v17 = vand.u32 4294901760, %v9576_v10 }
 0xf1c   :  { %20479 = vmatprep.subr.mxu0 %v24532_v49  ;;  %20499 = vmatmul.mubr.f32.vlgmr.msra.gmra.mxu1 %v23144_v51 }
 0xf1d   :  { %20512 = vmatprep.subr.mxu1 %v24532_v49  ;;  %20480 = vmatpush3.msra.mxu0 %v24597_v11  ;;  %v9578_v35 = vsub.f32 %v9576_v10, %v9577_v17 }
 0xf1e   :  { %20513 = vmatpush3.msra.mxu1 %v24598_v25  ;;  %20481 = vmatprep.subr.mxu0 %v24532_v49 }
 0xf1f   :  { %20514 = vmatprep.subr.mxu1 %v24532_v49  ;;  %20482 = vmatpush3.msra.mxu0 %v24599_v46  ;;  %v9579_v52 = vand.u32 4294901760, %v9578_v35  ;;  %v24610_v35 = vld [vmem:[#allocation32_spill] sm:$0xff] }
 0xf20   :  { %20515 = vmatpush3.msra.mxu1 %v24600_v45  ;;  %20483 = vmatprep.subr.mxu0 %v24532_v49 }
 0xf21   :  { %20516 = vmatprep.subr.mxu1 %v24532_v49  ;;  %20484 = vmatpush3.msra.mxu0 %v24601_v37 }
 0xf22   :  { %20517 = vmatpush3.msra.mxu1 %v24602_v48  ;;  %20485 = vmatprep.subr.mxu0 %v24532_v49 }
 0xf23   :  { %20518 = vmatprep.subr.mxu1 %v24532_v49  ;;  %20486 = vmatpush3.msra.mxu0 %v24603_v19 }
 0xf24   :  { %20487 = vmatprep.mubr.msk.f32.mxu0 %vm21722_vm0, %v24532_v49  ;;  %20519 = vmatpush3.msra.mxu1 %v24604_v2 }
 0xf25   :  { %20520 = vmatprep.mubr.msk.f32.mxu1 %vm21722_vm0, %v24532_v49  ;;  %20488 = vmatmul.mubr.f32.vlgmr.msra.gmra.mxu0 %v23144_v51  ;;  %v24607_v51 = vld [vmem:[#allocation31_spill] sm:$0xff] }
 0xf26   :  { %20501 = vmatprep.subr.mxu0 %v24532_v49  ;;  %20521 = vmatmul.mubr.f32.vlgmr.msra.gmra.mxu1 %v23210_v18 }
 0xf27   :  { %20534 = vmatprep.subr.mxu1 %v24532_v49  ;;  %20502 = vmatpush3.msra.mxu0 %v24605_v47 }
 0xf28   :  { %20535 = vmatpush3.msra.mxu1 %v24605_v47  ;;  %20503 = vmatprep.subr.mxu0 %v24532_v49 }
 0xf29   :  { %20536 = vmatprep.subr.mxu1 %v24532_v49  ;;  %20504 = vmatpush3.msra.mxu0 %v24606_v31 }
 0xf2a   :  { %20537 = vmatpush3.msra.mxu1 %v24606_v31  ;;  %20505 = vmatprep.subr.mxu0 %v24532_v49 }
 0xf2b   :  { %20538 = vmatprep.subr.mxu1 %v24532_v49  ;;  %20506 = vmatpush3.msra.mxu0 %v24607_v51 }
 0xf2c   :  { %20539 = vmatpush3.msra.mxu1 %v24607_v51  ;;  %20507 = vmatprep.subr.mxu0 %v24532_v49 }
 0xf2d   :  { %20540 = vmatprep.subr.mxu1 %v24532_v49  ;;  %20508 = vmatpush3.msra.mxu0 %v24608_v50 }
 0xf2e   :  { %20509 = vmatprep.mubr.msk.f32.mxu0 %vm21722_vm0, %v24532_v49  ;;  %20541 = vmatpush3.msra.mxu1 %v24608_v50 }
 0xf2f   :  { %20542 = vmatprep.mubr.msk.f32.mxu1 %vm21722_vm0, %v24532_v49  ;;  %20510 = vmatmul.mubr.f32.vlgmr.msra.gmra.mxu0 %v9579_v52  ;;  %v24611_v52 = vld [vmem:[#allocation35_spill] sm:$0xff] }
 0xf30   :  { %20523 = vmatprep.subr.mxu0 %v24532_v49  ;;  %20543 = vmatmul.mubr.f32.vlgmr.msra.gmra.mxu1 %v9577_v17  ;;  %v24612_v17 = vld [vmem:[#allocation37_spill] sm:$0xff] }
 0xf31   :  { %20556 = vmatprep.subr.mxu1 %v24532_v49  ;;  %20524 = vmatpush3.msra.mxu0 %v24609_v63  ;;  %v24617_v63 = vld [vmem:[#allocation9_spill] sm:$0xff] }
 0xf32   :  { %20557 = vmatpush3.msra.mxu1 %v24605_v47  ;;  %20525 = vmatprep.subr.mxu0 %v24532_v49 }
 0xf33   :  { %20558 = vmatprep.subr.mxu1 %v24532_v49  ;;  %20526 = vmatpush3.msra.mxu0 %v24610_v35  ;;  %v24615_v35 = vld [vmem:[#allocation8_spill] sm:$0xff] }
 0xf34   :  { %20559 = vmatpush3.msra.mxu1 %v24606_v31  ;;  %20527 = vmatprep.subr.mxu0 %v24532_v49 }
 0xf35   :  { %20560 = vmatprep.subr.mxu1 %v24532_v49  ;;  %20528 = vmatpush3.msra.mxu0 %v24611_v52  ;;  %v24613_v52 = vld [vmem:[#allocation34_spill] sm:$0xff] }
 0xf36   :  { %20561 = vmatpush3.msra.mxu1 %v24607_v51  ;;  %20529 = vmatprep.subr.mxu0 %v24532_v49 }
 0xf37   :  { %20562 = vmatprep.subr.mxu1 %v24532_v49  ;;  %20530 = vmatpush3.msra.mxu0 %v24612_v17  ;;  %v24614_v17 = vld [vmem:[#allocation36_spill] sm:$0xff] }
 0xf38   :  { %20531 = vmatprep.mubr.msk.f32.mxu0 %vm21722_vm0, %v24532_v49  ;;  %20563 = vmatpush3.msra.mxu1 %v24608_v50 }
 0xf39   :  { %20564 = vmatprep.mubr.msk.f32.mxu1 %vm21722_vm0, %v24532_v49  ;;  %20532 = vmatmul.mubr.f32.vlgmr.msra.gmra.mxu0 %v9576_v10  ;;  %v24616_v10 = vld [vmem:[#allocation38_spill] sm:$0xff] }
 0xf3a   :  { %20545 = vmatprep.subr.mxu0 %v24532_v49  ;;  %20565 = vmatmul.mubr.f32.vlgmr.msra.gmra.mxu1 %v23210_v18 }
 0xf3b   :  { %20546 = vmatpush3.msra.mxu0 %v24613_v52  ;;  %20553 = vmatprep.mubr.msk.f32.mxu0 %vm21722_vm0, %v24532_v49  ;;  %v24618_v52 = vld [vmem:[#allocation39_spill] sm:$0xff] }
 0xf3c   :  { %20547 = vmatprep.subr.mxu0 %v24532_v49  ;;  %20574 = vmatprep.subr.mxu1 %v24532_v49 }
 0xf3d   :  { %20548 = vmatpush3.msra.mxu0 %v24614_v17  ;;  %20575 = vmatpush3.msra.mxu1 %v24615_v35 }
 0xf3e   :  { %20549 = vmatprep.subr.mxu0 %v24532_v49  ;;  %20576 = vmatprep.subr.mxu1 %v24532_v49 }
 0xf3f   :  { %20550 = vmatpush3.msra.mxu0 %v24616_v10  ;;  %20577 = vmatpush3.msra.mxu1 %v24617_v63 }
 0xf40   :  { %20551 = vmatprep.subr.mxu0 %v24532_v49  ;;  %20578 = vmatprep.mubr.msk.f32.mxu1 %vm21722_vm0, %v24532_v49 }
 0xf41   :  { %20552 = vmatpush3.msra.mxu0 %v24618_v52  ;;  %20588 = vmatprep.subr.mxu1 %v24532_v49 }
 0xf42   :  { %20554 = vmatmul.mubr.f32.vlgmr.msra.gmra.mxu0 %v23210_v18  ;;  %20567 = vmatprep.subr.mxu0 %v24532_v49 }
 0xf43   :  { %20568 = vmatpush3.msra.mxu0 %v21781_v4  ;;  %20571 = vmatprep.mubr.msk.f32.mxu0 %vm21722_vm0, %v24532_v49 }
 0xf44   :  { %20569 = vmatprep.subr.mxu0 %v24532_v49 }
 0xf45   :  { %20570 = vmatpush3.msra.mxu0 %v21783_v5 }
 0xf46   :  { %20581 = vmatprep.subr.mxu0 %v24532_v49 }
 0xfac   :  { %v8690_v63 = vpop.f32.mrf.mxu1 }
 0xfae   :  { %v20390_v10 = vpop.f32.mrf.mxu1 }
 0xfb4   :  { %v8847_v52 = vpop.f32.mrf.mxu1 }
 0xfb5   :  { %v8599_v35 = vpop.f32.mrf.mxu0 }
 0xfb6   :  { %v8691_v17 = vadd.f32 %v8690_v63, %v8599_v35  ;;  %v20412_v50 = vpop.f32.mrf.mxu1 }
 0xfb7   :  { %v20379_v18 = vpop.f32.mrf.mxu0 }
 0xfbd   :  { %v8770_v51 = vpop.f32.mrf.mxu0 }
 0xfbe   :  { %v8771_v31 = vadd.f32 %v8770_v51, %v8691_v17  ;;  %v9005_v47 = vpop.f32.mrf.mxu1 }
 0xfbf   :  { %v20401_v2 = vpop.f32.mrf.mxu0 }
 0xfc0   :  { %v20434_v19 = vpop.f32.mrf.mxu1  ;;  %v8848_v48 = vadd.f32 %v8847_v52, %v8771_v31 }
 0xfc7   :  { %v8930_v37 = vpop.f32.mrf.mxu0 }
 0xfc8   :  { %v8931_v45 = vadd.f32 %v8930_v37, %v8848_v48  ;;  %v9179_v46 = vpop.f32.mrf.mxu1 }
 0xfc9   :  { %v20423_v25 = vpop.f32.mrf.mxu0 }
 0xfca   :  { %v20456_v11 = vpop.f32.mrf.mxu1  ;;  %v23300_v43 = vadd.f32 %v9005_v47, %v8931_v45 }
 0xfd1   :  { %v9088_v24 = vpop.f32.mrf.mxu0 }
 0xfd2   :  { %v9180_v10 = vadd.f32 %v9179_v46, %v9088_v24  ;;  %v9336_v44 = vpop.f32.mrf.mxu1 }
 0xfd3   :  { %v20445_v39 = vpop.f32.mrf.mxu0 }
 0xfd4   :  { %v20478_v63 = vpop.f32.mrf.mxu1 }
 0xfdb   :  { %v9259_v50 = vpop.f32.mrf.mxu0 }
 0xfdc   :  { %v9260_v35 = vadd.f32 %v9259_v50, %v9180_v10  ;;  %v9494_v18 = vpop.f32.mrf.mxu1 }
 0xfdd   :  { %v20467_v51 = vpop.f32.mrf.mxu0 }
 0xfde   :  { %v20500_v17 = vpop.f32.mrf.mxu1  ;;  %v9337_v2 = vadd.f32 %v9336_v44, %v9260_v35 }
 0xfe5   :  { %v9419_v19 = vpop.f32.mrf.mxu0 }
 0xfe6   :  { %v9420_v31 = vadd.f32 %v9419_v19, %v9337_v2  ;;  %v9672_v52 = vpop.f32.mrf.mxu1 }
 0xfe7   :  { %v20489_v37 = vpop.f32.mrf.mxu0 }
 0xfe8   :  { %v20522_v48 = vpop.f32.mrf.mxu1  ;;  %v23302_v25 = vadd.f32 %v9494_v18, %v9420_v31 }
 0xfef   :  { %v9581_v11 = vpop.f32.mrf.mxu0 }
 0xff0   :  { %v9829_v45 = vpop.f32.mrf.mxu1  ;;  %v9673_v63 = vadd.f32 %v9672_v52, %v9581_v11  ;;  %v10022_v52 = vld [vmem:[%s24383_s0 + $0x4] sm:$0x1] }
 0xff1   :  { %v20511_v47 = vpop.f32.mrf.mxu0 }
 0xff2   :  { %v20544_v24 = vpop.f32.mrf.mxu1 }
 0xff3   :  { %v10023_v24 = vld [vmem:[%s24383_s0 + $0x3] sm:$0x1] }
 0xff9   :  { %v9752_v46 = vpop.f32.mrf.mxu0 }
 0xffa   :  { %v9987_v39 = vpop.f32.mrf.mxu1  ;;  %v9753_v50 = vadd.f32 %v9752_v46, %v9673_v63 }
 0xffb   :  { %v20533_v20 = vpop.f32.mrf.mxu0 }
 0xffc   :  { %v20566_v10 = vpop.f32.mrf.mxu1  ;;  %v9830_v51 = vadd.f32 %v9829_v45, %v9753_v50 }
0x1002   :  { %v9912_v17 = vpop.f32.mrf.mxu0 }
0x1003   :  { %v9913_v44 = vadd.f32 %v9912_v17, %v9830_v51 }
0x1004   :  { %v20555_v35 = vpop.f32.mrf.mxu0 }
0x1005   :  { %v9988_v2 = vadd.f32 %v9987_v39, %v9913_v44 }
0x1007   :  { %v9998_v19 = vrot.slane %v9988_v2, %v22336_v53 }
0x1009   :  { %v9999_v37 = vcombine.high %v9998_v19, %v9998_v19  ;;  %v10006_v18 = vrot.slane %v9998_v19, %v22336_v53 }
0x100b   :  { %v10013_v31 = vrot.slane %v9999_v37, %v22336_v53  ;;  %v10016_v48 = vadd.f32 %v22983_v16, %v10006_v18 }
0x100d   :  { %v10017_v47 = vadd.f32 %v22983_v16, %v10013_v31  ;;  %21583 = vtanh.f32 %v10016_v48 }
0x100f   :  { %21585 = vtanh.f32 %v10017_v47 }
0x101a   :  { %v21584_v20 = vpop.eup %21583 }
0x101b   :  { %v10020_v11 = vmul.f32 2.0, %v21584_v20 }
0x101c   :  { %v21586_v45 = vpop.eup %21585 }
0x101d   :  { %v10021_v46 = vmul.f32 2.0, %v21586_v45  ;;  %v10024_v39 = vmul.f32 %v10022_v52, %v10020_v11  ;;  %v24620_v45 = vld [vmem:[#allocation12_spill] sm:$0xff] }
0x101f   :  { %v10026_v63 = vmul.f32 %v10024_v39, %v10020_v11  ;;  %v10025_v10 = vmul.f32 %v10023_v24, %v10021_v46  ;;  %v24621_v24 = vld [vmem:[#allocation14_spill] sm:$0xff] }
0x1021   :  { %v10028_v50 = vmul.f32 %v10026_v63, %v10020_v11  ;;  %v10027_v51 = vmul.f32 %v10025_v10, %v10021_v46  ;;  %v24619_v11 = vld [vmem:[#allocation11_spill] sm:$0xff] }
0x1023   :  { %v10031_v16 = vsel %vm59_vm1, %v10028_v50, 0  ;;  %v10029_v35 = vmul.f32 %v10027_v51, %v10021_v46 }
0x1024   :  { %v10100_v17 = vand.u32 4294901760, %v10031_v16 }
0x1025   :  { %v10493_v37 = vsel %vm59_vm1, %v10029_v35, 0 }
0x1026   :  { %v10101_v44 = vsub.f32 %v10031_v16, %v10100_v17  ;;  %20579 = vmatmul.mubr.f32.vlgmr.msra.gmra.mxu1 %v10100_v17  ;;  %v10562_v31 = vand.u32 4294901760, %v10493_v37 }
0x1027   :  { %20589 = vmatpush3.msra.mxu1 %v21781_v4  ;;  %20592 = vmatprep.mubr.msk.f32.mxu1 %vm21722_vm0, %v24532_v49 }
0x1028   :  { %20590 = vmatprep.subr.mxu1 %v24532_v49  ;;  %v10102_v2 = vand.u32 4294901760, %v10101_v44  ;;  %v10563_v48 = vsub.f32 %v10493_v37, %v10562_v31 }
0x1029   :  { %20591 = vmatpush3.msra.mxu1 %v21783_v5 }
0x102a   :  { %20593 = vmatmul.mubr.f32.vlgmr.msra.gmra.mxu1 %v10102_v2  ;;  %20602 = vmatprep.subr.mxu1 %v24532_v49  ;;  %v10103_v19 = vsub.f32 %v10101_v44, %v10102_v2  ;;  %v10564_v47 = vand.u32 4294901760, %v10563_v48 }
0x102b   :  { %20603 = vmatpush3.msra.mxu1 %v21781_v4  ;;  %20606 = vmatprep.mubr.msk.f32.mxu1 %vm21722_vm0, %v24532_v49 }
0x102c   :  { %20604 = vmatprep.subr.mxu1 %v24532_v49  ;;  %v10104_v18 = vand.u32 4294901760, %v10103_v19  ;;  %v10565_v20 = vsub.f32 %v10563_v48, %v10564_v47 }
0x102d   :  { %20605 = vmatpush3.msra.mxu1 %v21783_v5 }
0x102e   :  { %20572 = vmatmul.mubr.f32.vlgmr.msra.gmra.mxu0 %v10104_v18  ;;  %20607 = vmatmul.mubr.f32.vlgmr.msra.gmra.mxu1 %v10100_v17  ;;  %v10566_v52 = vand.u32 4294901760, %v10565_v20 }
0x102f   :  { %20616 = vmatprep.subr.mxu1 %v24532_v49  ;;  %20582 = vmatpush3.msra.mxu0 %v21790_v8 }
0x1030   :  { %20617 = vmatpush3.msra.mxu1 %v21873_v36  ;;  %20583 = vmatprep.subr.mxu0 %v24532_v49 }
0x1031   :  { %20618 = vmatprep.subr.mxu1 %v24532_v49  ;;  %20584 = vmatpush3.msra.mxu0 %v21793_v9 }
0x1032   :  { %20585 = vmatprep.mubr.msk.f32.mxu0 %vm21722_vm0, %v24532_v49  ;;  %20619 = vmatpush3.msra.mxu1 %v21880_v38 }
0x1033   :  { %20620 = vmatprep.mubr.msk.f32.mxu1 %vm21722_vm0, %v24532_v49  ;;  %20586 = vmatmul.mubr.f32.vlgmr.msra.gmra.mxu0 %v10101_v44 }
0x1034   :  { %20595 = vmatprep.subr.mxu0 %v24532_v49  ;;  %20621 = vmatmul.mubr.f32.vlgmr.msra.gmra.mxu1 %v10562_v31 }
0x1035   :  { %20630 = vmatprep.subr.mxu1 %v24532_v49  ;;  %20596 = vmatpush3.msra.mxu0 %v21802_v12 }
0x1036   :  { %20631 = vmatpush3.msra.mxu1 %v21819_v21  ;;  %20597 = vmatprep.subr.mxu0 %v24532_v49 }
0x1037   :  { %20632 = vmatprep.subr.mxu1 %v24532_v49  ;;  %20598 = vmatpush3.msra.mxu0 %v21805_v13 }
0x1038   :  { %20599 = vmatprep.mubr.msk.f32.mxu0 %vm21722_vm0, %v24532_v49  ;;  %20633 = vmatpush3.msra.mxu1 %v21827_v26 }
0x1039   :  { %20634 = vmatprep.mubr.msk.f32.mxu1 %vm21722_vm0, %v24532_v49  ;;  %20600 = vmatmul.mubr.f32.vlgmr.msra.gmra.mxu0 %v10100_v17 }
0x103a   :  { %20609 = vmatprep.subr.mxu0 %v24532_v49  ;;  %20635 = vmatmul.mubr.f32.vlgmr.msra.gmra.mxu1 %v10564_v47 }
0x103b   :  { %20644 = vmatprep.subr.mxu1 %v24532_v49  ;;  %20610 = vmatpush3.msra.mxu0 %v21819_v21 }
0x103c   :  { %20645 = vmatpush3.msra.mxu1 %v21819_v21  ;;  %20611 = vmatprep.subr.mxu0 %v24532_v49 }
0x103d   :  { %20646 = vmatprep.subr.mxu1 %v24532_v49  ;;  %20612 = vmatpush3.msra.mxu0 %v21827_v26 }
0x103e   :  { %20613 = vmatprep.mubr.msk.f32.mxu0 %vm21722_vm0, %v24532_v49  ;;  %20647 = vmatpush3.msra.mxu1 %v21827_v26 }
0x103f   :  { %20648 = vmatprep.mubr.msk.f32.mxu1 %vm21722_vm0, %v24532_v49  ;;  %20614 = vmatmul.mubr.f32.vlgmr.msra.gmra.mxu0 %v10566_v52 }
0x1040   :  { %20623 = vmatprep.subr.mxu0 %v24532_v49  ;;  %20649 = vmatmul.mubr.f32.vlgmr.msra.gmra.mxu1 %v10562_v31 }
0x1041   :  { %20624 = vmatpush3.msra.mxu0 %v21832_v27  ;;  %20627 = vmatprep.mubr.msk.f32.mxu0 %vm21722_vm0, %v24532_v49 }
0x1042   :  { %20625 = vmatprep.subr.mxu0 %v24532_v49  ;;  %20662 = vmatprep.subr.mxu1 %v24532_v49 }
0x1043   :  { %20626 = vmatpush3.msra.mxu0 %v21840_v29  ;;  %20663 = vmatpush3.msra.mxu1 %v21985_v3 }
0x1044   :  { %20628 = vmatmul.mubr.f32.vlgmr.msra.gmra.mxu0 %v10563_v48  ;;  %20637 = vmatprep.subr.mxu0 %v24532_v49 }
0x1045   :  { %20638 = vmatpush3.msra.mxu0 %v21848_v30  ;;  %20641 = vmatprep.mubr.msk.f32.mxu0 %vm21722_vm0, %v24532_v49 }
0x1046   :  { %20639 = vmatprep.subr.mxu0 %v24532_v49  ;;  %20664 = vmatprep.subr.mxu1 %v24532_v49 }
0x1047   :  { %20640 = vmatpush3.msra.mxu0 %v21854_v32  ;;  %20665 = vmatpush3.msra.mxu1 %v24619_v11 }
0x1048   :  { %20642 = vmatmul.mubr.f32.vlgmr.msra.gmra.mxu0 %v10562_v31  ;;  %20666 = vmatprep.subr.mxu1 %v24532_v49 }
0x1049   :  { %20667 = vmatpush3.msra.mxu1 %v24620_v45  ;;  %20651 = vmatprep.subr.mxu0 %v24532_v49 }
0x104a   :  { %20668 = vmatprep.subr.mxu1 %v24532_v49  ;;  %20670 = vmatprep.mubr.msk.f32.mxu1 %vm21722_vm0, %v24532_v49 }
0x104b   :  { %20669 = vmatpush3.msra.mxu1 %v24621_v24  ;;  %20652 = vmatpush3.msra.mxu0 %v21949_v54 }
0x104c   :  { %20684 = vmatprep.subr.mxu1 %v24532_v49  ;;  %20653 = vmatprep.subr.mxu0 %v24532_v49 }
0x104d   :  { %20654 = vmatpush3.msra.mxu0 %v21951_v55  ;;  %20659 = vmatprep.mubr.msk.f32.mxu0 %vm21722_vm0, %v24532_v49 }
0x104e   :  { %20655 = vmatprep.subr.mxu0 %v24532_v49 }
0x104f   :  { %20656 = vmatpush3.msra.mxu0 %v21953_v56 }
0x1050   :  { %20657 = vmatprep.subr.mxu0 %v24532_v49 }
0x1051   :  { %20658 = vmatpush3.msra.mxu0 %v21998_v14 }
0x1052   :  { %20673 = vmatprep.subr.mxu0 %v24532_v49 }
0x10e6   :  { %v10187_v46 = vpop.f32.mrf.mxu1 }
0x10e8   :  { %v20580_v39 = vpop.f32.mrf.mxu1 }
0x10ea   :  { %v10338_v63 = vpop.f32.mrf.mxu1 }
0x10ec   :  { %v20594_v10 = vpop.f32.mrf.mxu1 }
0x10ee   :  { %v10106_v50 = vpop.f32.mrf.mxu0  ;;  %v10488_v51 = vpop.f32.mrf.mxu1 }
0x10ef   :  { %v10107_v16 = vadd.f32 %v10106_v50, %v23300_v43 }
0x10f0   :  { %v20573_v17 = vpop.f32.mrf.mxu0  ;;  %v20608_v44 = vpop.f32.mrf.mxu1 }
0x10f1   :  { %v10188_v35 = vadd.f32 %v10187_v46, %v10107_v16 }
0x10f3   :  { %v10263_v2 = vpop.f32.mrf.mxu0 }
0x10f4   :  { %v10264_v19 = vadd.f32 %v10263_v2, %v10188_v35  ;;  %v10649_v37 = vpop.f32.mrf.mxu1 }
0x10f5   :  { %v20587_v18 = vpop.f32.mrf.mxu0 }
0x10f6   :  { %v20622_v31 = vpop.f32.mrf.mxu1  ;;  %v10339_v48 = vadd.f32 %v10338_v63, %v10264_v19 }
0x10f9   :  { %v10415_v47 = vpop.f32.mrf.mxu0 }
0x10fa   :  { %v10416_v20 = vadd.f32 %v10415_v47, %v10339_v48  ;;  %v10800_v52 = vpop.f32.mrf.mxu1 }
0x10fb   :  { %v20601_v24 = vpop.f32.mrf.mxu0 }
0x10fc   :  { %v10489_v39 = vadd.f32 %v10488_v51, %v10416_v20  ;;  %v20636_v45 = vpop.f32.mrf.mxu1 }
0x10fe   :  { %v10954_v10 = vadd.f32 %v23079_v7, %v10489_v39 }
0x10ff   :  { %v10568_v11 = vpop.f32.mrf.mxu0 }
0x1100   :  { %21587 = vtanh.f32 %v10954_v10  ;;  %v10569_v43 = vadd.f32 %v10568_v11, %v23302_v25  ;;  %v10950_v50 = vpop.f32.mrf.mxu1  ;;  %v18513_v25 = vmul.f32 -1.442695, %v10954_v10 }
0x1101   :  { %v20615_v46 = vpop.f32.mrf.mxu0 }
0x1102   :  { %v20650_v16 = vpop.f32.mrf.mxu1  ;;  %v10650_v17 = vadd.f32 %v10649_v37, %v10569_v43 }
0x1104   :  { %v10725_v44 = vpop.f32.mrf.mxu0 }
0x1105   :  { %v10726_v35 = vadd.f32 %v10725_v44, %v10650_v17 }
0x1106   :  { %v20629_v2 = vpop.f32.mrf.mxu0 }
0x1107   :  { %v10801_v63 = vadd.f32 %v10800_v52, %v10726_v35 }
0x1108   :  { %v10877_v19 = vpop.f32.mrf.mxu0 }
0x1109   :  { %v10878_v18 = vadd.f32 %v10877_v19, %v10801_v63 }
0x110a   :  { %v20643_v31 = vpop.f32.mrf.mxu0 }
0x110b   :  { %v10951_v24 = vadd.f32 %v10950_v50, %v10878_v18 }
0x110d   :  { %v21588_v51 = vpop.eup %21587  ;;  %v10955_v45 = vadd.f32 %v23086_v23, %v10951_v24 }
0x110e   :  { %10974 = vrot.lane.b32.xlu0 %v21588_v51, %s21723_s18 }
0x110f   :  { %21589 = vtanh.f32 %v10955_v45  ;;  %v18514_v11 = vmul.f32 -1.442695, %v10955_v45 }
0x1110   :  { %21591 = vpow2.f32 %v18513_v25 }
0x1111   :  { %21593 = vpow2.f32 %v18514_v11 }
0x111c   :  { %v21590_v7 = vpop.eup %21589 }
0x111d   :  { %10976 = vrot.lane.b32.xlu1 %v21590_v7, %s21723_s18  ;;  %v21592_v37 = vpop.eup %21591 }
0x111e   :  { %v10962_v48 = vadd.f32 1.0, %v21592_v37  ;;  %v21594_v47 = vpop.eup %21593 }
0x111f   :  { %v10963_v20 = vadd.f32 1.0, %v21594_v47 }
0x1120   :  { %21595 = vrcp.f32 %v10962_v48 }
0x1121   :  { %21597 = vrcp.f32 %v10963_v20 }
0x112d   :  { %v21596_v52 = vpop.eup %21595 }
0x112e   :  { %v21598_v23 = vpop.eup %21597  ;;  %v10970_v10 = vmul.f32 %v21596_v52, %v23094_v6 }
0x112f   :  { %v10971_v44 = vmul.f32 %v21598_v23, %v23098_v22 }
0x1180   :  { %v10975_v39 = vpop.permute.xlu0 %10974 }
0x1181   :  { %v10980_v43 = vmul.f32 %v21596_v52, %v10975_v39 }
0x1183   :  { %10984 = vrot.lane.b32.xlu0 %v10980_v43, %s21724_s19 }
0x118f   :  { %v10977_v50 = vpop.permute.xlu1 %10976 }
0x1190   :  { %v10981_v46 = vmul.f32 %v21598_v23, %v10977_v50 }
0x1192   :  { %10986 = vrot.lane.b32.xlu1 %v10981_v46, %s21724_s19 }
0x11f5   :  { %v10985_v16 = vpop.permute.xlu0 %10984 }
0x11f6   :  { %v23406_v17 = vadd.f32 %v10985_v16, %v10970_v10  ;;  %v24624_v10 = vld [vmem:[#allocation20_spill] sm:$0xff]  ;;  %v24625_v16 = vld [vmem:[#allocation17_spill] sm:$0xff] }
0x11f8   :  { %21599 = vtanh.f32 %v23406_v17 }
0x1204   :  { %v10987_v35 = vpop.permute.xlu1 %10986 }
0x1205   :  { %v21600_v2 = vpop.eup %21599  ;;  %v23410_v63 = vadd.f32 %v10987_v35, %v10971_v44  ;;  %v24626_v44 = vld [vmem:[#allocation19_spill] sm:$0xff] }
0x1206   :  { %10996 = vrot.lane.b32.xlu0 %v21600_v2, %s21723_s18  ;;  %v24627_v2 = vld [vmem:[#allocation22_spill] sm:$0xff] }
0x1207   :  { %21601 = vtanh.f32 %v23410_v63  ;;  %v11992_v31 = vrot.slane %v23410_v63, 7 }
0x1209   :  { %v11993_v22 = vsel %vm2024_vm2, %v11992_v31, %v23406_v17  ;;  %v24629_v31 = vld [vmem:[#allocation21_spill] sm:$0xff] }
0x1214   :  { %v21602_v19 = vpop.eup %21601 }
0x1215   :  { %10998 = vrot.lane.b32.xlu1 %v21602_v19, %s21723_s18  ;;  %v24628_v19 = vld [vmem:[#allocation24_spill] sm:$0xff] }
0x1278   :  { %v10997_v18 = vpop.permute.xlu0 %10996 }
0x1279   :  { %v11002_v6 = vmul.f32 %v21596_v52, %v10997_v18 }
0x127b   :  { %11005 = vrot.lane.b32.xlu0 %v11002_v6, %s21724_s19 }
0x127f   :  { %11994 = vrot.lane.b32.xlu0 %v11993_v22, %s21725_s20  ;;  %v24630_v22 = vld [vmem:[#allocation40_spill] sm:$0xff] }
0x1287   :  { %v10999_v24 = vpop.permute.xlu1 %10998 }
0x1288   :  { %v23420_v51 = vmul.f32 %v21598_v23, %v10999_v24  ;;  %v24631_v24 = vld [vmem:[#allocation23_spill] sm:$0xff] }
0x128a   :  { %24622 = vst [vmem:[#allocation16_spill] sm:$0xff] %v23420_v51  ;;  %11501 = vrot.lane.b32.xlu1 %v23420_v51, %s21724_s19  ;;  %v24647_v51 = vld [vmem:[#allocation8_spill] sm:$0xff] }
0x12ed   :  { %v23424_v45 = vpop.permute.xlu0 %11005 }
0x12ee   :  { %24623 = vst [vmem:[#allocation18_spill] sm:$0xff] %v23424_v45  ;;  %v11014_v7 = vsel %vm1044_vm4, %v23424_v45, 0  ;;  %v24646_v45 = vld [vmem:[#allocation36_spill] sm:$0xff] }
0x12ef   :  { %v11085_v25 = vand.u32 4294901760, %v11014_v7 }
0x12f1   :  { %v11086_v11 = vsub.f32 %v11014_v7, %v11085_v25  ;;  %20671 = vmatmul.mubr.f32.vlgmr.msra.gmra.mxu1 %v11085_v25  ;;  %v11995_v35 = vpop.permute.xlu0 %11994  ;;  %v24632_v7 = vld [vmem:[#allocation41_spill] sm:$0xff] }
0x12f2   :  { %20685 = vmatpush3.msra.mxu1 %v21949_v54  ;;  %20692 = vmatprep.mubr.msk.f32.mxu1 %vm21722_vm0, %v24532_v49  ;;  %v11996_v18 = vsel %vm1044_vm4, %v11995_v35, 0  ;;  %v24641_v35 = vld [vmem:[#allocation30_spill] sm:$0xff] }
0x12f3   :  { %v11087_v37 = vand.u32 4294901760, %v11086_v11  ;;  %20686 = vmatprep.subr.mxu1 %v24532_v49  ;;  %v23524_v6 = vand.u32 4294901760, %v11996_v18 }
0x12f4   :  { %20687 = vmatpush3.msra.mxu1 %v21951_v55 }
0x12f5   :  { %v11088_v48 = vsub.f32 %v11086_v11, %v11087_v37  ;;  %20688 = vmatprep.subr.mxu1 %v24532_v49 }
0x12f6   :  { %20689 = vmatpush3.msra.mxu1 %v21953_v56 }
0x12f7   :  { %v11089_v47 = vand.u32 4294901760, %v11088_v48  ;;  %20690 = vmatprep.subr.mxu1 %v24532_v49  ;;  %v24635_v48 = vld [vmem:[#allocation26_spill] sm:$0xff] }
0x12f8   :  { %20691 = vmatpush3.msra.mxu1 %v21998_v14 }
0x12f9   :  { %20693 = vmatmul.mubr.f32.vlgmr.msra.gmra.mxu1 %v11087_v37  ;;  %20706 = vmatprep.subr.mxu1 %v24532_v49  ;;  %v24634_v37 = vld [vmem:[#allocation42_spill] sm:$0xff] }
0x12fa   :  { %20660 = vmatmul.mubr.f32.vlgmr.msra.gmra.mxu0 %v11089_v47  ;;  %20707 = vmatpush3.msra.mxu1 %v21949_v54  ;;  %v24636_v47 = vld [vmem:[#allocation43_spill] sm:$0xff] }
0x12fb   :  { %20674 = vmatpush3.msra.mxu0 %v21956_v57  ;;  %20708 = vmatprep.subr.mxu1 %v24532_v49 }
0x12fc   :  { %20675 = vmatprep.subr.mxu0 %v24532_v49  ;;  %20709 = vmatpush3.msra.mxu1 %v21951_v55  ;;  %v11502_v20 = vpop.permute.xlu1 %11501 }
0x12fd   :  { %20676 = vmatpush3.msra.mxu0 %v21959_v58  ;;  %20710 = vmatprep.subr.mxu1 %v24532_v49  ;;  %v11503_v52 = vsel %vm1044_vm4, %v11502_v20, 0 }
0x12fe   :  { %20677 = vmatprep.subr.mxu0 %v24532_v49  ;;  %20711 = vmatpush3.msra.mxu1 %v21953_v56  ;;  %v23458_v39 = vand.u32 4294901760, %v11503_v52 }
0x12ff   :  { %20678 = vmatpush3.msra.mxu0 %v21962_v59  ;;  %20712 = vmatprep.subr.mxu1 %v24532_v49 }
0x1300   :  { %20679 = vmatprep.subr.mxu0 %v24532_v49  ;;  %20681 = vmatprep.mubr.msk.f32.mxu0 %vm21722_vm0, %v24532_v49  ;;  %v11575_v43 = vsub.f32 %v11503_v52, %v23458_v39  ;;  %v24637_v52 = vld [vmem:[#allocation28_spill] sm:$0xff] }
0x1301   :  { %20680 = vmatpush3.msra.mxu0 %v22001_v15  ;;  %20713 = vmatpush3.msra.mxu1 %v21998_v14 }
0x1302   :  { %20714 = vmatprep.mubr.msk.f32.mxu1 %vm21722_vm0, %v24532_v49  ;;  %20682 = vmatmul.mubr.f32.vlgmr.msra.gmra.mxu0 %v11086_v11  ;;  %v11576_v23 = vand.u32 4294901760, %v11575_v43  ;;  %v24633_v11 = vld [vmem:[#allocation25_spill] sm:$0xff] }
0x1303   :  { %20695 = vmatprep.subr.mxu0 %v24532_v49  ;;  %20715 = vmatmul.mubr.f32.vlgmr.msra.gmra.mxu1 %v11085_v25 }
0x1304   :  { %20728 = vmatprep.subr.mxu1 %v24532_v49  ;;  %20696 = vmatpush3.msra.mxu0 %v21967_v60  ;;  %v11577_v50 = vsub.f32 %v11575_v43, %v11576_v23 }
0x1305   :  { %20729 = vmatpush3.msra.mxu1 %v22094_v28  ;;  %20697 = vmatprep.subr.mxu0 %v24532_v49 }
0x1306   :  { %20730 = vmatprep.subr.mxu1 %v24532_v49  ;;  %20698 = vmatpush3.msra.mxu0 %v21970_v61  ;;  %v11578_v46 = vand.u32 4294901760, %v11577_v50 }
0x1307   :  { %20731 = vmatpush3.msra.mxu1 %v22102_v34  ;;  %20699 = vmatprep.subr.mxu0 %v24532_v49 }
0x1308   :  { %20732 = vmatprep.subr.mxu1 %v24532_v49  ;;  %20700 = vmatpush3.msra.mxu0 %v21973_v62 }
0x1309   :  { %20733 = vmatpush3.msra.mxu1 %v22112_v40  ;;  %20701 = vmatprep.subr.mxu0 %v24532_v49 }
0x130a   :  { %20734 = vmatprep.subr.mxu1 %v24532_v49  ;;  %20702 = vmatpush3.msra.mxu0 %v24534_v0 }
0x130b   :  { %20703 = vmatprep.mubr.msk.f32.mxu0 %vm21722_vm0, %v24532_v49  ;;  %20735 = vmatpush3.msra.mxu1 %v24535_v33 }
0x130c   :  { %20736 = vmatprep.mubr.msk.f32.mxu1 %vm21722_vm0, %v24532_v49  ;;  %20704 = vmatmul.mubr.f32.vlgmr.msra.gmra.mxu0 %v11085_v25  ;;  %v12068_v25 = vsub.f32 %v11996_v18, %v23524_v6  ;;  %v24642_v18 = vld [vmem:[#allocation32_spill] sm:$0xff] }
0x130d   :  { %20717 = vmatprep.subr.mxu0 %v24532_v49  ;;  %20737 = vmatmul.mubr.f32.vlgmr.msra.gmra.mxu1 %v23458_v39 }
0x130e   :  { %20750 = vmatprep.subr.mxu1 %v24532_v49  ;;  %20718 = vmatpush3.msra.mxu0 %v22031_v41  ;;  %v12069_v20 = vand.u32 4294901760, %v12068_v25 }
0x130f   :  { %20751 = vmatpush3.msra.mxu1 %v22031_v41  ;;  %20719 = vmatprep.subr.mxu0 %v24532_v49 }
0x1310   :  { %20752 = vmatprep.subr.mxu1 %v24532_v49  ;;  %20720 = vmatpush3.msra.mxu0 %v24536_v42 }
0x1311   :  { %20753 = vmatpush3.msra.mxu1 %v24536_v42  ;;  %20721 = vmatprep.subr.mxu0 %v24532_v49 }
0x1312   :  { %20754 = vmatprep.subr.mxu1 %v24532_v49  ;;  %20722 = vmatpush3.msra.mxu0 %v24563_v1 }
0x1313   :  { %20755 = vmatpush3.msra.mxu1 %v24563_v1  ;;  %20723 = vmatprep.subr.mxu0 %v24532_v49 }
0x1314   :  { %20756 = vmatprep.subr.mxu1 %v24532_v49  ;;  %20724 = vmatpush3.msra.mxu0 %v24624_v10 }
0x1315   :  { %20725 = vmatprep.mubr.msk.f32.mxu0 %vm21722_vm0, %v24532_v49  ;;  %20757 = vmatpush3.msra.mxu1 %v24624_v10 }
0x1316   :  { %20758 = vmatprep.mubr.msk.f32.mxu1 %vm21722_vm0, %v24532_v49  ;;  %20726 = vmatmul.mubr.f32.vlgmr.msra.gmra.mxu0 %v11578_v46  ;;  %v24640_v46 = vld [vmem:[#allocation33_spill] sm:$0xff] }
0x1317   :  { %20739 = vmatprep.subr.mxu0 %v24532_v49  ;;  %20759 = vmatmul.mubr.f32.vlgmr.msra.gmra.mxu1 %v11576_v23  ;;  %v24638_v23 = vld [vmem:[#allocation29_spill] sm:$0xff] }
0x1318   :  { %20772 = vmatprep.subr.mxu1 %v24532_v49  ;;  %20740 = vmatpush3.msra.mxu0 %v24625_v16 }
0x1319   :  { %20773 = vmatpush3.msra.mxu1 %v22031_v41  ;;  %20741 = vmatprep.subr.mxu0 %v24532_v49 }
0x131a   :  { %20774 = vmatprep.subr.mxu1 %v24532_v49  ;;  %20742 = vmatpush3.msra.mxu0 %v24626_v44 }
0x131b   :  { %20775 = vmatpush3.msra.mxu1 %v24536_v42  ;;  %20743 = vmatprep.subr.mxu0 %v24532_v49 }
0x131c   :  { %20776 = vmatprep.subr.mxu1 %v24532_v49  ;;  %20744 = vmatpush3.msra.mxu0 %v24627_v2 }
0x131d   :  { %20777 = vmatpush3.msra.mxu1 %v24563_v1  ;;  %20745 = vmatprep.subr.mxu0 %v24532_v49 }
0x131e   :  { %20778 = vmatprep.subr.mxu1 %v24532_v49  ;;  %20746 = vmatpush3.msra.mxu0 %v24628_v19 }
0x131f   :  { %20747 = vmatprep.mubr.msk.f32.mxu0 %vm21722_vm0, %v24532_v49  ;;  %20779 = vmatpush3.msra.mxu1 %v24624_v10 }
0x1320   :  { %20780 = vmatprep.mubr.msk.f32.mxu1 %vm21722_vm0, %v24532_v49  ;;  %20748 = vmatmul.mubr.f32.vlgmr.msra.gmra.mxu0 %v11575_v43  ;;  %v12070_v43 = vsub.f32 %v12068_v25, %v12069_v20 }
0x1321   :  { %20761 = vmatprep.subr.mxu0 %v24532_v49  ;;  %20781 = vmatmul.mubr.f32.vlgmr.msra.gmra.mxu1 %v23458_v39 }
0x1322   :  { %20794 = vmatprep.subr.mxu1 %v24532_v49  ;;  %20762 = vmatpush3.msra.mxu0 %v24629_v31  ;;  %v12071_v50 = vand.u32 4294901760, %v12070_v43  ;;  %v24643_v43 = vld [vmem:[#allocation35_spill] sm:$0xff] }
0x1323   :  { %20795 = vmatpush3.msra.mxu1 %v24630_v22  ;;  %20763 = vmatprep.subr.mxu0 %v24532_v49 }
0x1324   :  { %20796 = vmatprep.subr.mxu1 %v24532_v49  ;;  %20764 = vmatpush3.msra.mxu0 %v24631_v24 }
0x1325   :  { %20797 = vmatpush3.msra.mxu1 %v24632_v7  ;;  %20765 = vmatprep.subr.mxu0 %v24532_v49 }
0x1326   :  { %20798 = vmatprep.subr.mxu1 %v24532_v49  ;;  %20766 = vmatpush3.msra.mxu0 %v24633_v11 }
0x1327   :  { %20799 = vmatpush3.msra.mxu1 %v24634_v37  ;;  %20767 = vmatprep.subr.mxu0 %v24532_v49 }
0x1328   :  { %20800 = vmatprep.subr.mxu1 %v24532_v49  ;;  %20768 = vmatpush3.msra.mxu0 %v24635_v48 }
0x1329   :  { %20769 = vmatprep.mubr.msk.f32.mxu0 %vm21722_vm0, %v24532_v49  ;;  %20801 = vmatpush3.msra.mxu1 %v24636_v47 }
0x132a   :  { %20802 = vmatprep.mubr.msk.f32.mxu1 %vm21722_vm0, %v24532_v49  ;;  %20770 = vmatmul.mubr.f32.vlgmr.msra.gmra.mxu0 %v23458_v39  ;;  %v24639_v39 = vld [vmem:[#allocation31_spill] sm:$0xff] }
0x132b   :  { %20783 = vmatprep.subr.mxu0 %v24532_v49  ;;  %20803 = vmatmul.mubr.f32.vlgmr.msra.gmra.mxu1 %v23524_v6 }
0x132c   :  { %20816 = vmatprep.subr.mxu1 %v24532_v49  ;;  %20784 = vmatpush3.msra.mxu0 %v24637_v52 }
0x132d   :  { %20817 = vmatpush3.msra.mxu1 %v24637_v52  ;;  %20785 = vmatprep.subr.mxu0 %v24532_v49 }
0x132e   :  { %20818 = vmatprep.subr.mxu1 %v24532_v49  ;;  %20786 = vmatpush3.msra.mxu0 %v24638_v23 }
0x132f   :  { %20819 = vmatpush3.msra.mxu1 %v24638_v23  ;;  %20787 = vmatprep.subr.mxu0 %v24532_v49 }
0x1330   :  { %20820 = vmatprep.subr.mxu1 %v24532_v49  ;;  %20788 = vmatpush3.msra.mxu0 %v24639_v39 }
0x1331   :  { %20821 = vmatpush3.msra.mxu1 %v24639_v39  ;;  %20789 = vmatprep.subr.mxu0 %v24532_v49 }
0x1332   :  { %20822 = vmatprep.subr.mxu1 %v24532_v49  ;;  %20790 = vmatpush3.msra.mxu0 %v24640_v46 }
0x1333   :  { %20791 = vmatprep.mubr.msk.f32.mxu0 %vm21722_vm0, %v24532_v49  ;;  %20823 = vmatpush3.msra.mxu1 %v24640_v46 }
0x1334   :  { %20824 = vmatprep.mubr.msk.f32.mxu1 %vm21722_vm0, %v24532_v49  ;;  %20792 = vmatmul.mubr.f32.vlgmr.msra.gmra.mxu0 %v12071_v50  ;;  %v24645_v50 = vld [vmem:[#allocation34_spill] sm:$0xff] }
0x1335   :  { %20805 = vmatprep.subr.mxu0 %v24532_v49  ;;  %20825 = vmatmul.mubr.f32.vlgmr.msra.gmra.mxu1 %v12069_v20  ;;  %v24644_v20 = vld [vmem:[#allocation37_spill] sm:$0xff] }
0x1336   :  { %20838 = vmatprep.subr.mxu1 %v24532_v49  ;;  %20806 = vmatpush3.msra.mxu0 %v24641_v35 }
0x1337   :  { %20839 = vmatpush3.msra.mxu1 %v24637_v52  ;;  %20807 = vmatprep.subr.mxu0 %v24532_v49 }
0x1338   :  { %20840 = vmatprep.subr.mxu1 %v24532_v49  ;;  %20808 = vmatpush3.msra.mxu0 %v24642_v18 }
0x1339   :  { %20841 = vmatpush3.msra.mxu1 %v24638_v23  ;;  %20809 = vmatprep.subr.mxu0 %v24532_v49 }
0x133a   :  { %20842 = vmatprep.subr.mxu1 %v24532_v49  ;;  %20810 = vmatpush3.msra.mxu0 %v24643_v43 }
0x133b   :  { %20843 = vmatpush3.msra.mxu1 %v24639_v39  ;;  %20811 = vmatprep.subr.mxu0 %v24532_v49 }
0x133c   :  { %20844 = vmatprep.subr.mxu1 %v24532_v49  ;;  %20812 = vmatpush3.msra.mxu0 %v24644_v20  ;;  %v24649_v20 = vld [vmem:[#allocation9_spill] sm:$0xff] }
0x133d   :  { %20813 = vmatprep.mubr.msk.f32.mxu0 %vm21722_vm0, %v24532_v49  ;;  %20845 = vmatpush3.msra.mxu1 %v24640_v46 }
0x133e   :  { %20846 = vmatprep.mubr.msk.f32.mxu1 %vm21722_vm0, %v24532_v49  ;;  %20814 = vmatmul.mubr.f32.vlgmr.msra.gmra.mxu0 %v12068_v25  ;;  %v24648_v25 = vld [vmem:[#allocation38_spill] sm:$0xff] }
0x133f   :  { %20827 = vmatprep.subr.mxu0 %v24532_v49  ;;  %20847 = vmatmul.mubr.f32.vlgmr.msra.gmra.mxu1 %v23524_v6 }
0x1340   :  { %20828 = vmatpush3.msra.mxu0 %v24645_v50  ;;  %20835 = vmatprep.mubr.msk.f32.mxu0 %vm21722_vm0, %v24532_v49  ;;  %v24650_v50 = vld [vmem:[#allocation39_spill] sm:$0xff] }
0x1341   :  { %20829 = vmatprep.subr.mxu0 %v24532_v49  ;;  %20856 = vmatprep.subr.mxu1 %v24532_v49 }
0x1342   :  { %20830 = vmatpush3.msra.mxu0 %v24646_v45  ;;  %20857 = vmatpush3.msra.mxu1 %v24647_v51 }
0x1343   :  { %20831 = vmatprep.subr.mxu0 %v24532_v49  ;;  %20858 = vmatprep.subr.mxu1 %v24532_v49 }
0x1344   :  { %20832 = vmatpush3.msra.mxu0 %v24648_v25  ;;  %20859 = vmatpush3.msra.mxu1 %v24649_v20 }
0x1345   :  { %20833 = vmatprep.subr.mxu0 %v24532_v49  ;;  %20860 = vmatprep.mubr.msk.f32.mxu1 %vm21722_vm0, %v24532_v49 }
0x1346   :  { %20834 = vmatpush3.msra.mxu0 %v24650_v50  ;;  %20870 = vmatprep.subr.mxu1 %v24532_v49 }
0x1347   :  { %20836 = vmatmul.mubr.f32.vlgmr.msra.gmra.mxu0 %v23524_v6  ;;  %20849 = vmatprep.subr.mxu0 %v24532_v49 }
0x1348   :  { %20850 = vmatpush3.msra.mxu0 %v21781_v4  ;;  %20853 = vmatprep.mubr.msk.f32.mxu0 %vm21722_vm0, %v24532_v49 }
0x1349   :  { %20851 = vmatprep.subr.mxu0 %v24532_v49 }
0x134a   :  { %20852 = vmatpush3.msra.mxu0 %v21783_v5 }
0x134b   :  { %20863 = vmatprep.subr.mxu0 %v24532_v49 }
0x13b1   :  { %v11182_v20 = vpop.f32.mrf.mxu1 }
0x13b3   :  { %v20672_v25 = vpop.f32.mrf.mxu1 }
0x13b9   :  { %v11339_v50 = vpop.f32.mrf.mxu1 }
0x13ba   :  { %v11091_v51 = vpop.f32.mrf.mxu0 }
0x13bb   :  { %v11183_v45 = vadd.f32 %v11182_v20, %v11091_v51  ;;  %v20694_v43 = vpop.f32.mrf.mxu1 }
0x13bc   :  { %v20661_v6 = vpop.f32.mrf.mxu0 }
0x13c2   :  { %v11262_v18 = vpop.f32.mrf.mxu0 }
0x13c3   :  { %v11263_v35 = vadd.f32 %v11262_v18, %v11183_v45  ;;  %v11497_v46 = vpop.f32.mrf.mxu1 }
0x13c4   :  { %v20683_v39 = vpop.f32.mrf.mxu0 }
0x13c5   :  { %v20716_v23 = vpop.f32.mrf.mxu1  ;;  %v11340_v52 = vadd.f32 %v11339_v50, %v11263_v35 }
0x13cc   :  { %v11422_v47 = vpop.f32.mrf.mxu0 }
0x13cd   :  { %v11423_v48 = vadd.f32 %v11422_v47, %v11340_v52  ;;  %v11671_v37 = vpop.f32.mrf.mxu1 }
0x13ce   :  { %v20705_v11 = vpop.f32.mrf.mxu0 }
0x13cf   :  { %v20738_v7 = vpop.f32.mrf.mxu1  ;;  %v23614_v24 = vadd.f32 %v11497_v46, %v11423_v48 }
0x13d6   :  { %v11580_v22 = vpop.f32.mrf.mxu0 }
0x13d7   :  { %v11672_v25 = vadd.f32 %v11671_v37, %v11580_v22  ;;  %v11828_v31 = vpop.f32.mrf.mxu1 }
0x13d8   :  { %v20727_v19 = vpop.f32.mrf.mxu0 }
0x13d9   :  { %v20760_v51 = vpop.f32.mrf.mxu1 }
0x13e0   :  { %v11751_v43 = vpop.f32.mrf.mxu0 }
0x13e1   :  { %v11752_v20 = vadd.f32 %v11751_v43, %v11672_v25  ;;  %v11986_v6 = vpop.f32.mrf.mxu1 }
0x13e2   :  { %v20749_v45 = vpop.f32.mrf.mxu0 }
0x13e3   :  { %v20782_v18 = vpop.f32.mrf.mxu1  ;;  %v11829_v39 = vadd.f32 %v11828_v31, %v11752_v20 }
0x13ea   :  { %v11911_v23 = vpop.f32.mrf.mxu0 }
0x13eb   :  { %v11912_v35 = vadd.f32 %v11911_v23, %v11829_v39  ;;  %v12164_v50 = vpop.f32.mrf.mxu1 }
0x13ec   :  { %v20771_v47 = vpop.f32.mrf.mxu0 }
0x13ed   :  { %v20804_v52 = vpop.f32.mrf.mxu1  ;;  %v23616_v11 = vadd.f32 %v11986_v6, %v11912_v35 }
0x13ee   :  { %v23624_v52 = vld [vmem:[%s24388_s5] sm:$0x1] }
0x13f4   :  { %v12073_v7 = vpop.f32.mrf.mxu0 }
0x13f5   :  { %v12321_v48 = vpop.f32.mrf.mxu1  ;;  %v12165_v51 = vadd.f32 %v12164_v50, %v12073_v7 }
0x13f6   :  { %v20793_v46 = vpop.f32.mrf.mxu0 }
0x13f7   :  { %v20826_v22 = vpop.f32.mrf.mxu1 }
0x13fe   :  { %v12244_v37 = vpop.f32.mrf.mxu0 }
0x13ff   :  { %v12479_v19 = vpop.f32.mrf.mxu1  ;;  %v12245_v43 = vadd.f32 %v12244_v37, %v12165_v51  ;;  %v12515_v37 = vld [vmem:[%s24383_s0 + $0x2] sm:$0x1] }
0x1400   :  { %v20815_v2 = vpop.f32.mrf.mxu0 }
0x1401   :  { %v20848_v25 = vpop.f32.mrf.mxu1  ;;  %v12322_v45 = vadd.f32 %v12321_v48, %v12245_v43  ;;  %v12514_v48 = vld [vmem:[%s24383_s0 + $0x5] sm:$0x1] }
0x1407   :  { %v12404_v18 = vpop.f32.mrf.mxu0 }
0x1408   :  { %v12405_v31 = vadd.f32 %v12404_v18, %v12322_v45 }
0x1409   :  { %v20837_v20 = vpop.f32.mrf.mxu0 }
0x140a   :  { %v12480_v39 = vadd.f32 %v12479_v19, %v12405_v31 }
0x140c   :  { %v12490_v23 = vrot.slane %v12480_v39, %v22336_v53 }
0x140e   :  { %v12491_v47 = vcombine.high %v12490_v23, %v12490_v23  ;;  %v12498_v6 = vrot.slane %v12490_v23, %v22336_v53 }
0x1410   :  { %v12505_v35 = vrot.slane %v12491_v47, %v22336_v53  ;;  %v12508_v2 = vadd.f32 %v23624_v52, %v12498_v6 }
0x1412   :  { %v12509_v50 = vadd.f32 %v23624_v52, %v12505_v35  ;;  %21603 = vtanh.f32 %v12508_v2 }
0x1414   :  { %21605 = vtanh.f32 %v12509_v50 }
0x141f   :  { %v21604_v7 = vpop.eup %21603 }
0x1420   :  { %v12512_v46 = vmul.f32 2.0, %v21604_v7 }
0x1421   :  { %v21606_v22 = vpop.eup %21605 }
0x1422   :  { %v12513_v19 = vmul.f32 2.0, %v21606_v22  ;;  %v12516_v51 = vmul.f32 %v12514_v48, %v12512_v46 }
0x1424   :  { %v12518_v25 = vmul.f32 %v12516_v51, %v12512_v46  ;;  %v12517_v43 = vmul.f32 %v12515_v37, %v12513_v19  ;;  %v24651_v37 = vld [vmem:[#allocation11_spill] sm:$0xff]  ;;  %v24653_v51 = vld [vmem:[#allocation14_spill] sm:$0xff] }
0x1426   :  { %v12520_v45 = vmul.f32 %v12518_v25, %v12512_v46  ;;  %v12519_v18 = vmul.f32 %v12517_v43, %v12513_v19 }
0x1428   :  { %v12523_v31 = vsel %vm59_vm1, %v12520_v45, 0  ;;  %v12521_v23 = vmul.f32 %v12519_v18, %v12513_v19  ;;  %v24652_v19 = vld [vmem:[#allocation12_spill] sm:$0xff] }
0x1429   :  { %v12592_v20 = vand.u32 4294901760, %v12523_v31 }
0x142a   :  { %v12985_v35 = vsel %vm59_vm1, %v12521_v23, 0 }
0x142b   :  { %v12593_v39 = vsub.f32 %v12523_v31, %v12592_v20  ;;  %20861 = vmatmul.mubr.f32.vlgmr.msra.gmra.mxu1 %v12592_v20  ;;  %v13054_v50 = vand.u32 4294901760, %v12985_v35 }
0x142c   :  { %20871 = vmatpush3.msra.mxu1 %v21781_v4  ;;  %20874 = vmatprep.mubr.msk.f32.mxu1 %vm21722_vm0, %v24532_v49 }
0x142d   :  { %20872 = vmatprep.subr.mxu1 %v24532_v49  ;;  %v12594_v47 = vand.u32 4294901760, %v12593_v39  ;;  %v13055_v7 = vsub.f32 %v12985_v35, %v13054_v50 }
0x142e   :  { %20873 = vmatpush3.msra.mxu1 %v21783_v5 }
0x142f   :  { %20875 = vmatmul.mubr.f32.vlgmr.msra.gmra.mxu1 %v12594_v47  ;;  %20884 = vmatprep.subr.mxu1 %v24532_v49  ;;  %v12595_v6 = vsub.f32 %v12593_v39, %v12594_v47  ;;  %v13056_v48 = vand.u32 4294901760, %v13055_v7 }
0x1430   :  { %20885 = vmatpush3.msra.mxu1 %v21781_v4  ;;  %20888 = vmatprep.mubr.msk.f32.mxu1 %vm21722_vm0, %v24532_v49 }
0x1431   :  { %20886 = vmatprep.subr.mxu1 %v24532_v49  ;;  %v12596_v2 = vand.u32 4294901760, %v12595_v6  ;;  %v13057_v46 = vsub.f32 %v13055_v7, %v13056_v48 }
0x1432   :  { %20887 = vmatpush3.msra.mxu1 %v21783_v5 }
0x1433   :  { %20854 = vmatmul.mubr.f32.vlgmr.msra.gmra.mxu0 %v12596_v2  ;;  %20889 = vmatmul.mubr.f32.vlgmr.msra.gmra.mxu1 %v12592_v20  ;;  %v13058_v22 = vand.u32 4294901760, %v13057_v46 }
0x1434   :  { %20898 = vmatprep.subr.mxu1 %v24532_v49  ;;  %20864 = vmatpush3.msra.mxu0 %v21790_v8 }
0x1435   :  { %20899 = vmatpush3.msra.mxu1 %v21873_v36  ;;  %20865 = vmatprep.subr.mxu0 %v24532_v49 }
0x1436   :  { %20900 = vmatprep.subr.mxu1 %v24532_v49  ;;  %20866 = vmatpush3.msra.mxu0 %v21793_v9 }
0x1437   :  { %20867 = vmatprep.mubr.msk.f32.mxu0 %vm21722_vm0, %v24532_v49  ;;  %20901 = vmatpush3.msra.mxu1 %v21880_v38 }
0x1438   :  { %20902 = vmatprep.mubr.msk.f32.mxu1 %vm21722_vm0, %v24532_v49  ;;  %20868 = vmatmul.mubr.f32.vlgmr.msra.gmra.mxu0 %v12593_v39 }
0x1439   :  { %20877 = vmatprep.subr.mxu0 %v24532_v49  ;;  %20903 = vmatmul.mubr.f32.vlgmr.msra.gmra.mxu1 %v13054_v50 }
0x143a   :  { %20912 = vmatprep.subr.mxu1 %v24532_v49  ;;  %20878 = vmatpush3.msra.mxu0 %v21802_v12 }
0x143b   :  { %20913 = vmatpush3.msra.mxu1 %v21819_v21  ;;  %20879 = vmatprep.subr.mxu0 %v24532_v49 }
0x143c   :  { %20914 = vmatprep.subr.mxu1 %v24532_v49  ;;  %20880 = vmatpush3.msra.mxu0 %v21805_v13 }
0x143d   :  { %20881 = vmatprep.mubr.msk.f32.mxu0 %vm21722_vm0, %v24532_v49  ;;  %20915 = vmatpush3.msra.mxu1 %v21827_v26 }
0x143e   :  { %20916 = vmatprep.mubr.msk.f32.mxu1 %vm21722_vm0, %v24532_v49  ;;  %20882 = vmatmul.mubr.f32.vlgmr.msra.gmra.mxu0 %v12592_v20 }
0x143f   :  { %20891 = vmatprep.subr.mxu0 %v24532_v49  ;;  %20917 = vmatmul.mubr.f32.vlgmr.msra.gmra.mxu1 %v13056_v48 }
0x1440   :  { %20926 = vmatprep.subr.mxu1 %v24532_v49  ;;  %20892 = vmatpush3.msra.mxu0 %v21819_v21 }
0x1441   :  { %20927 = vmatpush3.msra.mxu1 %v21819_v21  ;;  %20893 = vmatprep.subr.mxu0 %v24532_v49 }
0x1442   :  { %20928 = vmatprep.subr.mxu1 %v24532_v49  ;;  %20894 = vmatpush3.msra.mxu0 %v21827_v26 }
0x1443   :  { %20895 = vmatprep.mubr.msk.f32.mxu0 %vm21722_vm0, %v24532_v49  ;;  %20929 = vmatpush3.msra.mxu1 %v21827_v26 }
0x1444   :  { %20930 = vmatprep.mubr.msk.f32.mxu1 %vm21722_vm0, %v24532_v49  ;;  %20896 = vmatmul.mubr.f32.vlgmr.msra.gmra.mxu0 %v13058_v22 }
0x1445   :  { %20905 = vmatprep.subr.mxu0 %v24532_v49  ;;  %20931 = vmatmul.mubr.f32.vlgmr.msra.gmra.mxu1 %v13054_v50 }
0x1446   :  { %20906 = vmatpush3.msra.mxu0 %v21832_v27  ;;  %20909 = vmatprep.mubr.msk.f32.mxu0 %vm21722_vm0, %v24532_v49 }
0x1447   :  { %20907 = vmatprep.subr.mxu0 %v24532_v49  ;;  %20944 = vmatprep.subr.mxu1 %v24532_v49 }
0x1448   :  { %20908 = vmatpush3.msra.mxu0 %v21840_v29  ;;  %20945 = vmatpush3.msra.mxu1 %v21985_v3 }
0x1449   :  { %20910 = vmatmul.mubr.f32.vlgmr.msra.gmra.mxu0 %v13055_v7  ;;  %20919 = vmatprep.subr.mxu0 %v24532_v49 }
0x144a   :  { %20920 = vmatpush3.msra.mxu0 %v21848_v30  ;;  %20923 = vmatprep.mubr.msk.f32.mxu0 %vm21722_vm0, %v24532_v49 }
0x144b   :  { %20921 = vmatprep.subr.mxu0 %v24532_v49  ;;  %20946 = vmatprep.subr.mxu1 %v24532_v49 }
0x144c   :  { %20922 = vmatpush3.msra.mxu0 %v21854_v32  ;;  %20947 = vmatpush3.msra.mxu1 %v24651_v37 }
0x144d   :  { %20924 = vmatmul.mubr.f32.vlgmr.msra.gmra.mxu0 %v13054_v50  ;;  %20948 = vmatprep.subr.mxu1 %v24532_v49 }
0x144e   :  { %20949 = vmatpush3.msra.mxu1 %v24652_v19  ;;  %20933 = vmatprep.subr.mxu0 %v24532_v49 }
0x144f   :  { %20950 = vmatprep.subr.mxu1 %v24532_v49  ;;  %20952 = vmatprep.mubr.msk.f32.mxu1 %vm21722_vm0, %v24532_v49 }
0x1450   :  { %20951 = vmatpush3.msra.mxu1 %v24653_v51  ;;  %20934 = vmatpush3.msra.mxu0 %v21949_v54 }
0x1451   :  { %20966 = vmatprep.subr.mxu1 %v24532_v49  ;;  %20935 = vmatprep.subr.mxu0 %v24532_v49 }
0x1452   :  { %20936 = vmatpush3.msra.mxu0 %v21951_v55  ;;  %20941 = vmatprep.mubr.msk.f32.mxu0 %vm21722_vm0, %v24532_v49 }
0x1453   :  { %20937 = vmatprep.subr.mxu0 %v24532_v49 }
0x1454   :  { %20938 = vmatpush3.msra.mxu0 %v21953_v56 }
0x1455   :  { %20939 = vmatprep.subr.mxu0 %v24532_v49 }
0x1456   :  { %20940 = vmatpush3.msra.mxu0 %v21998_v14 }
0x1457   :  { %20955 = vmatprep.subr.mxu0 %v24532_v49 }
0x14eb   :  { %v12679_v25 = vpop.f32.mrf.mxu1 }
0x14ed   :  { %v20862_v43 = vpop.f32.mrf.mxu1 }
0x14ef   :  { %v12830_v45 = vpop.f32.mrf.mxu1 }
0x14f1   :  { %v20876_v18 = vpop.f32.mrf.mxu1 }
0x14f2   :  { %v23720_v18 = vld [vmem:[%s24386_s3] sm:$0x1] }
0x14f3   :  { %v12598_v31 = vpop.f32.mrf.mxu0  ;;  %v12980_v20 = vpop.f32.mrf.mxu1 }
0x14f4   :  { %v12599_v39 = vadd.f32 %v12598_v31, %v23614_v24 }
0x14f5   :  { %v20855_v23 = vpop.f32.mrf.mxu0  ;;  %v20890_v47 = vpop.f32.mrf.mxu1 }
0x14f6   :  { %v12680_v6 = vadd.f32 %v12679_v25, %v12599_v39 }
0x14f8   :  { %v12755_v35 = vpop.f32.mrf.mxu0 }
0x14f9   :  { %v12756_v2 = vadd.f32 %v12755_v35, %v12680_v6  ;;  %v13141_v50 = vpop.f32.mrf.mxu1 }
0x14fa   :  { %v20869_v7 = vpop.f32.mrf.mxu0 }
0x14fb   :  { %v20904_v48 = vpop.f32.mrf.mxu1  ;;  %v12831_v46 = vadd.f32 %v12830_v45, %v12756_v2 }
0x14fe   :  { %v12907_v22 = vpop.f32.mrf.mxu0 }
0x14ff   :  { %v12908_v51 = vadd.f32 %v12907_v22, %v12831_v46  ;;  %v13292_v19 = vpop.f32.mrf.mxu1  ;;  %v23727_v46 = vld [vmem:[%s24386_s3 + $0x1] sm:$0x1] }
0x1500   :  { %v20883_v37 = vpop.f32.mrf.mxu0 }
0x1501   :  { %v12981_v43 = vadd.f32 %v12980_v20, %v12908_v51  ;;  %v20918_v32 = vpop.f32.mrf.mxu1 }
0x1503   :  { %v13446_v24 = vadd.f32 %v23720_v18, %v12981_v43 }
0x1504   :  { %v13060_v25 = vpop.f32.mrf.mxu0 }
0x1505   :  { %21607 = vtanh.f32 %v13446_v24  ;;  %v13061_v31 = vadd.f32 %v13060_v25, %v23616_v11  ;;  %v13442_v39 = vpop.f32.mrf.mxu1  ;;  %v18515_v22 = vmul.f32 -1.442695, %v13446_v24 }
0x1506   :  { %v20897_v23 = vpop.f32.mrf.mxu0 }
0x1507   :  { %v20932_v45 = vpop.f32.mrf.mxu1  ;;  %v13142_v47 = vadd.f32 %v13141_v50, %v13061_v31 }
0x1509   :  { %v13217_v6 = vpop.f32.mrf.mxu0 }
0x150a   :  { %v13218_v35 = vadd.f32 %v13217_v6, %v13142_v47 }
0x150b   :  { %v20911_v37 = vpop.f32.mrf.mxu0 }
0x150c   :  { %v13293_v51 = vadd.f32 %v13292_v19, %v13218_v35 }
0x150d   :  { %v13369_v32 = vpop.f32.mrf.mxu0 }
0x150e   :  { %v13370_v20 = vadd.f32 %v13369_v32, %v13293_v51 }
0x150f   :  { %v20925_v2 = vpop.f32.mrf.mxu0 }
0x1510   :  { %v13443_v7 = vadd.f32 %v13442_v39, %v13370_v20 }
0x1512   :  { %v21608_v48 = vpop.eup %21607  ;;  %v13447_v11 = vadd.f32 %v23727_v46, %v13443_v7 }
0x1513   :  { %13466 = vrot.lane.b32.xlu1 %v21608_v48, %s21723_s18 }
0x1514   :  { %21609 = vtanh.f32 %v13447_v11  ;;  %v18516_v19 = vmul.f32 -1.442695, %v13447_v11 }
0x1515   :  { %21611 = vpow2.f32 %v18515_v22 }
0x1516   :  { %21613 = vpow2.f32 %v18516_v19 }
0x1521   :  { %v21610_v50 = vpop.eup %21609 }
0x1522   :  { %13468 = vrot.lane.b32.xlu0 %v21610_v50, %s21723_s18  ;;  %v21612_v43 = vpop.eup %21611 }
0x1523   :  { %v13454_v25 = vadd.f32 1.0, %v21612_v43  ;;  %v21614_v31 = vpop.eup %21613 }
0x1524   :  { %v13455_v39 = vadd.f32 1.0, %v21614_v31 }
0x1525   :  { %21615 = vrcp.f32 %v13454_v25 }
0x1526   :  { %21617 = vrcp.f32 %v13455_v39 }
0x1532   :  { %v21616_v23 = vpop.eup %21615 }
0x1533   :  { %v21618_v6 = vpop.eup %21617  ;;  %v13462_v24 = vmul.f32 %v21616_v23, %v23406_v17 }
0x1534   :  { %v13463_v20 = vmul.f32 %v21618_v6, %v23410_v63 }
0x1585   :  { %v13467_v45 = vpop.permute.xlu1 %13466 }
0x1586   :  { %v13472_v47 = vmul.f32 %v21616_v23, %v13467_v45 }
0x1588   :  { %13476 = vrot.lane.b32.xlu1 %v13472_v47, %s21724_s19 }
0x1594   :  { %v13469_v35 = vpop.permute.xlu0 %13468 }
0x1595   :  { %v13473_v37 = vmul.f32 %v21618_v6, %v13469_v35 }
0x1597   :  { %13478 = vrot.lane.b32.xlu0 %v13473_v37, %s21724_s19 }
0x15fa   :  { %v13477_v51 = vpop.permute.xlu1 %13476 }
0x15fb   :  { %v23735_v32 = vadd.f32 %v13477_v51, %v13462_v24 }
0x15fd   :  { %21619 = vtanh.f32 %v23735_v32 }
0x1609   :  { %v13479_v2 = vpop.permute.xlu0 %13478 }
0x160a   :  { %v21620_v7 = vpop.eup %21619  ;;  %v23739_v48 = vadd.f32 %v13479_v2, %v13463_v20 }
0x160b   :  { %13488 = vrot.lane.b32.xlu1 %v21620_v7, %s21723_s18 }
0x160c   :  { %21621 = vtanh.f32 %v23739_v48  ;;  %v14484_v22 = vrot.slane %v23739_v48, 7 }
0x160e   :  { %v14485_v63 = vsel %vm2024_vm2, %v14484_v22, %v23735_v32 }
0x1619   :  { %v21622_v11 = vpop.eup %21621 }
0x161a   :  { %13490 = vrot.lane.b32.xlu0 %v21622_v11, %s21723_s18 }
0x167d   :  { %v13489_v50 = vpop.permute.xlu1 %13488 }
0x167e   :  { %v13494_v17 = vmul.f32 %v21616_v23, %v13489_v50  ;;  %v24656_v50 = vld [vmem:[#allocation22_spill] sm:$0xff] }
0x1680   :  { %13497 = vrot.lane.b32.xlu1 %v13494_v17, %s21724_s19  ;;  %v24657_v17 = vld [vmem:[#allocation24_spill] sm:$0xff] }
0x1684   :  { %14486 = vrot.lane.b32.xlu1 %v14485_v63, %s21725_s20 }
0x168c   :  { %v13491_v19 = vpop.permute.xlu0 %13490 }
0x168d   :  { %v23749_v43 = vmul.f32 %v21618_v6, %v13491_v19  ;;  %v24658_v19 = vld [vmem:[#allocation21_spill] sm:$0xff] }
0x168f   :  { %24654 = vst [vmem:[#allocation20_spill] sm:$0xff] %v23749_v43  ;;  %13993 = vrot.lane.b32.xlu0 %v23749_v43, %s21724_s19  ;;  %v24674_v43 = vld [vmem:[#allocation34_spill] sm:$0xff] }
0x16f2   :  { %v23753_v25 = vpop.permute.xlu1 %13497 }
0x16f3   :  { %24655 = vst [vmem:[#allocation45_spill] sm:$0xff] %v23753_v25  ;;  %v13506_v31 = vsel %vm1044_vm4, %v23753_v25, 0  ;;  %v24670_v25 = vld [vmem:[#allocation30_spill] sm:$0xff] }
0x16f4   :  { %v13577_v39 = vand.u32 4294901760, %v13506_v31 }
0x16f6   :  { %v13578_v23 = vsub.f32 %v13506_v31, %v13577_v39  ;;  %20953 = vmatmul.mubr.f32.vlgmr.msra.gmra.mxu1 %v13577_v39  ;;  %v14487_v11 = vpop.permute.xlu1 %14486  ;;  %v24659_v31 = vld [vmem:[#allocation40_spill] sm:$0xff] }
0x16f7   :  { %20967 = vmatpush3.msra.mxu1 %v21949_v54  ;;  %20974 = vmatprep.mubr.msk.f32.mxu1 %vm21722_vm0, %v24532_v49  ;;  %v14488_v22 = vsel %vm1044_vm4, %v14487_v11, 0 }
0x16f8   :  { %v13579_v45 = vand.u32 4294901760, %v13578_v23  ;;  %20968 = vmatprep.subr.mxu1 %v24532_v49  ;;  %v23853_v63 = vand.u32 4294901760, %v14488_v22 }
0x16f9   :  { %20969 = vmatpush3.msra.mxu1 %v21951_v55 }
0x16fa   :  { %v13580_v47 = vsub.f32 %v13578_v23, %v13579_v45  ;;  %20970 = vmatprep.subr.mxu1 %v24532_v49 }
0x16fb   :  { %20971 = vmatpush3.msra.mxu1 %v21953_v56 }
0x16fc   :  { %v13581_v6 = vand.u32 4294901760, %v13580_v47  ;;  %20972 = vmatprep.subr.mxu1 %v24532_v49  ;;  %v24662_v47 = vld [vmem:[#allocation25_spill] sm:$0xff] }
0x16fd   :  { %20973 = vmatpush3.msra.mxu1 %v21998_v14 }
0x16fe   :  { %20975 = vmatmul.mubr.f32.vlgmr.msra.gmra.mxu1 %v13579_v45  ;;  %20988 = vmatprep.subr.mxu1 %v24532_v49  ;;  %v14560_v45 = vsub.f32 %v14488_v22, %v23853_v63  ;;  %v24669_v22 = vld [vmem:[#allocation33_spill] sm:$0xff] }
0x16ff   :  { %20942 = vmatmul.mubr.f32.vlgmr.msra.gmra.mxu0 %v13581_v6  ;;  %20989 = vmatpush3.msra.mxu1 %v21949_v54  ;;  %v24663_v6 = vld [vmem:[#allocation42_spill] sm:$0xff] }
0x1700   :  { %20956 = vmatpush3.msra.mxu0 %v21956_v57  ;;  %20990 = vmatprep.subr.mxu1 %v24532_v49 }
0x1701   :  { %20957 = vmatprep.subr.mxu0 %v24532_v49  ;;  %20991 = vmatpush3.msra.mxu1 %v21951_v55  ;;  %v13994_v35 = vpop.permute.xlu0 %13993 }
0x1702   :  { %20958 = vmatpush3.msra.mxu0 %v21959_v58  ;;  %20992 = vmatprep.subr.mxu1 %v24532_v49  ;;  %v13995_v37 = vsel %vm1044_vm4, %v13994_v35, 0  ;;  %v24664_v35 = vld [vmem:[#allocation26_spill] sm:$0xff] }
0x1703   :  { %20959 = vmatprep.subr.mxu0 %v24532_v49  ;;  %20993 = vmatpush3.msra.mxu1 %v21953_v56  ;;  %v23787_v24 = vand.u32 4294901760, %v13995_v37 }
0x1704   :  { %20960 = vmatpush3.msra.mxu0 %v21962_v59  ;;  %20994 = vmatprep.subr.mxu1 %v24532_v49 }
0x1705   :  { %20961 = vmatprep.subr.mxu0 %v24532_v49  ;;  %20963 = vmatprep.mubr.msk.f32.mxu0 %vm21722_vm0, %v24532_v49  ;;  %v14067_v51 = vsub.f32 %v13995_v37, %v23787_v24  ;;  %v24665_v37 = vld [vmem:[#allocation43_spill] sm:$0xff] }
0x1706   :  { %20962 = vmatpush3.msra.mxu0 %v22001_v15  ;;  %20995 = vmatpush3.msra.mxu1 %v21998_v14 }
0x1707   :  { %20996 = vmatprep.mubr.msk.f32.mxu1 %vm21722_vm0, %v24532_v49  ;;  %20964 = vmatmul.mubr.f32.vlgmr.msra.gmra.mxu0 %v13578_v23  ;;  %v14068_v20 = vand.u32 4294901760, %v14067_v51  ;;  %v24661_v23 = vld [vmem:[#allocation41_spill] sm:$0xff] }
0x1708   :  { %20977 = vmatprep.subr.mxu0 %v24532_v49  ;;  %20997 = vmatmul.mubr.f32.vlgmr.msra.gmra.mxu1 %v13577_v39 }
0x1709   :  { %21010 = vmatprep.subr.mxu1 %v24532_v49  ;;  %20978 = vmatpush3.msra.mxu0 %v21967_v60  ;;  %v14069_v2 = vsub.f32 %v14067_v51, %v14068_v20 }
0x170a   :  { %21011 = vmatpush3.msra.mxu1 %v22094_v28  ;;  %20979 = vmatprep.subr.mxu0 %v24532_v49 }
0x170b   :  { %21012 = vmatprep.subr.mxu1 %v24532_v49  ;;  %20980 = vmatpush3.msra.mxu0 %v21970_v61  ;;  %v14070_v7 = vand.u32 4294901760, %v14069_v2 }
0x170c   :  { %21013 = vmatpush3.msra.mxu1 %v22102_v34  ;;  %20981 = vmatprep.subr.mxu0 %v24532_v49 }
0x170d   :  { %21014 = vmatprep.subr.mxu1 %v24532_v49  ;;  %20982 = vmatpush3.msra.mxu0 %v21973_v62 }
0x170e   :  { %21015 = vmatpush3.msra.mxu1 %v22112_v40  ;;  %20983 = vmatprep.subr.mxu0 %v24532_v49 }
0x170f   :  { %21016 = vmatprep.subr.mxu1 %v24532_v49  ;;  %20984 = vmatpush3.msra.mxu0 %v24534_v0 }
0x1710   :  { %20985 = vmatprep.mubr.msk.f32.mxu0 %vm21722_vm0, %v24532_v49  ;;  %21017 = vmatpush3.msra.mxu1 %v24535_v33 }
0x1711   :  { %21018 = vmatprep.mubr.msk.f32.mxu1 %vm21722_vm0, %v24532_v49  ;;  %20986 = vmatmul.mubr.f32.vlgmr.msra.gmra.mxu0 %v13577_v39  ;;  %v24660_v39 = vld [vmem:[#allocation23_spill] sm:$0xff] }
0x1712   :  { %20999 = vmatprep.subr.mxu0 %v24532_v49  ;;  %21019 = vmatmul.mubr.f32.vlgmr.msra.gmra.mxu1 %v23787_v24 }
0x1713   :  { %21032 = vmatprep.subr.mxu1 %v24532_v49  ;;  %21000 = vmatpush3.msra.mxu0 %v22031_v41 }
0x1714   :  { %21033 = vmatpush3.msra.mxu1 %v22031_v41  ;;  %21001 = vmatprep.subr.mxu0 %v24532_v49 }
0x1715   :  { %21034 = vmatprep.subr.mxu1 %v24532_v49  ;;  %21002 = vmatpush3.msra.mxu0 %v24536_v42 }
0x1716   :  { %21035 = vmatpush3.msra.mxu1 %v24536_v42  ;;  %21003 = vmatprep.subr.mxu0 %v24532_v49 }
0x1717   :  { %21036 = vmatprep.subr.mxu1 %v24532_v49  ;;  %21004 = vmatpush3.msra.mxu0 %v24563_v1 }
0x1718   :  { %21037 = vmatpush3.msra.mxu1 %v24563_v1  ;;  %21005 = vmatprep.subr.mxu0 %v24532_v49 }
0x1719   :  { %21038 = vmatprep.subr.mxu1 %v24532_v49  ;;  %21006 = vmatpush3.msra.mxu0 %v24624_v10 }
0x171a   :  { %21007 = vmatprep.mubr.msk.f32.mxu0 %vm21722_vm0, %v24532_v49  ;;  %21039 = vmatpush3.msra.mxu1 %v24624_v10 }
0x171b   :  { %21040 = vmatprep.mubr.msk.f32.mxu1 %vm21722_vm0, %v24532_v49  ;;  %21008 = vmatmul.mubr.f32.vlgmr.msra.gmra.mxu0 %v14070_v7  ;;  %v24667_v7 = vld [vmem:[#allocation29_spill] sm:$0xff] }
0x171c   :  { %21021 = vmatprep.subr.mxu0 %v24532_v49  ;;  %21041 = vmatmul.mubr.f32.vlgmr.msra.gmra.mxu1 %v14068_v20  ;;  %v24666_v20 = vld [vmem:[#allocation28_spill] sm:$0xff] }
0x171d   :  { %21054 = vmatprep.subr.mxu1 %v24532_v49  ;;  %21022 = vmatpush3.msra.mxu0 %v24625_v16 }
0x171e   :  { %21055 = vmatpush3.msra.mxu1 %v22031_v41  ;;  %21023 = vmatprep.subr.mxu0 %v24532_v49 }
0x171f   :  { %21056 = vmatprep.subr.mxu1 %v24532_v49  ;;  %21024 = vmatpush3.msra.mxu0 %v24626_v44 }
0x1720   :  { %21057 = vmatpush3.msra.mxu1 %v24536_v42  ;;  %21025 = vmatprep.subr.mxu0 %v24532_v49 }
0x1721   :  { %21058 = vmatprep.subr.mxu1 %v24532_v49  ;;  %21026 = vmatpush3.msra.mxu0 %v24656_v50 }
0x1722   :  { %21059 = vmatpush3.msra.mxu1 %v24563_v1  ;;  %21027 = vmatprep.subr.mxu0 %v24532_v49 }
0x1723   :  { %21060 = vmatprep.subr.mxu1 %v24532_v49  ;;  %21028 = vmatpush3.msra.mxu0 %v24657_v17 }
0x1724   :  { %21029 = vmatprep.mubr.msk.f32.mxu0 %vm21722_vm0, %v24532_v49  ;;  %21061 = vmatpush3.msra.mxu1 %v24624_v10 }
0x1725   :  { %21062 = vmatprep.mubr.msk.f32.mxu1 %vm21722_vm0, %v24532_v49  ;;  %21030 = vmatmul.mubr.f32.vlgmr.msra.gmra.mxu0 %v14067_v51  ;;  %v14561_v51 = vand.u32 4294901760, %v14560_v45 }
0x1726   :  { %21043 = vmatprep.subr.mxu0 %v24532_v49  ;;  %21063 = vmatmul.mubr.f32.vlgmr.msra.gmra.mxu1 %v23787_v24 }
0x1727   :  { %21076 = vmatprep.subr.mxu1 %v24532_v49  ;;  %21044 = vmatpush3.msra.mxu0 %v24658_v19  ;;  %v14562_v2 = vsub.f32 %v14560_v45, %v14561_v51 }
0x1728   :  { %21077 = vmatpush3.msra.mxu1 %v24659_v31  ;;  %21045 = vmatprep.subr.mxu0 %v24532_v49 }
0x1729   :  { %21078 = vmatprep.subr.mxu1 %v24532_v49  ;;  %21046 = vmatpush3.msra.mxu0 %v24660_v39  ;;  %v14563_v11 = vand.u32 4294901760, %v14562_v2  ;;  %v24671_v2 = vld [vmem:[#allocation32_spill] sm:$0xff] }
0x172a   :  { %21079 = vmatpush3.msra.mxu1 %v24661_v23  ;;  %21047 = vmatprep.subr.mxu0 %v24532_v49 }
0x172b   :  { %21080 = vmatprep.subr.mxu1 %v24532_v49  ;;  %21048 = vmatpush3.msra.mxu0 %v24662_v47 }
0x172c   :  { %21081 = vmatpush3.msra.mxu1 %v24663_v6  ;;  %21049 = vmatprep.subr.mxu0 %v24532_v49 }
0x172d   :  { %21082 = vmatprep.subr.mxu1 %v24532_v49  ;;  %21050 = vmatpush3.msra.mxu0 %v24664_v35 }
0x172e   :  { %21051 = vmatprep.mubr.msk.f32.mxu0 %vm21722_vm0, %v24532_v49  ;;  %21083 = vmatpush3.msra.mxu1 %v24665_v37 }
0x172f   :  { %21084 = vmatprep.mubr.msk.f32.mxu1 %vm21722_vm0, %v24532_v49  ;;  %21052 = vmatmul.mubr.f32.vlgmr.msra.gmra.mxu0 %v23787_v24  ;;  %v24668_v24 = vld [vmem:[#allocation31_spill] sm:$0xff] }
0x1730   :  { %21065 = vmatprep.subr.mxu0 %v24532_v49  ;;  %21085 = vmatmul.mubr.f32.vlgmr.msra.gmra.mxu1 %v23853_v63 }
0x1731   :  { %21098 = vmatprep.subr.mxu1 %v24532_v49  ;;  %21066 = vmatpush3.msra.mxu0 %v24666_v20 }
0x1732   :  { %21099 = vmatpush3.msra.mxu1 %v24666_v20  ;;  %21067 = vmatprep.subr.mxu0 %v24532_v49 }
0x1733   :  { %21100 = vmatprep.subr.mxu1 %v24532_v49  ;;  %21068 = vmatpush3.msra.mxu0 %v24667_v7 }
0x1734   :  { %21101 = vmatpush3.msra.mxu1 %v24667_v7  ;;  %21069 = vmatprep.subr.mxu0 %v24532_v49 }
0x1735   :  { %21102 = vmatprep.subr.mxu1 %v24532_v49  ;;  %21070 = vmatpush3.msra.mxu0 %v24668_v24 }
0x1736   :  { %21103 = vmatpush3.msra.mxu1 %v24668_v24  ;;  %21071 = vmatprep.subr.mxu0 %v24532_v49 }
0x1737   :  { %21104 = vmatprep.subr.mxu1 %v24532_v49  ;;  %21072 = vmatpush3.msra.mxu0 %v24669_v22 }
0x1738   :  { %21073 = vmatprep.mubr.msk.f32.mxu0 %vm21722_vm0, %v24532_v49  ;;  %21105 = vmatpush3.msra.mxu1 %v24669_v22 }
0x1739   :  { %21106 = vmatprep.mubr.msk.f32.mxu1 %vm21722_vm0, %v24532_v49  ;;  %21074 = vmatmul.mubr.f32.vlgmr.msra.gmra.mxu0 %v14563_v11  ;;  %v24672_v11 = vld [vmem:[#allocation35_spill] sm:$0xff] }
0x173a   :  { %21087 = vmatprep.subr.mxu0 %v24532_v49  ;;  %21107 = vmatmul.mubr.f32.vlgmr.msra.gmra.mxu1 %v14561_v51  ;;  %v24673_v51 = vld [vmem:[#allocation37_spill] sm:$0xff] }
0x173b   :  { %21120 = vmatprep.subr.mxu1 %v24532_v49  ;;  %21088 = vmatpush3.msra.mxu0 %v24670_v25 }
0x173c   :  { %21121 = vmatpush3.msra.mxu1 %v24666_v20  ;;  %21089 = vmatprep.subr.mxu0 %v24532_v49 }
0x173d   :  { %21122 = vmatprep.subr.mxu1 %v24532_v49  ;;  %21090 = vmatpush3.msra.mxu0 %v24671_v2  ;;  %v24678_v2 = vld [vmem:[#allocation9_spill] sm:$0xff] }
0x173e   :  { %21123 = vmatpush3.msra.mxu1 %v24667_v7  ;;  %21091 = vmatprep.subr.mxu0 %v24532_v49 }
0x173f   :  { %21124 = vmatprep.subr.mxu1 %v24532_v49  ;;  %21092 = vmatpush3.msra.mxu0 %v24672_v11  ;;  %v24676_v11 = vld [vmem:[#allocation8_spill] sm:$0xff] }
0x1740   :  { %21125 = vmatpush3.msra.mxu1 %v24668_v24  ;;  %21093 = vmatprep.subr.mxu0 %v24532_v49 }
0x1741   :  { %21126 = vmatprep.subr.mxu1 %v24532_v49  ;;  %21094 = vmatpush3.msra.mxu0 %v24673_v51  ;;  %v24675_v51 = vld [vmem:[#allocation36_spill] sm:$0xff] }
0x1742   :  { %21095 = vmatprep.mubr.msk.f32.mxu0 %vm21722_vm0, %v24532_v49  ;;  %21127 = vmatpush3.msra.mxu1 %v24669_v22 }
0x1743   :  { %21128 = vmatprep.mubr.msk.f32.mxu1 %vm21722_vm0, %v24532_v49  ;;  %21096 = vmatmul.mubr.f32.vlgmr.msra.gmra.mxu0 %v14560_v45  ;;  %v24677_v45 = vld [vmem:[#allocation38_spill] sm:$0xff] }
0x1744   :  { %21109 = vmatprep.subr.mxu0 %v24532_v49  ;;  %21129 = vmatmul.mubr.f32.vlgmr.msra.gmra.mxu1 %v23853_v63 }
0x1745   :  { %21110 = vmatpush3.msra.mxu0 %v24674_v43  ;;  %21117 = vmatprep.mubr.msk.f32.mxu0 %vm21722_vm0, %v24532_v49  ;;  %v24679_v43 = vld [vmem:[#allocation39_spill] sm:$0xff] }
0x1746   :  { %21111 = vmatprep.subr.mxu0 %v24532_v49  ;;  %21138 = vmatprep.subr.mxu1 %v24532_v49 }
0x1747   :  { %21112 = vmatpush3.msra.mxu0 %v24675_v51  ;;  %21139 = vmatpush3.msra.mxu1 %v24676_v11 }
0x1748   :  { %21113 = vmatprep.subr.mxu0 %v24532_v49  ;;  %21140 = vmatprep.subr.mxu1 %v24532_v49 }
0x1749   :  { %21114 = vmatpush3.msra.mxu0 %v24677_v45  ;;  %21141 = vmatpush3.msra.mxu1 %v24678_v2 }
0x174a   :  { %21115 = vmatprep.subr.mxu0 %v24532_v49  ;;  %21142 = vmatprep.mubr.msk.f32.mxu1 %vm21722_vm0, %v24532_v49 }
0x174b   :  { %21116 = vmatpush3.msra.mxu0 %v24679_v43  ;;  %21152 = vmatprep.subr.mxu1 %v24532_v49 }
0x174c   :  { %21118 = vmatmul.mubr.f32.vlgmr.msra.gmra.mxu0 %v23853_v63  ;;  %21131 = vmatprep.subr.mxu0 %v24532_v49 }
0x174d   :  { %21132 = vmatpush3.msra.mxu0 %v21781_v4  ;;  %21135 = vmatprep.mubr.msk.f32.mxu0 %vm21722_vm0, %v24532_v49 }
0x174e   :  { %21133 = vmatprep.subr.mxu0 %v24532_v49 }
0x174f   :  { %21134 = vmatpush3.msra.mxu0 %v21783_v5 }
0x1750   :  { %21145 = vmatprep.subr.mxu0 %v24532_v49 }
0x17b6   :  { %v13674_v2 = vpop.f32.mrf.mxu1 }
0x17b8   :  { %v20954_v45 = vpop.f32.mrf.mxu1 }
0x17be   :  { %v13831_v43 = vpop.f32.mrf.mxu1 }
0x17bf   :  { %v13583_v11 = vpop.f32.mrf.mxu0 }
0x17c0   :  { %v13675_v51 = vadd.f32 %v13674_v2, %v13583_v11  ;;  %v20976_v25 = vpop.f32.mrf.mxu1 }
0x17c1   :  { %v20943_v63 = vpop.f32.mrf.mxu0 }
0x17c7   :  { %v13754_v22 = vpop.f32.mrf.mxu0 }
0x17c8   :  { %v13755_v24 = vadd.f32 %v13754_v22, %v13675_v51  ;;  %v13989_v7 = vpop.f32.mrf.mxu1 }
0x17c9   :  { %v20965_v20 = vpop.f32.mrf.mxu0 }
0x17ca   :  { %v20998_v37 = vpop.f32.mrf.mxu1  ;;  %v13832_v35 = vadd.f32 %v13831_v43, %v13755_v24 }
0x17d1   :  { %v13914_v6 = vpop.f32.mrf.mxu0 }
0x17d2   :  { %v13915_v47 = vadd.f32 %v13914_v6, %v13832_v35  ;;  %v14163_v23 = vpop.f32.mrf.mxu1 }
0x17d3   :  { %v20987_v39 = vpop.f32.mrf.mxu0 }
0x17d4   :  { %v21020_v31 = vpop.f32.mrf.mxu1  ;;  %v23943_v19 = vadd.f32 %v13989_v7, %v13915_v47 }
0x17db   :  { %v14072_v17 = vpop.f32.mrf.mxu0 }
0x17dc   :  { %v14164_v45 = vadd.f32 %v14163_v23, %v14072_v17  ;;  %v14320_v50 = vpop.f32.mrf.mxu1 }
0x17dd   :  { %v21009_v44 = vpop.f32.mrf.mxu0 }
0x17de   :  { %v21042_v2 = vpop.f32.mrf.mxu1 }
0x17e5   :  { %v14243_v25 = vpop.f32.mrf.mxu0 }
0x17e6   :  { %v14244_v11 = vadd.f32 %v14243_v25, %v14164_v45  ;;  %v14478_v63 = vpop.f32.mrf.mxu1 }
0x17e7   :  { %v21031_v22 = vpop.f32.mrf.mxu0 }
0x17e8   :  { %v21064_v51 = vpop.f32.mrf.mxu1  ;;  %v14321_v20 = vadd.f32 %v14320_v50, %v14244_v11 }
0x17ef   :  { %v14403_v37 = vpop.f32.mrf.mxu0 }
0x17f0   :  { %v14404_v43 = vadd.f32 %v14403_v37, %v14321_v20  ;;  %v14656_v24 = vpop.f32.mrf.mxu1 }
0x17f1   :  { %v21053_v6 = vpop.f32.mrf.mxu0 }
0x17f2   :  { %v21086_v35 = vpop.f32.mrf.mxu1  ;;  %v23945_v39 = vadd.f32 %v14478_v63, %v14404_v43 }
0x17f9   :  { %v14565_v31 = vpop.f32.mrf.mxu0 }
0x17fa   :  { %v14813_v47 = vpop.f32.mrf.mxu1  ;;  %v14657_v2 = vadd.f32 %v14656_v24, %v14565_v31  ;;  %v15006_v24 = vld [vmem:[%s24383_s0 + $0x6] sm:$0x1] }
0x17fb   :  { %v21075_v7 = vpop.f32.mrf.mxu0 }
0x17fc   :  { %v21108_v17 = vpop.f32.mrf.mxu1 }
0x17fd   :  { %v15007_v17 = vld [vmem:[%s24383_s0 + $0x1] sm:$0x1] }
0x1803   :  { %v14736_v23 = vpop.f32.mrf.mxu0 }
0x1804   :  { %v14971_v44 = vpop.f32.mrf.mxu1  ;;  %v14737_v25 = vadd.f32 %v14736_v23, %v14657_v2 }
0x1805   :  { %v21097_v16 = vpop.f32.mrf.mxu0 }
0x1806   :  { %v21130_v45 = vpop.f32.mrf.mxu1  ;;  %v14814_v22 = vadd.f32 %v14813_v47, %v14737_v25 }
0x180c   :  { %v14896_v51 = vpop.f32.mrf.mxu0 }
0x180d   :  { %v14897_v50 = vadd.f32 %v14896_v51, %v14814_v22 }
0x180e   :  { %v21119_v11 = vpop.f32.mrf.mxu0 }
0x180f   :  { %v14972_v20 = vadd.f32 %v14971_v44, %v14897_v50 }
0x1811   :  { %v14982_v37 = vrot.slane %v14972_v20, %v22336_v53 }
0x1813   :  { %v14983_v6 = vcombine.high %v14982_v37, %v14982_v37  ;;  %v14990_v63 = vrot.slane %v14982_v37, %v22336_v53 }
0x1815   :  { %v14997_v43 = vrot.slane %v14983_v6, %v22336_v53  ;;  %v15000_v35 = vadd.f32 %v23624_v52, %v14990_v63 }
0x1817   :  { %v15001_v7 = vadd.f32 %v23624_v52, %v14997_v43  ;;  %21623 = vtanh.f32 %v15000_v35 }
0x1819   :  { %21625 = vtanh.f32 %v15001_v7 }
0x1824   :  { %v21624_v16 = vpop.eup %21623 }
0x1825   :  { %v15004_v31 = vmul.f32 2.0, %v21624_v16 }
0x1826   :  { %v21626_v47 = vpop.eup %21625 }
0x1827   :  { %v15005_v23 = vmul.f32 2.0, %v21626_v47  ;;  %v15008_v44 = vmul.f32 %v15006_v24, %v15004_v31  ;;  %v24681_v47 = vld [vmem:[#allocation11_spill] sm:$0xff] }
0x1829   :  { %v15010_v2 = vmul.f32 %v15008_v44, %v15004_v31  ;;  %v15009_v45 = vmul.f32 %v15007_v17, %v15005_v23  ;;  %v24683_v17 = vld [vmem:[#allocation14_spill] sm:$0xff] }
0x182b   :  { %v15012_v25 = vmul.f32 %v15010_v2, %v15004_v31  ;;  %v15011_v22 = vmul.f32 %v15009_v45, %v15005_v23  ;;  %v24680_v31 = vld [vmem:[#allocation10_spill] sm:$0xff] }
0x182d   :  { %v15015_v52 = vsel %vm59_vm1, %v15012_v25, 0  ;;  %v15013_v11 = vmul.f32 %v15011_v22, %v15005_v23 }
0x182e   :  { %v15084_v51 = vand.u32 4294901760, %v15015_v52 }
0x182f   :  { %v15477_v6 = vsel %vm59_vm1, %v15013_v11, 0 }
0x1830   :  { %v15085_v50 = vsub.f32 %v15015_v52, %v15084_v51  ;;  %21143 = vmatmul.mubr.f32.vlgmr.msra.gmra.mxu1 %v15084_v51  ;;  %v15546_v43 = vand.u32 4294901760, %v15477_v6 }
0x1831   :  { %21153 = vmatpush3.msra.mxu1 %v21781_v4  ;;  %21156 = vmatprep.mubr.msk.f32.mxu1 %vm21722_vm0, %v24532_v49 }
0x1832   :  { %21154 = vmatprep.subr.mxu1 %v24532_v49  ;;  %v15086_v20 = vand.u32 4294901760, %v15085_v50  ;;  %v15547_v35 = vsub.f32 %v15477_v6, %v15546_v43 }
0x1833   :  { %21155 = vmatpush3.msra.mxu1 %v21783_v5 }
0x1834   :  { %21157 = vmatmul.mubr.f32.vlgmr.msra.gmra.mxu1 %v15086_v20  ;;  %21166 = vmatprep.subr.mxu1 %v24532_v49  ;;  %v15087_v37 = vsub.f32 %v15085_v50, %v15086_v20  ;;  %v15548_v7 = vand.u32 4294901760, %v15547_v35 }
0x1835   :  { %21167 = vmatpush3.msra.mxu1 %v21781_v4  ;;  %21170 = vmatprep.mubr.msk.f32.mxu1 %vm21722_vm0, %v24532_v49 }
0x1836   :  { %21168 = vmatprep.subr.mxu1 %v24532_v49  ;;  %v15088_v63 = vand.u32 4294901760, %v15087_v37  ;;  %v15549_v16 = vsub.f32 %v15547_v35, %v15548_v7 }
0x1837   :  { %21169 = vmatpush3.msra.mxu1 %v21783_v5 }
0x1838   :  { %21136 = vmatmul.mubr.f32.vlgmr.msra.gmra.mxu0 %v15088_v63  ;;  %21171 = vmatmul.mubr.f32.vlgmr.msra.gmra.mxu1 %v15084_v51  ;;  %v15550_v24 = vand.u32 4294901760, %v15549_v16 }
0x1839   :  { %21180 = vmatprep.subr.mxu1 %v24532_v49  ;;  %21146 = vmatpush3.msra.mxu0 %v21790_v8 }
0x183a   :  { %21181 = vmatpush3.msra.mxu1 %v21873_v36  ;;  %21147 = vmatprep.subr.mxu0 %v24532_v49 }
0x183b   :  { %21182 = vmatprep.subr.mxu1 %v24532_v49  ;;  %21148 = vmatpush3.msra.mxu0 %v21793_v9 }
0x183c   :  { %21149 = vmatprep.mubr.msk.f32.mxu0 %vm21722_vm0, %v24532_v49  ;;  %21183 = vmatpush3.msra.mxu1 %v21880_v38 }
0x183d   :  { %21184 = vmatprep.mubr.msk.f32.mxu1 %vm21722_vm0, %v24532_v49  ;;  %21150 = vmatmul.mubr.f32.vlgmr.msra.gmra.mxu0 %v15085_v50 }
0x183e   :  { %21159 = vmatprep.subr.mxu0 %v24532_v49  ;;  %21185 = vmatmul.mubr.f32.vlgmr.msra.gmra.mxu1 %v15546_v43 }
0x183f   :  { %21194 = vmatprep.subr.mxu1 %v24532_v49  ;;  %21160 = vmatpush3.msra.mxu0 %v21802_v12 }
0x1840   :  { %21195 = vmatpush3.msra.mxu1 %v21819_v21  ;;  %21161 = vmatprep.subr.mxu0 %v24532_v49 }
0x1841   :  { %21196 = vmatprep.subr.mxu1 %v24532_v49  ;;  %21162 = vmatpush3.msra.mxu0 %v21805_v13 }
0x1842   :  { %21163 = vmatprep.mubr.msk.f32.mxu0 %vm21722_vm0, %v24532_v49  ;;  %21197 = vmatpush3.msra.mxu1 %v21827_v26 }
0x1843   :  { %21198 = vmatprep.mubr.msk.f32.mxu1 %vm21722_vm0, %v24532_v49  ;;  %21164 = vmatmul.mubr.f32.vlgmr.msra.gmra.mxu0 %v15084_v51 }
0x1844   :  { %21173 = vmatprep.subr.mxu0 %v24532_v49  ;;  %21199 = vmatmul.mubr.f32.vlgmr.msra.gmra.mxu1 %v15548_v7 }
0x1845   :  { %21208 = vmatprep.subr.mxu1 %v24532_v49  ;;  %21174 = vmatpush3.msra.mxu0 %v21819_v21 }
0x1846   :  { %21209 = vmatpush3.msra.mxu1 %v21819_v21  ;;  %21175 = vmatprep.subr.mxu0 %v24532_v49 }
0x1847   :  { %21210 = vmatprep.subr.mxu1 %v24532_v49  ;;  %21176 = vmatpush3.msra.mxu0 %v21827_v26 }
0x1848   :  { %21177 = vmatprep.mubr.msk.f32.mxu0 %vm21722_vm0, %v24532_v49  ;;  %21211 = vmatpush3.msra.mxu1 %v21827_v26 }
0x1849   :  { %21212 = vmatprep.mubr.msk.f32.mxu1 %vm21722_vm0, %v24532_v49  ;;  %21178 = vmatmul.mubr.f32.vlgmr.msra.gmra.mxu0 %v15550_v24 }
0x184a   :  { %21187 = vmatprep.subr.mxu0 %v24532_v49  ;;  %21213 = vmatmul.mubr.f32.vlgmr.msra.gmra.mxu1 %v15546_v43 }
0x184b   :  { %21188 = vmatpush3.msra.mxu0 %v21832_v27  ;;  %21191 = vmatprep.mubr.msk.f32.mxu0 %vm21722_vm0, %v24532_v49 }
0x184c   :  { %21189 = vmatprep.subr.mxu0 %v24532_v49  ;;  %21226 = vmatprep.subr.mxu1 %v24532_v49 }
0x184d   :  { %21190 = vmatpush3.msra.mxu0 %v21840_v29  ;;  %21227 = vmatpush3.msra.mxu1 %v21985_v3  ;;  %v24682_v3 = vld [vmem:[#allocation12_spill] sm:$0xff] }
0x184e   :  { %21192 = vmatmul.mubr.f32.vlgmr.msra.gmra.mxu0 %v15547_v35  ;;  %21201 = vmatprep.subr.mxu0 %v24532_v49 }
0x184f   :  { %21202 = vmatpush3.msra.mxu0 %v21848_v30  ;;  %21205 = vmatprep.mubr.msk.f32.mxu0 %vm21722_vm0, %v24532_v49 }
0x1850   :  { %21203 = vmatprep.subr.mxu0 %v24532_v49  ;;  %21228 = vmatprep.subr.mxu1 %v24532_v49 }
0x1851   :  { %21204 = vmatpush3.msra.mxu0 %v24680_v31  ;;  %21229 = vmatpush3.msra.mxu1 %v24681_v47 }
0x1852   :  { %21206 = vmatmul.mubr.f32.vlgmr.msra.gmra.mxu0 %v15546_v43  ;;  %21230 = vmatprep.subr.mxu1 %v24532_v49 }
0x1853   :  { %21231 = vmatpush3.msra.mxu1 %v24682_v3  ;;  %21215 = vmatprep.subr.mxu0 %v24532_v49 }
0x1854   :  { %21232 = vmatprep.subr.mxu1 %v24532_v49  ;;  %21234 = vmatprep.mubr.msk.f32.mxu1 %vm21722_vm0, %v24532_v49 }
0x1855   :  { %21233 = vmatpush3.msra.mxu1 %v24683_v17  ;;  %21216 = vmatpush3.msra.mxu0 %v21949_v54 }
0x1856   :  { %21248 = vmatprep.subr.mxu1 %v24532_v49  ;;  %21217 = vmatprep.subr.mxu0 %v24532_v49 }
0x1857   :  { %21218 = vmatpush3.msra.mxu0 %v21951_v55  ;;  %21223 = vmatprep.mubr.msk.f32.mxu0 %vm21722_vm0, %v24532_v49 }
0x1858   :  { %21219 = vmatprep.subr.mxu0 %v24532_v49 }
0x1859   :  { %21220 = vmatpush3.msra.mxu0 %v21953_v56 }
0x185a   :  { %21221 = vmatprep.subr.mxu0 %v24532_v49 }
0x185b   :  { %21222 = vmatpush3.msra.mxu0 %v21998_v14 }
0x185c   :  { %21237 = vmatprep.subr.mxu0 %v24532_v49 }
0x18f0   :  { %v15171_v23 = vpop.f32.mrf.mxu1 }
0x18f2   :  { %v21144_v44 = vpop.f32.mrf.mxu1 }
0x18f4   :  { %v15322_v2 = vpop.f32.mrf.mxu1 }
0x18f6   :  { %v21158_v45 = vpop.f32.mrf.mxu1 }
0x18f8   :  { %v15090_v25 = vpop.f32.mrf.mxu0  ;;  %v15472_v22 = vpop.f32.mrf.mxu1 }
0x18f9   :  { %v15091_v52 = vadd.f32 %v15090_v25, %v23943_v19 }
0x18fa   :  { %v21137_v51 = vpop.f32.mrf.mxu0  ;;  %v21172_v50 = vpop.f32.mrf.mxu1 }
0x18fb   :  { %v15172_v11 = vadd.f32 %v15171_v23, %v15091_v52 }
0x18fd   :  { %v15247_v20 = vpop.f32.mrf.mxu0 }
0x18fe   :  { %v15248_v37 = vadd.f32 %v15247_v20, %v15172_v11  ;;  %v15633_v6 = vpop.f32.mrf.mxu1 }
0x18ff   :  { %v21151_v63 = vpop.f32.mrf.mxu0 }
0x1900   :  { %v21186_v43 = vpop.f32.mrf.mxu1  ;;  %v15323_v35 = vadd.f32 %v15322_v2, %v15248_v37 }
0x1903   :  { %v15399_v7 = vpop.f32.mrf.mxu0 }
0x1904   :  { %v15400_v16 = vadd.f32 %v15399_v7, %v15323_v35  ;;  %v15784_v24 = vpop.f32.mrf.mxu1 }
0x1905   :  { %v21165_v47 = vpop.f32.mrf.mxu0 }
0x1906   :  { %v15473_v3 = vadd.f32 %v15472_v22, %v15400_v16  ;;  %v21200_v17 = vpop.f32.mrf.mxu1 }
0x1908   :  { %v15938_v44 = vadd.f32 %v23720_v18, %v15473_v3 }
0x1909   :  { %v15552_v45 = vpop.f32.mrf.mxu0 }
0x190a   :  { %21627 = vtanh.f32 %v15938_v44  ;;  %v15553_v19 = vadd.f32 %v15552_v45, %v23945_v39  ;;  %v15934_v25 = vpop.f32.mrf.mxu1  ;;  %v18517_v39 = vmul.f32 -1.442695, %v15938_v44 }
0x190b   :  { %v21179_v23 = vpop.f32.mrf.mxu0 }
0x190c   :  { %v21214_v52 = vpop.f32.mrf.mxu1  ;;  %v15634_v51 = vadd.f32 %v15633_v6, %v15553_v19 }
0x190e   :  { %v15709_v50 = vpop.f32.mrf.mxu0 }
0x190f   :  { %v15710_v11 = vadd.f32 %v15709_v50, %v15634_v51 }
0x1910   :  { %v21193_v20 = vpop.f32.mrf.mxu0 }
0x1911   :  { %v15785_v2 = vadd.f32 %v15784_v24, %v15710_v11 }
0x1912   :  { %v15861_v37 = vpop.f32.mrf.mxu0 }
0x1913   :  { %v15862_v63 = vadd.f32 %v15861_v37, %v15785_v2 }
0x1914   :  { %v21207_v43 = vpop.f32.mrf.mxu0 }
0x1915   :  { %v15935_v35 = vadd.f32 %v15934_v25, %v15862_v63 }
0x1917   :  { %v21628_v22 = vpop.eup %21627  ;;  %v15939_v7 = vadd.f32 %v23727_v46, %v15935_v35 }
0x1918   :  { %15958 = vrot.lane.b32.xlu0 %v21628_v22, %s21723_s18 }
0x1919   :  { %21629 = vtanh.f32 %v15939_v7  ;;  %v18518_v6 = vmul.f32 -1.442695, %v15939_v7 }
0x191a   :  { %21631 = vpow2.f32 %v18517_v39 }
0x191b   :  { %21633 = vpow2.f32 %v18518_v6 }
0x1926   :  { %v21630_v18 = vpop.eup %21629 }
0x1927   :  { %15960 = vrot.lane.b32.xlu1 %v21630_v18, %s21723_s18  ;;  %v21632_v16 = vpop.eup %21631 }
0x1928   :  { %v15946_v47 = vadd.f32 1.0, %v21632_v16  ;;  %v21634_v24 = vpop.eup %21633 }
0x1929   :  { %v15947_v3 = vadd.f32 1.0, %v21634_v24 }
0x192a   :  { %21635 = vrcp.f32 %v15946_v47 }
0x192b   :  { %21637 = vrcp.f32 %v15947_v3 }
0x1937   :  { %v21636_v17 = vpop.eup %21635 }
0x1938   :  { %v21638_v46 = vpop.eup %21637  ;;  %v15954_v44 = vmul.f32 %v21636_v17, %v23735_v32 }
0x1939   :  { %v15955_v50 = vmul.f32 %v21638_v46, %v23739_v48 }
0x198a   :  { %v15959_v45 = vpop.permute.xlu0 %15958 }
0x198b   :  { %v15964_v19 = vmul.f32 %v21636_v17, %v15959_v45  ;;  %v24695_v45 = vld [vmem:[#allocation43_spill] sm:$0xff] }
0x198d   :  { %15968 = vrot.lane.b32.xlu0 %v15964_v19, %s21724_s19 }
0x1999   :  { %v15961_v25 = vpop.permute.xlu1 %15960 }
0x199a   :  { %v15965_v23 = vmul.f32 %v21638_v46, %v15961_v25 }
0x199c   :  { %15970 = vrot.lane.b32.xlu1 %v15965_v23, %s21724_s19  ;;  %v24697_v23 = vld [vmem:[#allocation29_spill] sm:$0xff] }
0x19ff   :  { %v15969_v52 = vpop.permute.xlu0 %15968 }
0x1a00   :  { %v24049_v51 = vadd.f32 %v15969_v52, %v15954_v44  ;;  %v24698_v44 = vld [vmem:[#allocation31_spill] sm:$0xff] }
0x1a02   :  { %21639 = vtanh.f32 %v24049_v51 }
0x1a0e   :  { %v15971_v11 = vpop.permute.xlu1 %15970 }
0x1a0f   :  { %v21640_v20 = vpop.eup %21639  ;;  %v24053_v2 = vadd.f32 %v15971_v11, %v15955_v50  ;;  %v24699_v50 = vld [vmem:[#allocation33_spill] sm:$0xff]  ;;  %v24700_v11 = vld [vmem:[#allocation30_spill] sm:$0xff] }
0x1a10   :  { %15980 = vrot.lane.b32.xlu0 %v21640_v20, %s21723_s18  ;;  %v24701_v20 = vld [vmem:[#allocation32_spill] sm:$0xff] }
0x1a11   :  { %21641 = vtanh.f32 %v24053_v2  ;;  %v16976_v43 = vrot.slane %v24053_v2, 7 }
0x1a13   :  { %v16977_v48 = vsel %vm2024_vm2, %v16976_v43, %v24049_v51  ;;  %v24705_v43 = vld [vmem:[#allocation36_spill] sm:$0xff] }
0x1a1e   :  { %v21642_v37 = vpop.eup %21641 }
0x1a1f   :  { %15982 = vrot.lane.b32.xlu1 %v21642_v37, %s21723_s18  ;;  %v24702_v37 = vld [vmem:[#allocation35_spill] sm:$0xff] }
0x1a82   :  { %v15981_v63 = vpop.permute.xlu0 %15980 }
0x1a83   :  { %v15986_v32 = vmul.f32 %v21636_v17, %v15981_v63  ;;  %v24694_v17 = vld [vmem:[#allocation26_spill] sm:$0xff]  ;;  %v24703_v63 = vld [vmem:[#allocation37_spill] sm:$0xff] }
0x1a85   :  { %15989 = vrot.lane.b32.xlu0 %v15986_v32, %s21724_s19  ;;  %v24704_v32 = vld [vmem:[#allocation34_spill] sm:$0xff] }
0x1a89   :  { %16978 = vrot.lane.b32.xlu0 %v16977_v48, %s21725_s20  ;;  %v24706_v48 = vld [vmem:[#allocation8_spill] sm:$0xff] }
0x1a91   :  { %v15983_v35 = vpop.permute.xlu1 %15982 }
0x1a92   :  { %v24063_v22 = vmul.f32 %v21638_v46, %v15983_v35  ;;  %v24696_v46 = vld [vmem:[#allocation28_spill] sm:$0xff]  ;;  %v24707_v35 = vld [vmem:[#allocation38_spill] sm:$0xff] }
0x1a94   :  { %16485 = vrot.lane.b32.xlu1 %v24063_v22, %s21724_s19 }
0x1af7   :  { %v24067_v7 = vpop.permute.xlu0 %15989 }
0x1af8   :  { %v15998_v18 = vsel %vm1044_vm4, %v24067_v7, 0 }
0x1af9   :  { %v16069_v39 = vand.u32 4294901760, %v15998_v18 }
0x1afb   :  { %v16070_v6 = vsub.f32 %v15998_v18, %v16069_v39  ;;  %21235 = vmatmul.mubr.f32.vlgmr.msra.gmra.mxu1 %v16069_v39  ;;  %v24708_v18 = vld [vmem:[#allocation9_spill] sm:$0xff] }
0x1afc   :  { %21249 = vmatpush3.msra.mxu1 %v21949_v54  ;;  %21256 = vmatprep.mubr.msk.f32.mxu1 %vm21722_vm0, %v24532_v49 }
0x1afd   :  { %v16071_v16 = vand.u32 4294901760, %v16070_v6  ;;  %21250 = vmatprep.subr.mxu1 %v24532_v49 }
0x1afe   :  { %21251 = vmatpush3.msra.mxu1 %v21951_v55 }
0x1aff   :  { %v16072_v47 = vsub.f32 %v16070_v6, %v16071_v16  ;;  %21252 = vmatprep.subr.mxu1 %v24532_v49 }
0x1b00   :  { %21253 = vmatpush3.msra.mxu1 %v21953_v56 }
0x1b01   :  { %v16073_v24 = vand.u32 4294901760, %v16072_v47  ;;  %21254 = vmatprep.subr.mxu1 %v24532_v49 }
0x1b02   :  { %21255 = vmatpush3.msra.mxu1 %v21998_v14 }
0x1b03   :  { %21257 = vmatmul.mubr.f32.vlgmr.msra.gmra.mxu1 %v16071_v16  ;;  %21270 = vmatprep.subr.mxu1 %v24532_v49 }
0x1b04   :  { %21224 = vmatmul.mubr.f32.vlgmr.msra.gmra.mxu0 %v16073_v24  ;;  %21271 = vmatpush3.msra.mxu1 %v21949_v54 }
0x1b05   :  { %21238 = vmatpush3.msra.mxu0 %v21956_v57  ;;  %21272 = vmatprep.subr.mxu1 %v24532_v49 }
0x1b06   :  { %21239 = vmatprep.subr.mxu0 %v24532_v49  ;;  %21273 = vmatpush3.msra.mxu1 %v21951_v55  ;;  %v16486_v3 = vpop.permute.xlu1 %16485 }
0x1b07   :  { %21240 = vmatpush3.msra.mxu0 %v21959_v58  ;;  %21274 = vmatprep.subr.mxu1 %v24532_v49  ;;  %v16487_v54 = vsel %vm1044_vm4, %v16486_v3, 0 }
0x1b08   :  { %21241 = vmatprep.subr.mxu0 %v24532_v49  ;;  %21275 = vmatpush3.msra.mxu1 %v21953_v56  ;;  %v24101_v55 = vand.u32 4294901760, %v16487_v54 }
0x1b09   :  { %21242 = vmatpush3.msra.mxu0 %v21962_v59  ;;  %21276 = vmatprep.subr.mxu1 %v24532_v49 }
0x1b0a   :  { %21243 = vmatprep.subr.mxu0 %v24532_v49  ;;  %21245 = vmatprep.mubr.msk.f32.mxu0 %vm21722_vm0, %v24532_v49  ;;  %v16559_v56 = vsub.f32 %v16487_v54, %v24101_v55 }
0x1b0b   :  { %21244 = vmatpush3.msra.mxu0 %v22001_v15  ;;  %21277 = vmatpush3.msra.mxu1 %v21998_v14  ;;  %v24686_v14 = vld [vmem:[#allocation22_spill] sm:$0xff]  ;;  %v24687_v15 = vld [vmem:[#allocation24_spill] sm:$0xff] }
0x1b0c   :  { %21278 = vmatprep.mubr.msk.f32.mxu1 %vm21722_vm0, %v24532_v49  ;;  %21246 = vmatmul.mubr.f32.vlgmr.msra.gmra.mxu0 %v16070_v6  ;;  %v16560_v57 = vand.u32 4294901760, %v16559_v56 }
0x1b0d   :  { %21259 = vmatprep.subr.mxu0 %v24532_v49  ;;  %21279 = vmatmul.mubr.f32.vlgmr.msra.gmra.mxu1 %v16069_v39 }
0x1b0e   :  { %21292 = vmatprep.subr.mxu1 %v24532_v49  ;;  %21260 = vmatpush3.msra.mxu0 %v21967_v60  ;;  %v16561_v58 = vsub.f32 %v16559_v56, %v16560_v57  ;;  %v24684_v60 = vld [vmem:[#allocation17_spill] sm:$0xff] }
0x1b0f   :  { %21293 = vmatpush3.msra.mxu1 %v22094_v28  ;;  %21261 = vmatprep.subr.mxu0 %v24532_v49 }
0x1b10   :  { %21294 = vmatprep.subr.mxu1 %v24532_v49  ;;  %21262 = vmatpush3.msra.mxu0 %v21970_v61  ;;  %v16562_v59 = vand.u32 4294901760, %v16561_v58  ;;  %v24685_v61 = vld [vmem:[#allocation19_spill] sm:$0xff] }
0x1b11   :  { %21295 = vmatpush3.msra.mxu1 %v22102_v34  ;;  %21263 = vmatprep.subr.mxu0 %v24532_v49  ;;  %v24688_v34 = vld [vmem:[#allocation21_spill] sm:$0xff] }
0x1b12   :  { %21296 = vmatprep.subr.mxu1 %v24532_v49  ;;  %21264 = vmatpush3.msra.mxu0 %v21973_v62  ;;  %v16979_v62 = vpop.permute.xlu0 %16978 }
0x1b13   :  { %21297 = vmatpush3.msra.mxu1 %v22112_v40  ;;  %21265 = vmatprep.subr.mxu0 %v24532_v49  ;;  %v24689_v40 = vld [vmem:[#allocation40_spill] sm:$0xff] }
0x1b14   :  { %21298 = vmatprep.subr.mxu1 %v24532_v49  ;;  %21266 = vmatpush3.msra.mxu0 %v24534_v0  ;;  %v24690_v0 = vld [vmem:[#allocation23_spill] sm:$0xff] }
0x1b15   :  { %21267 = vmatprep.mubr.msk.f32.mxu0 %vm21722_vm0, %v24532_v49  ;;  %21299 = vmatpush3.msra.mxu1 %v24535_v33  ;;  %v24691_v33 = vld [vmem:[#allocation41_spill] sm:$0xff] }
0x1b16   :  { %21300 = vmatprep.mubr.msk.f32.mxu1 %vm21722_vm0, %v24532_v49  ;;  %21268 = vmatmul.mubr.f32.vlgmr.msra.gmra.mxu0 %v16069_v39  ;;  %v24709_v39 = vld [vmem:[#allocation39_spill] sm:$0xff] }
0x1b17   :  { %21281 = vmatprep.subr.mxu0 %v24532_v49  ;;  %21301 = vmatmul.mubr.f32.vlgmr.msra.gmra.mxu1 %v24101_v55 }
0x1b18   :  { %21314 = vmatprep.subr.mxu1 %v24532_v49  ;;  %21282 = vmatpush3.msra.mxu0 %v22031_v41 }
0x1b19   :  { %21315 = vmatpush3.msra.mxu1 %v22031_v41  ;;  %21283 = vmatprep.subr.mxu0 %v24532_v49 }
0x1b1a   :  { %21316 = vmatprep.subr.mxu1 %v24532_v49  ;;  %21284 = vmatpush3.msra.mxu0 %v24536_v42 }
0x1b1b   :  { %21317 = vmatpush3.msra.mxu1 %v24536_v42  ;;  %21285 = vmatprep.subr.mxu0 %v24532_v49 }
0x1b1c   :  { %21318 = vmatprep.subr.mxu1 %v24532_v49  ;;  %21286 = vmatpush3.msra.mxu0 %v24563_v1 }
0x1b1d   :  { %21319 = vmatpush3.msra.mxu1 %v24563_v1  ;;  %21287 = vmatprep.subr.mxu0 %v24532_v49 }
0x1b1e   :  { %21320 = vmatprep.subr.mxu1 %v24532_v49  ;;  %21288 = vmatpush3.msra.mxu0 %v24624_v10 }
0x1b1f   :  { %21289 = vmatprep.mubr.msk.f32.mxu0 %vm21722_vm0, %v24532_v49  ;;  %21321 = vmatpush3.msra.mxu1 %v24624_v10 }
0x1b20   :  { %21322 = vmatprep.mubr.msk.f32.mxu1 %vm21722_vm0, %v24532_v49  ;;  %21290 = vmatmul.mubr.f32.vlgmr.msra.gmra.mxu0 %v16562_v59 }
0x1b21   :  { %21303 = vmatprep.subr.mxu0 %v24532_v49  ;;  %21323 = vmatmul.mubr.f32.vlgmr.msra.gmra.mxu1 %v16560_v57 }
0x1b22   :  { %21336 = vmatprep.subr.mxu1 %v24532_v49  ;;  %21304 = vmatpush3.msra.mxu0 %v24684_v60 }
0x1b23   :  { %21337 = vmatpush3.msra.mxu1 %v22031_v41  ;;  %21305 = vmatprep.subr.mxu0 %v24532_v49  ;;  %v16980_v41 = vsel %vm1044_vm4, %v16979_v62, 0 }
0x1b24   :  { %21338 = vmatprep.subr.mxu1 %v24532_v49  ;;  %21306 = vmatpush3.msra.mxu0 %v24685_v61  ;;  %v24167_v28 = vand.u32 4294901760, %v16980_v41 }
0x1b25   :  { %21339 = vmatpush3.msra.mxu1 %v24536_v42  ;;  %21307 = vmatprep.subr.mxu0 %v24532_v49 }
0x1b26   :  { %21340 = vmatprep.subr.mxu1 %v24532_v49  ;;  %21308 = vmatpush3.msra.mxu0 %v24686_v14  ;;  %v17052_v42 = vsub.f32 %v16980_v41, %v24167_v28 }
0x1b27   :  { %21341 = vmatpush3.msra.mxu1 %v24563_v1  ;;  %21309 = vmatprep.subr.mxu0 %v24532_v49  ;;  %v24692_v1 = vld [vmem:[#allocation25_spill] sm:$0xff] }
0x1b28   :  { %21342 = vmatprep.subr.mxu1 %v24532_v49  ;;  %21310 = vmatpush3.msra.mxu0 %v24687_v15  ;;  %v17053_v19 = vand.u32 4294901760, %v17052_v42 }
0x1b29   :  { %21311 = vmatprep.mubr.msk.f32.mxu0 %vm21722_vm0, %v24532_v49  ;;  %21343 = vmatpush3.msra.mxu1 %v24624_v10  ;;  %v24693_v10 = vld [vmem:[#allocation42_spill] sm:$0xff] }
0x1b2a   :  { %21344 = vmatprep.mubr.msk.f32.mxu1 %vm21722_vm0, %v24532_v49  ;;  %21312 = vmatmul.mubr.f32.vlgmr.msra.gmra.mxu0 %v16559_v56  ;;  %v17054_v25 = vsub.f32 %v17052_v42, %v17053_v19 }
0x1b2b   :  { %21325 = vmatprep.subr.mxu0 %v24532_v49  ;;  %21345 = vmatmul.mubr.f32.vlgmr.msra.gmra.mxu1 %v24101_v55 }
0x1b2c   :  { %21358 = vmatprep.subr.mxu1 %v24532_v49  ;;  %21326 = vmatpush3.msra.mxu0 %v24688_v34  ;;  %v17055_v52 = vand.u32 4294901760, %v17054_v25 }
0x1b2d   :  { %21359 = vmatpush3.msra.mxu1 %v24689_v40  ;;  %21327 = vmatprep.subr.mxu0 %v24532_v49 }
0x1b2e   :  { %21360 = vmatprep.subr.mxu1 %v24532_v49  ;;  %21328 = vmatpush3.msra.mxu0 %v24690_v0 }
0x1b2f   :  { %21361 = vmatpush3.msra.mxu1 %v24691_v33  ;;  %21329 = vmatprep.subr.mxu0 %v24532_v49 }
0x1b30   :  { %21362 = vmatprep.subr.mxu1 %v24532_v49  ;;  %21330 = vmatpush3.msra.mxu0 %v24692_v1 }
0x1b31   :  { %21363 = vmatpush3.msra.mxu1 %v24693_v10  ;;  %21331 = vmatprep.subr.mxu0 %v24532_v49 }
0x1b32   :  { %21364 = vmatprep.subr.mxu1 %v24532_v49  ;;  %21332 = vmatpush3.msra.mxu0 %v24694_v17 }
0x1b33   :  { %21333 = vmatprep.mubr.msk.f32.mxu0 %vm21722_vm0, %v24532_v49  ;;  %21365 = vmatpush3.msra.mxu1 %v24695_v45 }
0x1b34   :  { %21366 = vmatprep.mubr.msk.f32.mxu1 %vm21722_vm0, %v24532_v49  ;;  %21334 = vmatmul.mubr.f32.vlgmr.msra.gmra.mxu0 %v24101_v55 }
0x1b35   :  { %21347 = vmatprep.subr.mxu0 %v24532_v49  ;;  %21367 = vmatmul.mubr.f32.vlgmr.msra.gmra.mxu1 %v24167_v28 }
0x1b36   :  { %21380 = vmatprep.subr.mxu1 %v24532_v49  ;;  %21348 = vmatpush3.msra.mxu0 %v24696_v46 }
0x1b37   :  { %21381 = vmatpush3.msra.mxu1 %v24696_v46  ;;  %21349 = vmatprep.subr.mxu0 %v24532_v49 }
0x1b38   :  { %21382 = vmatprep.subr.mxu1 %v24532_v49  ;;  %21350 = vmatpush3.msra.mxu0 %v24697_v23 }
0x1b39   :  { %21383 = vmatpush3.msra.mxu1 %v24697_v23  ;;  %21351 = vmatprep.subr.mxu0 %v24532_v49 }
0x1b3a   :  { %21384 = vmatprep.subr.mxu1 %v24532_v49  ;;  %21352 = vmatpush3.msra.mxu0 %v24698_v44 }
0x1b3b   :  { %21385 = vmatpush3.msra.mxu1 %v24698_v44  ;;  %21353 = vmatprep.subr.mxu0 %v24532_v49 }
0x1b3c   :  { %21386 = vmatprep.subr.mxu1 %v24532_v49  ;;  %21354 = vmatpush3.msra.mxu0 %v24699_v50 }
0x1b3d   :  { %21355 = vmatprep.mubr.msk.f32.mxu0 %vm21722_vm0, %v24532_v49  ;;  %21387 = vmatpush3.msra.mxu1 %v24699_v50 }
0x1b3e   :  { %21388 = vmatprep.mubr.msk.f32.mxu1 %vm21722_vm0, %v24532_v49  ;;  %21356 = vmatmul.mubr.f32.vlgmr.msra.gmra.mxu0 %v17055_v52 }
0x1b3f   :  { %21369 = vmatprep.subr.mxu0 %v24532_v49  ;;  %21389 = vmatmul.mubr.f32.vlgmr.msra.gmra.mxu1 %v17053_v19 }
0x1b40   :  { %21402 = vmatprep.subr.mxu1 %v24532_v49  ;;  %21370 = vmatpush3.msra.mxu0 %v24700_v11 }
0x1b41   :  { %21403 = vmatpush3.msra.mxu1 %v24696_v46  ;;  %21371 = vmatprep.subr.mxu0 %v24532_v49 }
0x1b42   :  { %21404 = vmatprep.subr.mxu1 %v24532_v49  ;;  %21372 = vmatpush3.msra.mxu0 %v24701_v20 }
0x1b43   :  { %21405 = vmatpush3.msra.mxu1 %v24697_v23  ;;  %21373 = vmatprep.subr.mxu0 %v24532_v49 }
0x1b44   :  { %21406 = vmatprep.subr.mxu1 %v24532_v49  ;;  %21374 = vmatpush3.msra.mxu0 %v24702_v37 }
0x1b45   :  { %21407 = vmatpush3.msra.mxu1 %v24698_v44  ;;  %21375 = vmatprep.subr.mxu0 %v24532_v49 }
0x1b46   :  { %21408 = vmatprep.subr.mxu1 %v24532_v49  ;;  %21376 = vmatpush3.msra.mxu0 %v24703_v63 }
0x1b47   :  { %21377 = vmatprep.mubr.msk.f32.mxu0 %vm21722_vm0, %v24532_v49  ;;  %21409 = vmatpush3.msra.mxu1 %v24699_v50 }
0x1b48   :  { %21410 = vmatprep.mubr.msk.f32.mxu1 %vm21722_vm0, %v24532_v49  ;;  %21378 = vmatmul.mubr.f32.vlgmr.msra.gmra.mxu0 %v17052_v42 }
0x1b49   :  { %21391 = vmatprep.subr.mxu0 %v24532_v49  ;;  %21411 = vmatmul.mubr.f32.vlgmr.msra.gmra.mxu1 %v24167_v28 }
0x1b4a   :  { %21392 = vmatpush3.msra.mxu0 %v24704_v32  ;;  %21399 = vmatprep.mubr.msk.f32.mxu0 %vm21722_vm0, %v24532_v49 }
0x1b4b   :  { %21393 = vmatprep.subr.mxu0 %v24532_v49  ;;  %21420 = vmatprep.subr.mxu1 %v24532_v49 }
0x1b4c   :  { %21394 = vmatpush3.msra.mxu0 %v24705_v43  ;;  %21421 = vmatpush3.msra.mxu1 %v24706_v48 }
0x1b4d   :  { %21395 = vmatprep.subr.mxu0 %v24532_v49  ;;  %21422 = vmatprep.subr.mxu1 %v24532_v49 }
0x1b4e   :  { %21396 = vmatpush3.msra.mxu0 %v24707_v35  ;;  %21423 = vmatpush3.msra.mxu1 %v24708_v18 }
0x1b4f   :  { %21397 = vmatprep.subr.mxu0 %v24532_v49  ;;  %21424 = vmatprep.mubr.msk.f32.mxu1 %vm21722_vm0, %v24532_v49 }
0x1b50   :  { %21398 = vmatpush3.msra.mxu0 %v24709_v39  ;;  %21434 = vmatprep.subr.mxu1 %v24532_v49 }
0x1b51   :  { %21400 = vmatmul.mubr.f32.vlgmr.msra.gmra.mxu0 %v24167_v28  ;;  %21413 = vmatprep.subr.mxu0 %v24532_v49 }
0x1b52   :  { %21414 = vmatpush3.msra.mxu0 %v21781_v4  ;;  %21417 = vmatprep.mubr.msk.f32.mxu0 %vm21722_vm0, %v24532_v49 }
0x1b53   :  { %21415 = vmatprep.subr.mxu0 %v24532_v49 }
0x1b54   :  { %21416 = vmatpush3.msra.mxu0 %v21783_v5 }
0x1b55   :  { %21427 = vmatprep.subr.mxu0 %v24532_v49 }
0x1bbb   :  { %v16166_v6 = vpop.f32.mrf.mxu1 }
0x1bbd   :  { %v21236_v16 = vpop.f32.mrf.mxu1 }
0x1bc3   :  { %v16323_v47 = vpop.f32.mrf.mxu1 }
0x1bc4   :  { %v16075_v24 = vpop.f32.mrf.mxu0 }
0x1bc5   :  { %v16167_v3 = vadd.f32 %v16166_v6, %v16075_v24  ;;  %v21258_v54 = vpop.f32.mrf.mxu1 }
0x1bc6   :  { %v21225_v55 = vpop.f32.mrf.mxu0 }
0x1bcc   :  { %v16246_v56 = vpop.f32.mrf.mxu0 }
0x1bcd   :  { %v16247_v57 = vadd.f32 %v16246_v56, %v16167_v3  ;;  %v16481_v58 = vpop.f32.mrf.mxu1 }
0x1bce   :  { %v21247_v59 = vpop.f32.mrf.mxu0 }
0x1bcf   :  { %v21280_v60 = vpop.f32.mrf.mxu1  ;;  %v16324_v61 = vadd.f32 %v16323_v47, %v16247_v57 }
0x1bd0   :  { %v21671_v60 = vld [vmem:[%s24388_s5] sm:$0x1] }
0x1bd6   :  { %v16406_v62 = vpop.f32.mrf.mxu0 }
0x1bd7   :  { %v16407_v14 = vadd.f32 %v16406_v62, %v16324_v61  ;;  %v16655_v15 = vpop.f32.mrf.mxu1 }
0x1bd8   :  { %v21269_v41 = vpop.f32.mrf.mxu0 }
0x1bd9   :  { %v21302_v28 = vpop.f32.mrf.mxu1  ;;  %v24257_v34 = vadd.f32 %v16481_v58, %v16407_v14 }
0x1be0   :  { %v16564_v40 = vpop.f32.mrf.mxu0 }
0x1be1   :  { %v16656_v0 = vadd.f32 %v16655_v15, %v16564_v40  ;;  %v16812_v33 = vpop.f32.mrf.mxu1  ;;  %v17498_v15 = vld [vmem:[%s24383_s0 + $0x7] sm:$0x1]  ;;  %v17499_v40 = vld [vmem:[%s24383_s0] sm:$0x1] }
0x1be2   :  { %v21291_v42 = vpop.f32.mrf.mxu0 }
0x1be3   :  { %v21324_v1 = vpop.f32.mrf.mxu1 }
0x1bea   :  { %v16735_v10 = vpop.f32.mrf.mxu0 }
0x1beb   :  { %v16736_v17 = vadd.f32 %v16735_v10, %v16656_v0  ;;  %v16970_v45 = vpop.f32.mrf.mxu1 }
0x1bec   :  { %v21313_v19 = vpop.f32.mrf.mxu0 }
0x1bed   :  { %v21346_v46 = vpop.f32.mrf.mxu1  ;;  %v16813_v25 = vadd.f32 %v16812_v33, %v16736_v17 }
0x1bf4   :  { %v16895_v23 = vpop.f32.mrf.mxu0 }
0x1bf5   :  { %v16896_v44 = vadd.f32 %v16895_v23, %v16813_v25  ;;  %v17148_v52 = vpop.f32.mrf.mxu1 }
0x1bf6   :  { %v21335_v50 = vpop.f32.mrf.mxu0 }
0x1bf7   :  { %v21368_v11 = vpop.f32.mrf.mxu1  ;;  %v24259_v20 = vadd.f32 %v16970_v45, %v16896_v44 }
0x1bfe   :  { %v17057_v37 = vpop.f32.mrf.mxu0 }
0x1bff   :  { %v17305_v63 = vpop.f32.mrf.mxu1  ;;  %v17149_v18 = vadd.f32 %v17148_v52, %v17057_v37 }
0x1c00   :  { %v21357_v32 = vpop.f32.mrf.mxu0 }
0x1c01   :  { %v21390_v43 = vpop.f32.mrf.mxu1 }
0x1c08   :  { %v17228_v48 = vpop.f32.mrf.mxu0 }
0x1c09   :  { %v17463_v35 = vpop.f32.mrf.mxu1  ;;  %v17229_v16 = vadd.f32 %v17228_v48, %v17149_v18 }
0x1c0a   :  { %v21379_v39 = vpop.f32.mrf.mxu0 }
0x1c0b   :  { %v21412_v6 = vpop.f32.mrf.mxu1  ;;  %v17306_v47 = vadd.f32 %v17305_v63, %v17229_v16 }
0x1c11   :  { %v17388_v24 = vpop.f32.mrf.mxu0 }
0x1c12   :  { %v17389_v3 = vadd.f32 %v17388_v24, %v17306_v47  ;;  %v21672_v47 = vld [vmem:[%s24386_s3] sm:$0x1] }
0x1c13   :  { %v21401_v54 = vpop.f32.mrf.mxu0 }
0x1c14   :  { %v17464_v55 = vadd.f32 %v17463_v35, %v17389_v3 }
0x1c16   :  { %v17474_v56 = vrot.slane %v17464_v55, %v22336_v53 }
0x1c18   :  { %v17475_v57 = vcombine.high %v17474_v56, %v17474_v56  ;;  %v17482_v58 = vrot.slane %v17474_v56, %v22336_v53 }
0x1c1a   :  { %v17489_v59 = vrot.slane %v17475_v57, %v22336_v53  ;;  %v17492_v61 = vadd.f32 %v21671_v60, %v17482_v58 }
0x1c1c   :  { %v17493_v62 = vadd.f32 %v21671_v60, %v17489_v59  ;;  %21643 = vtanh.f32 %v17492_v61 }
0x1c1e   :  { %21645 = vtanh.f32 %v17493_v62 }
0x1c29   :  { %v21644_v14 = vpop.eup %21643 }
0x1c2a   :  { %v17496_v41 = vmul.f32 2.0, %v21644_v14 }
0x1c2b   :  { %v21646_v28 = vpop.eup %21645 }
0x1c2c   :  { %v17497_v53 = vmul.f32 2.0, %v21646_v28  ;;  %v17500_v0 = vmul.f32 %v17498_v15, %v17496_v41 }
0x1c2e   :  { %v17502_v33 = vmul.f32 %v17500_v0, %v17496_v41  ;;  %v17501_v42 = vmul.f32 %v17499_v40, %v17497_v53  ;;  %v21673_v40 = vld [vmem:[%s24386_s3 + $0x1] sm:$0x1]  ;;  %s21727_s3 = smov [#allocation5]  }
0x1c30   :  { %v17504_v1 = vmul.f32 %v17502_v33, %v17496_v41  ;;  %v17503_v10 = vmul.f32 %v17501_v42, %v17497_v53 }
0x1c32   :  { %v17507_v17 = vsel %vm59_vm1, %v17504_v1, 0  ;;  %v17505_v46 = vmul.f32 %v17503_v10, %v17497_v53 }
0x1c33   :  { %v17576_v45 = vand.u32 4294901760, %v17507_v17 }
0x1c34   :  { %v17969_v44 = vsel %vm59_vm1, %v17505_v46, 0 }
0x1c35   :  { %v17577_v19 = vsub.f32 %v17507_v17, %v17576_v45  ;;  %21425 = vmatmul.mubr.f32.vlgmr.msra.gmra.mxu1 %v17576_v45  ;;  %v18038_v50 = vand.u32 4294901760, %v17969_v44 }
0x1c36   :  { %21435 = vmatpush3.msra.mxu1 %v21781_v4  ;;  %21438 = vmatprep.mubr.msk.f32.mxu1 %vm21722_vm0, %v24532_v49 }
0x1c37   :  { %21436 = vmatprep.subr.mxu1 %v24532_v49  ;;  %v17578_v25 = vand.u32 4294901760, %v17577_v19 }
0x1c38   :  { %21437 = vmatpush3.msra.mxu1 %v21783_v5 }
0x1c39   :  { %21439 = vmatmul.mubr.f32.vlgmr.msra.gmra.mxu1 %v17578_v25  ;;  %21448 = vmatprep.subr.mxu1 %v24532_v49  ;;  %v17579_v23 = vsub.f32 %v17577_v19, %v17578_v25 }
0x1c3a   :  { %21449 = vmatpush3.msra.mxu1 %v21781_v4  ;;  %21452 = vmatprep.mubr.msk.f32.mxu1 %vm21722_vm0, %v24532_v49  ;;  %v18039_v4 = vsub.f32 %v17969_v44, %v18038_v50 }
0x1c3b   :  { %21450 = vmatprep.subr.mxu1 %v24532_v49  ;;  %v17580_v52 = vand.u32 4294901760, %v17579_v23 }
0x1c3c   :  { %21451 = vmatpush3.msra.mxu1 %v21783_v5  ;;  %v18040_v5 = vand.u32 4294901760, %v18039_v4 }
0x1c3d   :  { %21418 = vmatmul.mubr.f32.vlgmr.msra.gmra.mxu0 %v17580_v52  ;;  %21453 = vmatmul.mubr.f32.vlgmr.msra.gmra.mxu1 %v17576_v45 }
0x1c3e   :  { %21462 = vmatprep.subr.mxu1 %v24532_v49  ;;  %21428 = vmatpush3.msra.mxu0 %v21790_v8  ;;  %v18041_v8 = vsub.f32 %v18039_v4, %v18040_v5 }
0x1c3f   :  { %21463 = vmatpush3.msra.mxu1 %v21873_v36  ;;  %21429 = vmatprep.subr.mxu0 %v24532_v49 }
0x1c40   :  { %21464 = vmatprep.subr.mxu1 %v24532_v49  ;;  %21430 = vmatpush3.msra.mxu0 %v21793_v9  ;;  %v18042_v9 = vand.u32 4294901760, %v18041_v8 }
0x1c41   :  { %21431 = vmatprep.mubr.msk.f32.mxu0 %vm21722_vm0, %v24532_v49  ;;  %21465 = vmatpush3.msra.mxu1 %v21880_v38 }
0x1c42   :  { %21466 = vmatprep.mubr.msk.f32.mxu1 %vm21722_vm0, %v24532_v49  ;;  %21432 = vmatmul.mubr.f32.vlgmr.msra.gmra.mxu0 %v17577_v19 }
0x1c43   :  { %21441 = vmatprep.subr.mxu0 %v24532_v49  ;;  %21467 = vmatmul.mubr.f32.vlgmr.msra.gmra.mxu1 %v18038_v50 }
0x1c44   :  { %21476 = vmatprep.subr.mxu1 %v24532_v49  ;;  %21442 = vmatpush3.msra.mxu0 %v21802_v12 }
0x1c45   :  { %21477 = vmatpush3.msra.mxu1 %v21819_v21  ;;  %21443 = vmatprep.subr.mxu0 %v24532_v49 }
0x1c46   :  { %21478 = vmatprep.subr.mxu1 %v24532_v49  ;;  %21444 = vmatpush3.msra.mxu0 %v21805_v13 }
0x1c47   :  { %21445 = vmatprep.mubr.msk.f32.mxu0 %vm21722_vm0, %v24532_v49  ;;  %21479 = vmatpush3.msra.mxu1 %v21827_v26 }
0x1c48   :  { %21480 = vmatprep.mubr.msk.f32.mxu1 %vm21722_vm0, %v24532_v49  ;;  %21446 = vmatmul.mubr.f32.vlgmr.msra.gmra.mxu0 %v17576_v45 }
0x1c49   :  { %21455 = vmatprep.subr.mxu0 %v24532_v49  ;;  %21481 = vmatmul.mubr.f32.vlgmr.msra.gmra.mxu1 %v18040_v5 }
0x1c4a   :  { %21490 = vmatprep.subr.mxu1 %v24532_v49  ;;  %21456 = vmatpush3.msra.mxu0 %v21819_v21 }
0x1c4b   :  { %21491 = vmatpush3.msra.mxu1 %v21819_v21  ;;  %21457 = vmatprep.subr.mxu0 %v24532_v49 }
0x1c4c   :  { %21492 = vmatprep.subr.mxu1 %v24532_v49  ;;  %21458 = vmatpush3.msra.mxu0 %v21827_v26 }
0x1c4d   :  { %21459 = vmatprep.mubr.msk.f32.mxu0 %vm21722_vm0, %v24532_v49  ;;  %21493 = vmatpush3.msra.mxu1 %v21827_v26 }
0x1c4e   :  { %21494 = vmatprep.mubr.msk.f32.mxu1 %vm21722_vm0, %v24532_v49  ;;  %21460 = vmatmul.mubr.f32.vlgmr.msra.gmra.mxu0 %v18042_v9 }
0x1c4f   :  { %21469 = vmatprep.subr.mxu0 %v24532_v49  ;;  %21495 = vmatmul.mubr.f32.vlgmr.msra.gmra.mxu1 %v18038_v50 }
0x1c50   :  { %21470 = vmatpush3.msra.mxu0 %v21832_v27  ;;  %21473 = vmatprep.mubr.msk.f32.mxu0 %vm21722_vm0, %v24532_v49 }
0x1c51   :  { %21471 = vmatprep.subr.mxu0 %v24532_v49 }
0x1c52   :  { %21472 = vmatpush3.msra.mxu0 %v21840_v29 }
0x1c53   :  { %21474 = vmatmul.mubr.f32.vlgmr.msra.gmra.mxu0 %v18039_v4  ;;  %21483 = vmatprep.subr.mxu0 %v24532_v49 }
0x1c54   :  { %21484 = vmatpush3.msra.mxu0 %v21848_v30  ;;  %21487 = vmatprep.mubr.msk.f32.mxu0 %vm21722_vm0, %v24532_v49 }
0x1c55   :  { %21485 = vmatprep.subr.mxu0 %v24532_v49 }
0x1c56   :  { %21486 = vmatpush3.msra.mxu0 %v24680_v31 }
0x1c57   :  { %21488 = vmatmul.mubr.f32.vlgmr.msra.gmra.mxu0 %v18038_v50 }
0x1cf5   :  { %v17663_v12 = vpop.f32.mrf.mxu1 }
0x1cf7   :  { %v21426_v13 = vpop.f32.mrf.mxu1 }
0x1cf8   :  { %v24710_v13 = vld [vmem:[#allocation15_spill] sm:$0xff] }
0x1cf9   :  { %v17814_v21 = vpop.f32.mrf.mxu1 }
0x1cfb   :  { %v21440_v26 = vpop.f32.mrf.mxu1 }
0x1cfc   :  { %v24712_v26 = vld [vmem:[#allocation16_spill] sm:$0xff] }
0x1cfd   :  { %v17582_v27 = vpop.f32.mrf.mxu0  ;;  %v17964_v36 = vpop.f32.mrf.mxu1 }
0x1cfe   :  { %v17583_v29 = vadd.f32 %v17582_v27, %v24257_v34  ;;  %v24714_v27 = vld [vmem:[#allocation27_spill] sm:$0xff] }
0x1cff   :  { %v21419_v38 = vpop.f32.mrf.mxu0  ;;  %v21454_v11 = vpop.f32.mrf.mxu1 }
0x1d00   :  { %v17664_v37 = vadd.f32 %v17663_v12, %v17583_v29 }
0x1d02   :  { %v17739_v30 = vpop.f32.mrf.mxu0 }
0x1d03   :  { %v17740_v63 = vadd.f32 %v17739_v30, %v17664_v37  ;;  %v18125_v32 = vpop.f32.mrf.mxu1 }
0x1d04   :  { %v21433_v43 = vpop.f32.mrf.mxu0 }
0x1d05   :  { %v21468_v48 = vpop.f32.mrf.mxu1  ;;  %v17815_v49 = vadd.f32 %v17814_v21, %v17740_v63  ;;  %v24711_v21 = vld [vmem:[#allocation13_spill] sm:$0xff] }
0x1d08   :  { %v17891_v35 = vpop.f32.mrf.mxu0 }
0x1d09   :  { %v17892_v31 = vadd.f32 %v17891_v35, %v17815_v49  ;;  %v18276_v18 = vpop.f32.mrf.mxu1  ;;  %v24717_v35 = vld [vmem:[#allocation18_spill] sm:$0xff] }
0x1d0a   :  { %v21447_v39 = vpop.f32.mrf.mxu0 }
0x1d0b   :  { %v17965_v6 = vadd.f32 %v17964_v36, %v17892_v31  ;;  %v21482_v16 = vpop.f32.mrf.mxu1  ;;  %v24715_v36 = vld [vmem:[#allocation20_spill] sm:$0xff] }
0x1d0d   :  { %v18430_v34 = vadd.f32 %v21672_v47, %v17965_v6 }
0x1d0e   :  { %v18044_v24 = vpop.f32.mrf.mxu0 }
0x1d0f   :  { %21647 = vtanh.f32 %v18430_v34  ;;  %v18045_v3 = vadd.f32 %v18044_v24, %v24259_v20  ;;  %v18426_v54 = vpop.f32.mrf.mxu1  ;;  %v18519_v0 = vmul.f32 -1.442695, %v18430_v34 }
0x1d10   :  { %v21461_v55 = vpop.f32.mrf.mxu0 }
0x1d11   :  { %v21496_v56 = vpop.f32.mrf.mxu1  ;;  %v18126_v57 = vadd.f32 %v18125_v32, %v18045_v3 }
0x1d13   :  { %v18201_v58 = vpop.f32.mrf.mxu0 }
0x1d14   :  { %v18202_v59 = vadd.f32 %v18201_v58, %v18126_v57 }
0x1d15   :  { %v21475_v60 = vpop.f32.mrf.mxu0 }
0x1d16   :  { %v18277_v61 = vadd.f32 %v18276_v18, %v18202_v59 }
0x1d17   :  { %v18353_v62 = vpop.f32.mrf.mxu0 }
0x1d18   :  { %v18354_v14 = vadd.f32 %v18353_v62, %v18277_v61 }
0x1d19   :  { %v21489_v15 = vpop.f32.mrf.mxu0 }
0x1d1a   :  { %v18427_v41 = vadd.f32 %v18426_v54, %v18354_v14 }
0x1d1c   :  { %v21648_v28 = vpop.eup %21647  ;;  %v18431_v53 = vadd.f32 %v21673_v40, %v18427_v41 }
0x1d1d   :  { %18450 = vrot.lane.b32.xlu1 %v21648_v28, %s21723_s18 }
0x1d1e   :  { %21649 = vtanh.f32 %v18431_v53  ;;  %v18520_v33 = vmul.f32 -1.442695, %v18431_v53 }
0x1d1f   :  { %21651 = vpow2.f32 %v18519_v0 }
0x1d20   :  { %21653 = vpow2.f32 %v18520_v33 }
0x1d2b   :  { %v21650_v20 = vpop.eup %21649 }
0x1d2c   :  { %18452 = vrot.lane.b32.xlu0 %v21650_v20, %s21723_s18  ;;  %v21652_v42 = vpop.eup %21651 }
0x1d2d   :  { %v18438_v1 = vadd.f32 1.0, %v21652_v42  ;;  %v21654_v10 = vpop.eup %21653 }
0x1d2e   :  { %v18439_v17 = vadd.f32 1.0, %v21654_v10 }
0x1d2f   :  { %21655 = vrcp.f32 %v18438_v1 }
0x1d30   :  { %21657 = vrcp.f32 %v18439_v17 }
0x1d3c   :  { %v21656_v45 = vpop.eup %21655 }
0x1d3d   :  { %v21658_v25 = vpop.eup %21657  ;;  %v18446_v52 = vmul.f32 %v21656_v45, %v24049_v51 }
0x1d3e   :  { %v18447_v5 = vmul.f32 %v21658_v25, %v24053_v2  ;;  %v24713_v2 = vld [vmem:[#allocation44_spill] sm:$0xff] }
0x1d8f   :  { %v18451_v19 = vpop.permute.xlu1 %18450 }
0x1d90   :  { %v18456_v46 = vmul.f32 %v21656_v45, %v18451_v19 }
0x1d92   :  { %18460 = vrot.lane.b32.xlu1 %v18456_v46, %s21724_s19 }
0x1d9e   :  { %v18453_v23 = vpop.permute.xlu0 %18452 }
0x1d9f   :  { %v18457_v44 = vmul.f32 %v21658_v25, %v18453_v23 }
0x1da1   :  { %18462 = vrot.lane.b32.xlu0 %v18457_v44, %s21724_s19 }
0x1e04   :  { %v18461_v50 = vpop.permute.xlu1 %18460 }
0x1e05   :  { %v18466_v4 = vadd.f32 %v18461_v50, %v18446_v52 }
0x1e07   :  { %21659 = vtanh.f32 %v18466_v4 }
0x1e13   :  { %v18463_v8 = vpop.permute.xlu0 %18462 }
0x1e14   :  { %v21660_v9 = vpop.eup %21659  ;;  %v18467_v12 = vadd.f32 %v18463_v8, %v18447_v5 }
0x1e15   :  { %18472 = vrot.lane.b32.xlu1 %v21660_v9, %s21723_s18 }
0x1e16   :  { %21661 = vtanh.f32 %v18467_v12 }
0x1e19   :  { %1039 = vrot.lane.b32.xlu1 %v24710_v13, %s21723_s18 }
0x1e1d   :  { %6026 = vrot.lane.b32.xlu1 %v24711_v21, %s21723_s18 }
0x1e21   :  { %11010 = vrot.lane.b32.xlu1 %v24712_v26, %s21723_s18 }
0x1e23   :  { %v21662_v51 = vpop.eup %21661 }
0x1e24   :  { %18474 = vrot.lane.b32.xlu0 %v21662_v51, %s21723_s18 }
0x1e25   :  { %15994 = vrot.lane.b32.xlu1 %v24063_v22, %s21723_s18  ;;  %v24716_v22 = vld [vmem:[#allocation45_spill] sm:$0xff] }
0x1e28   :  { %3534 = vrot.lane.b32.xlu0 %v24713_v2, %s21723_s18 }
0x1e2c   :  { %8518 = vrot.lane.b32.xlu0 %v24714_v27, %s21723_s18 }
0x1e30   :  { %13502 = vrot.lane.b32.xlu0 %v24715_v36, %s21723_s18 }
0x1e87   :  { %v18473_v29 = vpop.permute.xlu1 %18472 }
0x1e88   :  { %v18478_v38 = vmul.f32 %v21656_v45, %v18473_v29 }
0x1e8a   :  { %18481 = vrot.lane.b32.xlu0 %v18478_v38, %s21724_s19 }
0x1e8b   :  { %v1040_v11 = vpop.permute.xlu1 %1039 }
0x1e8c   :  { %1043 = vst.msk [vmem:[#allocation5 + $0x7] sm:$0x1] %vm1042_vm5, %v1040_v11 }
0x1e8f   :  { %v6027_v37 = vpop.permute.xlu1 %6026 }
0x1e90   :  { %6029 = vst.msk [vmem:[#allocation5 + $0x5] sm:$0x1] %vm1042_vm5, %v6027_v37 }
0x1e91   :  { %13500 = vst.msk [vmem:[#allocation5 + $0x5] sm:$0x1] %vm1036_vm3, %v24716_v22 }
0x1e93   :  { %v11011_v30 = vpop.permute.xlu1 %11010 }
0x1e94   :  { %11013 = vst.msk [vmem:[#allocation5 + $0x3] sm:$0x1] %vm1042_vm5, %v11011_v30 }
0x1e96   :  { %v18475_v63 = vpop.permute.xlu0 %18474 }
0x1e97   :  { %v18479_v32 = vmul.f32 %v21658_v25, %v18475_v63  ;;  %v15995_v43 = vpop.permute.xlu1 %15994 }
0x1e98   :  { %15997 = vst.msk [vmem:[#allocation5 + $0x1] sm:$0x1] %vm1042_vm5, %v15995_v43 }
0x1e99   :  { %18486 = vrot.lane.b32.xlu1 %v18479_v32, %s21723_s18  ;;  %s18496_s18 = sshll.u32 %s21727_s3, 4  ;;  %s18497_s18 = int_to_ptr.vmem [resolvable:$true] %s18496_s18 }
0x1e9a   :  { %v3535_v48 = vpop.permute.xlu0 %3534  ;;  %s21694_s19 = scalar_lea.vmem %s18497_s18, 128  ;;  %p21699_p6 = scmp.lt.s32.totalorder %s18497_s18, %s18497_s18 }
0x1e9b   :  { %3537 = vst.msk [vmem:[#allocation5 + $0x6] sm:$0x1] %vm1042_vm5, %v3535_v48  ;;  %p21695_p5 = scmp.ne.s32.totalorder %s18497_s18, %s21694_s19  ;;  %p21700_p7 = scmp.lt.s32.totalorder %s21694_s19, %s21694_s19 }
0x1e9c   :  { %15992 = vst.msk [vmem:[#allocation5 + $0x6] sm:$0x1] %vm1036_vm3, %v24067_v7 }
0x1e9d   :  { %p21701_p8 = por %p21700_p7, %p21699_p6 }
0x1e9e   :  { %v8519_v49 = vpop.permute.xlu0 %8518 }
0x1e9f   :  { %8521 = vst.msk [vmem:[#allocation5 + $0x4] sm:$0x1] %vm1042_vm5, %v8519_v49  ;;  %p21702_p9 = pnand %p21701_p8, %p21695_p5 }
0x1ea0   :  { %11008 = vst.msk [vmem:[#allocation5 + $0x4] sm:$0x1] %vm1036_vm3, %v24717_v35 }
0x1ea2   :  { %v13503_v31 = vpop.permute.xlu0 %13502 }
0x1ea3   :  { %13505 = vst.msk [vmem:[#allocation5 + $0x2] sm:$0x1] %vm1042_vm5, %v13503_v31 }
0x1efc   :  { %v18482_v18 = vpop.permute.xlu0 %18481 }
0x1efd   :  { %18484 = vst.msk [vmem:[#allocation5 + $0x7] sm:$0x1] %vm1036_vm3, %v18482_v18 }
0x1f0b   :  { %v18487_v39 = vpop.permute.xlu1 %18486 }
0x1f0c   :  { %18489 = vst.msk [vmem:[#allocation5] sm:$0x1] %vm1042_vm5, %v18487_v39 }
0x1f0d   :  { %21705 = shalt.err (!%p21702_p9)
}
0x1f0e   :  { %18499 = dma.vmem_to_hbm [thread:$0]  %s18497_s18, 128, %s24389_s6, [#allocation4]  }
0x1f0f   :  { %21716 = dma.done.wait [#allocation4], 128  }
0x1f10   :  { %21717 = vsyncadd [#allocation4], 4294967168 }
0x1f11   :  { %18503 = vsyncpa [#allocation3], 1 }
0x1f12   :  { %18504 = vsyncpa [#allocation4], 1 }

</bundles_post_ra>
